<compile_context>
chip_gen: v7x
topology: tpu7x:2x2x1
jax: 0.10.0
libtpu: 0.0.40
codegen_flags: <defaults>
</compile_context>

<pallas_src>
import functools

import jax
import jax.numpy as jnp
from jax import lax
from jax.experimental import pallas as pl
from jax.experimental.pallas import tpu as pltpu


def _round_up(x, m):
    return ((x + m - 1) // m) * m


def _pick_batch_block(n, m_rows):
    """Largest divisor of n with nb*m_rows not overshooting ~256 GEMM rows
    (MXU row fill target on v6e/v7x; v5e only needs 128)."""
    target = max(1, (256 + m_rows - 1) // m_rows)
    best = 1
    for cand in range(1, n + 1):
        if n % cand == 0 and cand <= target:
            best = cand
    return best


# ----------------------------- weight re-layout (wrapper) -----------------------------

def _build_down_weight(wd, dtype):
    """Conv2d weight [inner, Cin, 4, 4] -> [16*Cin, inner], tap-merged space-to-depth
    2x2/stride-1 form.  K order = (dy, dx, a, b, ci) with kh = 2*dy+a, kw = 2*dx+b."""
    inner, cin = wd.shape[0], wd.shape[1]
    w = wd.reshape(inner, cin, 2, 2, 2, 2)        # (co, ci, dy, a, dx, b)
    w = w.transpose(2, 4, 3, 5, 1, 0)             # (dy, dx, a, b, ci, co)
    return w.reshape(16 * cin, inner).astype(dtype)


def _build_up_weight(wu, dtype):
    """ConvTranspose2d weight [inner, outer, 4, 4] -> [4, 4*inner, outer] in sub-pixel
    phase form: W[ph*2+pw, (a*2+b)*inner+ci, co] = wu[ci, co, 3-2a-ph, 3-2b-pw]."""
    inner, outer = wu.shape[0], wu.shape[1]
    wf = jnp.flip(wu, axis=(2, 3)).reshape(inner, outer, 2, 2, 2, 2)  # (ci, co, a, ph, b, pw)
    wf = wf.transpose(3, 5, 2, 4, 0, 1)                               # (ph, pw, a, b, ci, co)
    return wf.reshape(4, 4 * inner, outer).astype(dtype)


# --------------------------------- fused forward ---------------------------------------

def unet_innermost_forward(x, params, compute_dtype=jnp.bfloat16):
    """x: NCHW float32.  Returns concat([x, block(x)], channel) in NCHW float32."""
    N, Cin, H, W = x.shape
    assert H % 2 == 0 and W % 2 == 0, "UNet block needs even spatial dims"
    OH, OW = H // 2, W // 2
    OHp, OWp = OH + 1, OW + 1
    M = OH * OW
    M4 = 4 * M                                    # == H*W (4 sub-pixel phases)

    wd = params["down_w"]                         # Conv2d weight:          [inner, Cin, 4, 4]
    wu = params["up_w"]                           # ConvTranspose2d weight: [inner, outer, 4, 4]
    inner, outer = wd.shape[0], wu.shape[1]
    Cout = Cin + outer
    NB = _pick_batch_block(N, M)                  # batch elements per grid step (grows GEMM M)
    n_steps = N // NB
    itemsize = jnp.dtype(compute_dtype).itemsize

    K_dn = 16 * Cin                               # merged contraction dim of the down conv
    K_up = 4 * inner                              # merged contraction dim per up-conv phase
    OWp_a = _round_up(OWp, 8)                     # sublane-aligned scratch widths
    OW2_a = _round_up(OW + 2, 8)

    # VMEM budget of the fully fused (resident pre-BN activation) path
    vmem_need = (
        N * M4 * Cout * 4                                       # resident output block
        + 2 * NB * OHp * OWp * 4 * Cin * itemsize               # xs blocks (double-buffered)
        + 2 * NB * M4 * Cin * 4                                 # skip-row blocks
        + 2 * (K_dn * inner + 4 * K_up * outer) * itemsize      # weights
        + 2 * 8 * 128 * 4                                       # gamma/beta (vreg padded)
        + NB * OHp * OWp_a * 4 * Cin * itemsize                 # LeakyReLU scratch
        + NB * (OH + 2) * OW2_a * inner * itemsize              # zero-bordered d scratch
        + NB * M * (K_dn + K_up) * itemsize                     # merged-K patch scratches
    )
    # TODO(synk): two-pass spill path (bf16 u via HBM) when this does not hold.
    assert vmem_need < 40 * 1024 * 1024, "pre-BN activation must fit VMEM for the fused path"
    vmem_limit = int(min(max(4 * vmem_need, 8 * 1024 * 1024), 64 * 1024 * 1024))

    x = x.astype(jnp.float32)

    # pad + space-to-depth of the input (single layout pass, no im2col in HBM)
    x_nhwc = jnp.transpose(x, (0, 2, 3, 1))
    x_pad = jnp.pad(x_nhwc, ((0, 0), (1, 1), (1, 1), (0, 0)))
    xs = (x_pad.reshape(N, OHp, 2, OWp, 2, Cin)
               .transpose(0, 1, 3, 2, 4, 5)
               .reshape(N, OHp, OWp, 4 * Cin)).astype(compute_dtype)

    # skip rows pre-shuffled to the kernel's phase-major, channels-last layout
    x_pm = (x.reshape(N, Cin, OH, 2, OW, 2)
             .transpose(0, 3, 5, 2, 4, 1)
             .reshape(N, M4, Cin))

    w_down = _build_down_weight(wd, compute_dtype)               # (16*Cin, inner)
    w_up = _build_up_weight(wu, compute_dtype)                   # (4, 4*inner, outer)
    gb = jnp.stack([params["bn_gamma"].astype(jnp.float32),
                    params["bn_beta"].astype(jnp.float32)], axis=0)   # (2, outer)

    def kernel(xs_ref, xpm_ref, wdn_ref, wup_ref, gb_ref, out_ref,
               h_ref, dp_ref, dpat_ref, upat_ref):
        step = pl.program_id(0)

        @pl.when(step == 0)
        def _init():
            # only the 1-px zero border of dp is read un-overwritten -> zero once
            dp_ref[...] = jnp.zeros_like(dp_ref)

        # ---- hoisted LeakyReLU(0.2): each input element activated exactly once ----
        xb = xs_ref[...]
        h_ref[:, :, :OWp, :] = jnp.where(xb > 0, xb, 0.2 * xb)

        # ---- down conv: ONE tap-merged matmul, M = NB*OH*OW rows, K = 16*Cin ----
        for nb in range(NB):
            r0 = nb * M
            for t, (dy, dx) in enumerate(((0, 0), (0, 1), (1, 0), (1, 1))):
                dpat_ref[r0:r0 + M, t * 4 * Cin:(t + 1) * 4 * Cin] = (
                    h_ref[nb, dy:dy + OH, dx:dx + OW, :].reshape(M, 4 * Cin))
        d = jnp.dot(dpat_ref[...], wdn_ref[...], preferred_element_type=jnp.float32)
        d = jnp.maximum(d, 0.0).astype(compute_dtype)            # uprelu (ReLU)

        # interior of the zero-bordered, sublane-aligned d scratch
        for nb in range(NB):
            dp_ref[nb, 1:OH + 1, 1:OW + 1, :] = (
                d[nb * M:(nb + 1) * M, :].reshape(OH, OW, inner))

        # ---- up conv: ConvTranspose2d(4,2,1) as 4 sub-pixel phases, tap-merged K ----
        for p, (ph, pw) in enumerate(((0, 0), (0, 1), (1, 0), (1, 1))):
            for nb in range(NB):
                r0 = nb * M
                for t, (a, b) in enumerate(((0, 0), (0, 1), (1, 0), (1, 1))):
                    upat_ref[r0:r0 + M, t * inner:(t + 1) * inner] = (
                        dp_ref[nb, ph + a:ph + a + OH, pw + b:pw + b + OW, :]
                        .reshape(M, inner))
            u_p = jnp.dot(upat_ref[...], wup_ref[p],
                          preferred_element_type=jnp.float32)    # (NB*M, outer) f32
            for nb in range(NB):
                n = step * NB + nb
                out_ref[n, p * M:(p + 1) * M, Cin:Cout] = u_p[nb * M:(nb + 1) * M, :]

        # ---- skip connection (identity) ----
        for nb in range(NB):
            n = step * NB + nb
            out_ref[n, :, 0:Cin] = xpm_ref[nb]

        # ---- last step: exact two-pass BatchNorm applied in place on the resident u ----
        @pl.when(step == pl.num_programs(0) - 1)
        def _finalize():
            u_all = out_ref[:, :, Cin:Cout]                      # (N, H*W, outer), f32, VMEM
            cnt = jnp.float32(N * M4)
            mean = jnp.sum(jnp.sum(u_all, axis=0), axis=0, keepdims=True) / cnt
            diff = u_all - mean
            var = jnp.sum(jnp.sum(diff * diff, axis=0), axis=0, keepdims=True) / cnt
            scale = gb_ref[0:1, :] * lax.rsqrt(var + 1e-5)
            out_ref[:, :, Cin:Cout] = diff * scale + gb_ref[1:2, :]

    out_pm = pl.pallas_call(
        kernel,
        grid=(n_steps,),
        in_specs=[
            pl.BlockSpec((NB, OHp, OWp, 4 * Cin), lambda s: (s, 0, 0, 0)),
            pl.BlockSpec((NB, M4, Cin), lambda s: (s, 0, 0)),
            pl.BlockSpec((K_dn, inner), lambda s: (0, 0)),       # weights stay resident
            pl.BlockSpec((4, K_up, outer), lambda s: (0, 0, 0)),
            pl.BlockSpec((2, outer), lambda s: (0, 0)),
        ],
        out_specs=pl.BlockSpec((N, M4, Cout), lambda s: (0, 0, 0)),   # resident accumulator
        out_shape=jax.ShapeDtypeStruct((N, M4, Cout), jnp.float32),
        scratch_shapes=[
            pltpu.VMEM((NB, OHp, OWp_a, 4 * Cin), compute_dtype),     # LeakyReLU(x) (aligned)
            pltpu.VMEM((NB, OH + 2, OW2_a, inner), compute_dtype),    # zero-bordered ReLU(d)
            pltpu.VMEM((NB * M, K_dn), compute_dtype),                # merged-K down operand
            pltpu.VMEM((NB * M, K_up), compute_dtype),                # merged-K up operand
        ],
        compiler_params=pltpu.CompilerParams(
            dimension_semantics=("arbitrary",),                       # carried/resident output
            vmem_limit_bytes=vmem_limit,
        ),
    )(xs, x_pm, w_down, w_up, gb)

    # single boundary un-(phase-shuffle) + NCHW reshape (16 KiB here; outside the kernel)
    out = (out_pm.reshape(N, 2, 2, OH, OW, Cout)
                 .transpose(0, 5, 3, 1, 4, 2)
                 .reshape(N, Cout, H, W))
    return out


# ----------------------------- pure-JAX reference -------------------------------------

def reference_forward(x, params):
    wd, wu = params["down_w"], params["up_w"]
    gamma, beta = params["bn_gamma"], params["bn_beta"]
    h = jnp.where(x > 0, x, 0.2 * x)
    d = lax.conv_general_dilated(h, wd, (2, 2), ((1, 1), (1, 1)),
                                 dimension_numbers=("NCHW", "OIHW", "NCHW"),
                                 precision=lax.Precision.HIGHEST)
    d = jnp.maximum(d, 0.0)
    w_eq = jnp.transpose(jnp.flip(wu, axis=(2, 3)), (1, 0, 2, 3))          # OIHW
    u = lax.conv_general_dilated(d, w_eq, (1, 1), ((2, 2), (2, 2)),
                                 lhs_dilation=(2, 2),
                                 dimension_numbers=("NCHW", "OIHW", "NCHW"),
                                 precision=lax.Precision.HIGHEST)
    mean = u.mean(axis=(0, 2, 3), keepdims=True)
    var = u.var(axis=(0, 2, 3), keepdims=True)
    y = gamma.reshape(1, -1, 1, 1) * (u - mean) / jnp.sqrt(var + 1e-5) + beta.reshape(1, -1, 1, 1)
    return jnp.concatenate([x, y], axis=1)


# --------------------------------------- main -----------------------------------------

if __name__ == "__main__":
    N, outer_nc, inner_nc, H, W = 2, 4, 8, 16, 16
    input_nc = outer_nc            # PyTorch: input_nc=None -> input_nc = outer_nc

    key = jax.random.PRNGKey(0)
    k1, k2, k3, k4, k5 = jax.random.split(key, 5)
    x = jax.random.normal(k1, (N, input_nc, H, W), jnp.float32)
    params = {
        "down_w": 0.1 * jax.random.normal(k2, (inner_nc, input_nc, 4, 4), jnp.float32),
        "up_w":   0.1 * jax.random.normal(k3, (inner_nc, outer_nc, 4, 4), jnp.float32),
        "bn_gamma": jnp.ones((outer_nc,), jnp.float32)
                    + 0.1 * jax.random.normal(k4, (outer_nc,), jnp.float32),
        "bn_beta": 0.1 * jax.random.normal(k5, (outer_nc,), jnp.float32),
    }

    ref = reference_forward(x, params)

    # strict correctness check with f32 matmul operands
    fwd_f32 = jax.jit(functools.partial(unet_innermost_forward, compute_dtype=jnp.float32))
    out32 = jax.block_until_ready(fwd_f32(x, params))
    assert out32.shape == (N, 2 * outer_nc, H, W), out32.shape
    assert jnp.allclose(out32, ref, atol=1e-3, rtol=1e-3), float(jnp.max(jnp.abs(out32 - ref)))

    # perf path: bf16 MXU operands with f32 accumulation (looser tolerance; note that d
    # is quantized to bf16 before the transposed conv / BN stats, as documented)
    fwd_bf16 = jax.jit(functools.partial(unet_innermost_forward, compute_dtype=jnp.bfloat16))
    out16 = jax.block_until_ready(fwd_bf16(x, params))
    assert out16.shape == (N, 2 * outer_nc, H, W), out16.shape
    assert jnp.allclose(out16, ref, atol=8e-2, rtol=5e-2), float(jnp.max(jnp.abs(out16 - ref)))

    print("KERNEL_OK")
</pallas_src>

<mosaic_0001>
module attributes {stable_mosaic.version = 11 : i64} {
  func.func @kernel(%arg0: i32, %arg1: memref<2x9x9x16xf32, #tpu.memory_space<vmem>>, %arg2: memref<2x256x4xf32, #tpu.memory_space<vmem>>, %arg3: memref<64x8xf32, #tpu.memory_space<vmem>>, %arg4: memref<4x32x4xf32, #tpu.memory_space<vmem>>, %arg5: memref<2x4xf32, #tpu.memory_space<vmem>>, %arg6: memref<2x256x8xf32, #tpu.memory_space<vmem>>, %arg7: memref<2x9x16x16xf32, #tpu.memory_space<vmem>>, %arg8: memref<2x10x16x8xf32, #tpu.memory_space<vmem>>, %arg9: memref<128x64xf32, #tpu.memory_space<vmem>>, %arg10: memref<128x32xf32, #tpu.memory_space<vmem>>) attributes {dimension_semantics = [#tpu.dimension_semantics<arbitrary>], iteration_bounds = array<i64: 1>, scalar_prefetch = 0 : i64, scratch_operands = 4 : i64, tpu.core_type = #tpu.core_type<tc>, window_params = [{transform_indices = @transform_0, window_bounds = array<i64: 2, 9, 9, 16>}, {transform_indices = @transform_1, window_bounds = array<i64: 2, 256, 4>}, {pipeline_mode = #tpu.pipeline_mode<synchronous>, transform_indices = @transform_2, window_bounds = array<i64: 64, 8>}, {pipeline_mode = #tpu.pipeline_mode<synchronous>, transform_indices = @transform_3, window_bounds = array<i64: 4, 32, 4>}, {pipeline_mode = #tpu.pipeline_mode<synchronous>, transform_indices = @transform_4, window_bounds = array<i64: 2, 4>}, {pipeline_mode = #tpu.pipeline_mode<synchronous>, transform_indices = @transform_5, window_bounds = array<i64: 2, 256, 8>}]} {
    %c0_i32 = arith.constant 0 : i32
    %0 = arith.cmpi eq, %arg0, %c0_i32 : i32
    %1 = arith.extui %0 : i1 to i32
    %c0_i32_0 = arith.constant 0 : i32
    %2 = arith.cmpi ne, %1, %c0_i32_0 : i32
    scf.if %2 {
      %cst_321 = arith.constant 0.000000e+00 : f32
      %276 = vector.broadcast %cst_321 : f32 to vector<2x10x16x8xf32>
      %c0_322 = arith.constant 0 : index
      %c0_323 = arith.constant 0 : index
      %c0_324 = arith.constant 0 : index
      %c0_325 = arith.constant 0 : index
      %277 = vector.load %arg8[%c0_322, %c0_323, %c0_324, %c0_325] : memref<2x10x16x8xf32, #tpu.memory_space<vmem>>, vector<2x10x16x8xf32>
      tpu.vector_store %arg8[%c0_322, %c0_323, %c0_324, %c0_325], %276 {strides = array<i32>} : memref<2x10x16x8xf32, #tpu.memory_space<vmem>>, vector<2x10x16x8xf32>,
    } else {
    }
    %c0 = arith.constant 0 : index
    %c0_1 = arith.constant 0 : index
    %c0_2 = arith.constant 0 : index
    %c0_3 = arith.constant 0 : index
    %3 = vector.load %arg1[%c0, %c0_1, %c0_2, %c0_3] : memref<2x9x9x16xf32, #tpu.memory_space<vmem>>, vector<2x9x9x16xf32>
    %cst = arith.constant 0.000000e+00 : f32
    %4 = vector.broadcast %cst : f32 to vector<2x9x9x16xf32>
    %5 = arith.cmpf ogt, %3, %4 : vector<2x9x9x16xf32>
    %cst_4 = arith.constant 2.000000e-01 : f32
    %6 = vector.broadcast %cst_4 : f32 to vector<2x9x9x16xf32>
    %7 = arith.mulf %6, %3 : vector<2x9x9x16xf32>
    %8 = arith.select %5, %3, %7 : vector<2x9x9x16xi1>, vector<2x9x9x16xf32>
    %c0_5 = arith.constant 0 : index
    %c0_6 = arith.constant 0 : index
    %c0_7 = arith.constant 0 : index
    %c0_8 = arith.constant 0 : index
    %9 = vector.load %arg7[%c0_5, %c0_6, %c0_7, %c0_8] : memref<2x9x16x16xf32, #tpu.memory_space<vmem>>, vector<2x9x9x16xf32>
    tpu.vector_store %arg7[%c0_5, %c0_6, %c0_7, %c0_8], %8 {strides = array<i32>} : memref<2x9x16x16xf32, #tpu.memory_space<vmem>>, vector<2x9x9x16xf32>,
    %c0_9 = arith.constant 0 : index
    %c0_10 = arith.constant 0 : index
    %c0_11 = arith.constant 0 : index
    %c0_12 = arith.constant 0 : index
    %10 = vector.load %arg7[%c0_9, %c0_10, %c0_11, %c0_12] : memref<2x9x16x16xf32, #tpu.memory_space<vmem>>, vector<1x8x8x16xf32>
    %11 = vector.shape_cast %10 : vector<1x8x8x16xf32> to vector<8x8x16xf32>
    %12 = vector.shape_cast %11 : vector<8x8x16xf32> to vector<64x16xf32>
    %c0_13 = arith.constant 0 : index
    %c0_14 = arith.constant 0 : index
    %13 = vector.load %arg9[%c0_13, %c0_14] : memref<128x64xf32, #tpu.memory_space<vmem>>, vector<64x16xf32>
    tpu.vector_store %arg9[%c0_13, %c0_14], %12 {strides = array<i32>} : memref<128x64xf32, #tpu.memory_space<vmem>>, vector<64x16xf32>,
    %c0_15 = arith.constant 0 : index
    %c0_16 = arith.constant 0 : index
    %c1 = arith.constant 1 : index
    %c0_17 = arith.constant 0 : index
    %14 = vector.load %arg7[%c0_15, %c0_16, %c1, %c0_17] : memref<2x9x16x16xf32, #tpu.memory_space<vmem>>, vector<1x8x8x16xf32>
    %15 = vector.shape_cast %14 : vector<1x8x8x16xf32> to vector<8x8x16xf32>
    %16 = vector.shape_cast %15 : vector<8x8x16xf32> to vector<64x16xf32>
    %c0_18 = arith.constant 0 : index
    %c16 = arith.constant 16 : index
    %17 = vector.load %arg9[%c0_18, %c16] : memref<128x64xf32, #tpu.memory_space<vmem>>, vector<64x16xf32>
    tpu.vector_store %arg9[%c0_18, %c16], %16 {strides = array<i32>} : memref<128x64xf32, #tpu.memory_space<vmem>>, vector<64x16xf32>,
    %c0_19 = arith.constant 0 : index
    %c1_20 = arith.constant 1 : index
    %c0_21 = arith.constant 0 : index
    %c0_22 = arith.constant 0 : index
    %18 = vector.load %arg7[%c0_19, %c1_20, %c0_21, %c0_22] : memref<2x9x16x16xf32, #tpu.memory_space<vmem>>, vector<1x8x8x16xf32>
    %19 = vector.shape_cast %18 : vector<1x8x8x16xf32> to vector<8x8x16xf32>
    %20 = vector.shape_cast %19 : vector<8x8x16xf32> to vector<64x16xf32>
    %c0_23 = arith.constant 0 : index
    %c32 = arith.constant 32 : index
    %21 = vector.load %arg9[%c0_23, %c32] : memref<128x64xf32, #tpu.memory_space<vmem>>, vector<64x16xf32>
    tpu.vector_store %arg9[%c0_23, %c32], %20 {strides = array<i32>} : memref<128x64xf32, #tpu.memory_space<vmem>>, vector<64x16xf32>,
    %c0_24 = arith.constant 0 : index
    %c1_25 = arith.constant 1 : index
    %c1_26 = arith.constant 1 : index
    %c0_27 = arith.constant 0 : index
    %22 = vector.load %arg7[%c0_24, %c1_25, %c1_26, %c0_27] : memref<2x9x16x16xf32, #tpu.memory_space<vmem>>, vector<1x8x8x16xf32>
    %23 = vector.shape_cast %22 : vector<1x8x8x16xf32> to vector<8x8x16xf32>
    %24 = vector.shape_cast %23 : vector<8x8x16xf32> to vector<64x16xf32>
    %c0_28 = arith.constant 0 : index
    %c48 = arith.constant 48 : index
    %25 = vector.load %arg9[%c0_28, %c48] : memref<128x64xf32, #tpu.memory_space<vmem>>, vector<64x16xf32>
    tpu.vector_store %arg9[%c0_28, %c48], %24 {strides = array<i32>} : memref<128x64xf32, #tpu.memory_space<vmem>>, vector<64x16xf32>,
    %c1_29 = arith.constant 1 : index
    %c0_30 = arith.constant 0 : index
    %c0_31 = arith.constant 0 : index
    %c0_32 = arith.constant 0 : index
    %26 = vector.load %arg7[%c1_29, %c0_30, %c0_31, %c0_32] : memref<2x9x16x16xf32, #tpu.memory_space<vmem>>, vector<1x8x8x16xf32>
    %27 = vector.shape_cast %26 : vector<1x8x8x16xf32> to vector<8x8x16xf32>
    %28 = vector.shape_cast %27 : vector<8x8x16xf32> to vector<64x16xf32>
    %c64 = arith.constant 64 : index
    %c0_33 = arith.constant 0 : index
    %29 = vector.load %arg9[%c64, %c0_33] : memref<128x64xf32, #tpu.memory_space<vmem>>, vector<64x16xf32>
    tpu.vector_store %arg9[%c64, %c0_33], %28 {strides = array<i32>} : memref<128x64xf32, #tpu.memory_space<vmem>>, vector<64x16xf32>,
    %c1_34 = arith.constant 1 : index
    %c0_35 = arith.constant 0 : index
    %c1_36 = arith.constant 1 : index
    %c0_37 = arith.constant 0 : index
    %30 = vector.load %arg7[%c1_34, %c0_35, %c1_36, %c0_37] : memref<2x9x16x16xf32, #tpu.memory_space<vmem>>, vector<1x8x8x16xf32>
    %31 = vector.shape_cast %30 : vector<1x8x8x16xf32> to vector<8x8x16xf32>
    %32 = vector.shape_cast %31 : vector<8x8x16xf32> to vector<64x16xf32>
    %c64_38 = arith.constant 64 : index
    %c16_39 = arith.constant 16 : index
    %33 = vector.load %arg9[%c64_38, %c16_39] : memref<128x64xf32, #tpu.memory_space<vmem>>, vector<64x16xf32>
    tpu.vector_store %arg9[%c64_38, %c16_39], %32 {strides = array<i32>} : memref<128x64xf32, #tpu.memory_space<vmem>>, vector<64x16xf32>,
    %c1_40 = arith.constant 1 : index
    %c1_41 = arith.constant 1 : index
    %c0_42 = arith.constant 0 : index
    %c0_43 = arith.constant 0 : index
    %34 = vector.load %arg7[%c1_40, %c1_41, %c0_42, %c0_43] : memref<2x9x16x16xf32, #tpu.memory_space<vmem>>, vector<1x8x8x16xf32>
    %35 = vector.shape_cast %34 : vector<1x8x8x16xf32> to vector<8x8x16xf32>
    %36 = vector.shape_cast %35 : vector<8x8x16xf32> to vector<64x16xf32>
    %c64_44 = arith.constant 64 : index
    %c32_45 = arith.constant 32 : index
    %37 = vector.load %arg9[%c64_44, %c32_45] : memref<128x64xf32, #tpu.memory_space<vmem>>, vector<64x16xf32>
    tpu.vector_store %arg9[%c64_44, %c32_45], %36 {strides = array<i32>} : memref<128x64xf32, #tpu.memory_space<vmem>>, vector<64x16xf32>,
    %c1_46 = arith.constant 1 : index
    %c1_47 = arith.constant 1 : index
    %c1_48 = arith.constant 1 : index
    %c0_49 = arith.constant 0 : index
    %38 = vector.load %arg7[%c1_46, %c1_47, %c1_48, %c0_49] : memref<2x9x16x16xf32, #tpu.memory_space<vmem>>, vector<1x8x8x16xf32>
    %39 = vector.shape_cast %38 : vector<1x8x8x16xf32> to vector<8x8x16xf32>
    %40 = vector.shape_cast %39 : vector<8x8x16xf32> to vector<64x16xf32>
    %c64_50 = arith.constant 64 : index
    %c48_51 = arith.constant 48 : index
    %41 = vector.load %arg9[%c64_50, %c48_51] : memref<128x64xf32, #tpu.memory_space<vmem>>, vector<64x16xf32>
    tpu.vector_store %arg9[%c64_50, %c48_51], %40 {strides = array<i32>} : memref<128x64xf32, #tpu.memory_space<vmem>>, vector<64x16xf32>,
    %c0_52 = arith.constant 0 : index
    %c0_53 = arith.constant 0 : index
    %42 = vector.load %arg9[%c0_52, %c0_53] : memref<128x64xf32, #tpu.memory_space<vmem>>, vector<128x64xf32>
    %c0_54 = arith.constant 0 : index
    %c0_55 = arith.constant 0 : index
    %43 = vector.load %arg3[%c0_54, %c0_55] : memref<64x8xf32, #tpu.memory_space<vmem>>, vector<64x8xf32>
    %cst_56 = arith.constant dense<0.000000e+00> : vector<128x8xf32>
    %44 = tpu.matmul %42, %43, %cst_56 {dimension_numbers = #tpu.dot_dimension_numbers<[1], [0], [0], [1], [0, 0, 1, 1], [], []>} : vector<128x64xf32>, vector<64x8xf32>, vector<128x8xf32> -> vector<128x8xf32>
    %cst_57 = arith.constant 0.000000e+00 : f32
    %45 = vector.broadcast %cst_57 : f32 to vector<128x8xf32>
    %46 = arith.maximumf %44, %45 : vector<128x8xf32>
    %47 = vector.extract_strided_slice %46 {offsets = [0, 0], sizes = [64, 8], strides = [1, 1]} : vector<128x8xf32> to vector<64x8xf32>
    %48 = vector.shape_cast %47 : vector<64x8xf32> to vector<8x8x8xf32>
    %c0_58 = arith.constant 0 : index
    %c1_59 = arith.constant 1 : index
    %c1_60 = arith.constant 1 : index
    %c0_61 = arith.constant 0 : index
    %49 = vector.load %arg8[%c0_58, %c1_59, %c1_60, %c0_61] : memref<2x10x16x8xf32, #tpu.memory_space<vmem>>, vector<1x8x8x8xf32>
    %50 = vector.shape_cast %49 : vector<1x8x8x8xf32> to vector<8x8x8xf32>
    %51 = vector.shape_cast %48 : vector<8x8x8xf32> to vector<1x8x8x8xf32>
    tpu.vector_store %arg8[%c0_58, %c1_59, %c1_60, %c0_61], %51 {strides = array<i32>} : memref<2x10x16x8xf32, #tpu.memory_space<vmem>>, vector<1x8x8x8xf32>,
    %52 = vector.extract_strided_slice %46 {offsets = [64, 0], sizes = [64, 8], strides = [1, 1]} : vector<128x8xf32> to vector<64x8xf32>
    %53 = vector.shape_cast %52 : vector<64x8xf32> to vector<8x8x8xf32>
    %c1_62 = arith.constant 1 : index
    %c1_63 = arith.constant 1 : index
    %c1_64 = arith.constant 1 : index
    %c0_65 = arith.constant 0 : index
    %54 = vector.load %arg8[%c1_62, %c1_63, %c1_64, %c0_65] : memref<2x10x16x8xf32, #tpu.memory_space<vmem>>, vector<1x8x8x8xf32>
    %55 = vector.shape_cast %54 : vector<1x8x8x8xf32> to vector<8x8x8xf32>
    %56 = vector.shape_cast %53 : vector<8x8x8xf32> to vector<1x8x8x8xf32>
    tpu.vector_store %arg8[%c1_62, %c1_63, %c1_64, %c0_65], %56 {strides = array<i32>} : memref<2x10x16x8xf32, #tpu.memory_space<vmem>>, vector<1x8x8x8xf32>,
    %c0_66 = arith.constant 0 : index
    %c0_67 = arith.constant 0 : index
    %c0_68 = arith.constant 0 : index
    %c0_69 = arith.constant 0 : index
    %57 = vector.load %arg8[%c0_66, %c0_67, %c0_68, %c0_69] : memref<2x10x16x8xf32, #tpu.memory_space<vmem>>, vector<1x8x8x8xf32>
    %58 = vector.shape_cast %57 : vector<1x8x8x8xf32> to vector<8x8x8xf32>
    %59 = vector.shape_cast %58 : vector<8x8x8xf32> to vector<64x8xf32>
    %c0_70 = arith.constant 0 : index
    %c0_71 = arith.constant 0 : index
    %60 = vector.load %arg10[%c0_70, %c0_71] : memref<128x32xf32, #tpu.memory_space<vmem>>, vector<64x8xf32>
    tpu.vector_store %arg10[%c0_70, %c0_71], %59 {strides = array<i32>} : memref<128x32xf32, #tpu.memory_space<vmem>>, vector<64x8xf32>,
    %c0_72 = arith.constant 0 : index
    %c0_73 = arith.constant 0 : index
    %c1_74 = arith.constant 1 : index
    %c0_75 = arith.constant 0 : index
    %61 = vector.load %arg8[%c0_72, %c0_73, %c1_74, %c0_75] : memref<2x10x16x8xf32, #tpu.memory_space<vmem>>, vector<1x8x8x8xf32>
    %62 = vector.shape_cast %61 : vector<1x8x8x8xf32> to vector<8x8x8xf32>
    %63 = vector.shape_cast %62 : vector<8x8x8xf32> to vector<64x8xf32>
    %c0_76 = arith.constant 0 : index
    %c8 = arith.constant 8 : index
    %64 = vector.load %arg10[%c0_76, %c8] : memref<128x32xf32, #tpu.memory_space<vmem>>, vector<64x8xf32>
    tpu.vector_store %arg10[%c0_76, %c8], %63 {strides = array<i32>} : memref<128x32xf32, #tpu.memory_space<vmem>>, vector<64x8xf32>,
    %c0_77 = arith.constant 0 : index
    %c1_78 = arith.constant 1 : index
    %c0_79 = arith.constant 0 : index
    %c0_80 = arith.constant 0 : index
    %65 = vector.load %arg8[%c0_77, %c1_78, %c0_79, %c0_80] : memref<2x10x16x8xf32, #tpu.memory_space<vmem>>, vector<1x8x8x8xf32>
    %66 = vector.shape_cast %65 : vector<1x8x8x8xf32> to vector<8x8x8xf32>
    %67 = vector.shape_cast %66 : vector<8x8x8xf32> to vector<64x8xf32>
    %c0_81 = arith.constant 0 : index
    %c16_82 = arith.constant 16 : index
    %68 = vector.load %arg10[%c0_81, %c16_82] : memref<128x32xf32, #tpu.memory_space<vmem>>, vector<64x8xf32>
    tpu.vector_store %arg10[%c0_81, %c16_82], %67 {strides = array<i32>} : memref<128x32xf32, #tpu.memory_space<vmem>>, vector<64x8xf32>,
    %c0_83 = arith.constant 0 : index
    %c1_84 = arith.constant 1 : index
    %c1_85 = arith.constant 1 : index
    %c0_86 = arith.constant 0 : index
    %69 = vector.load %arg8[%c0_83, %c1_84, %c1_85, %c0_86] : memref<2x10x16x8xf32, #tpu.memory_space<vmem>>, vector<1x8x8x8xf32>
    %70 = vector.shape_cast %69 : vector<1x8x8x8xf32> to vector<8x8x8xf32>
    %71 = vector.shape_cast %70 : vector<8x8x8xf32> to vector<64x8xf32>
    %c0_87 = arith.constant 0 : index
    %c24 = arith.constant 24 : index
    %72 = vector.load %arg10[%c0_87, %c24] : memref<128x32xf32, #tpu.memory_space<vmem>>, vector<64x8xf32>
    tpu.vector_store %arg10[%c0_87, %c24], %71 {strides = array<i32>} : memref<128x32xf32, #tpu.memory_space<vmem>>, vector<64x8xf32>,
    %c1_88 = arith.constant 1 : index
    %c0_89 = arith.constant 0 : index
    %c0_90 = arith.constant 0 : index
    %c0_91 = arith.constant 0 : index
    %73 = vector.load %arg8[%c1_88, %c0_89, %c0_90, %c0_91] : memref<2x10x16x8xf32, #tpu.memory_space<vmem>>, vector<1x8x8x8xf32>
    %74 = vector.shape_cast %73 : vector<1x8x8x8xf32> to vector<8x8x8xf32>
    %75 = vector.shape_cast %74 : vector<8x8x8xf32> to vector<64x8xf32>
    %c64_92 = arith.constant 64 : index
    %c0_93 = arith.constant 0 : index
    %76 = vector.load %arg10[%c64_92, %c0_93] : memref<128x32xf32, #tpu.memory_space<vmem>>, vector<64x8xf32>
    tpu.vector_store %arg10[%c64_92, %c0_93], %75 {strides = array<i32>} : memref<128x32xf32, #tpu.memory_space<vmem>>, vector<64x8xf32>,
    %c1_94 = arith.constant 1 : index
    %c0_95 = arith.constant 0 : index
    %c1_96 = arith.constant 1 : index
    %c0_97 = arith.constant 0 : index
    %77 = vector.load %arg8[%c1_94, %c0_95, %c1_96, %c0_97] : memref<2x10x16x8xf32, #tpu.memory_space<vmem>>, vector<1x8x8x8xf32>
    %78 = vector.shape_cast %77 : vector<1x8x8x8xf32> to vector<8x8x8xf32>
    %79 = vector.shape_cast %78 : vector<8x8x8xf32> to vector<64x8xf32>
    %c64_98 = arith.constant 64 : index
    %c8_99 = arith.constant 8 : index
    %80 = vector.load %arg10[%c64_98, %c8_99] : memref<128x32xf32, #tpu.memory_space<vmem>>, vector<64x8xf32>
    tpu.vector_store %arg10[%c64_98, %c8_99], %79 {strides = array<i32>} : memref<128x32xf32, #tpu.memory_space<vmem>>, vector<64x8xf32>,
    %c1_100 = arith.constant 1 : index
    %c1_101 = arith.constant 1 : index
    %c0_102 = arith.constant 0 : index
    %c0_103 = arith.constant 0 : index
    %81 = vector.load %arg8[%c1_100, %c1_101, %c0_102, %c0_103] : memref<2x10x16x8xf32, #tpu.memory_space<vmem>>, vector<1x8x8x8xf32>
    %82 = vector.shape_cast %81 : vector<1x8x8x8xf32> to vector<8x8x8xf32>
    %83 = vector.shape_cast %82 : vector<8x8x8xf32> to vector<64x8xf32>
    %c64_104 = arith.constant 64 : index
    %c16_105 = arith.constant 16 : index
    %84 = vector.load %arg10[%c64_104, %c16_105] : memref<128x32xf32, #tpu.memory_space<vmem>>, vector<64x8xf32>
    tpu.vector_store %arg10[%c64_104, %c16_105], %83 {strides = array<i32>} : memref<128x32xf32, #tpu.memory_space<vmem>>, vector<64x8xf32>,
    %c1_106 = arith.constant 1 : index
    %c1_107 = arith.constant 1 : index
    %c1_108 = arith.constant 1 : index
    %c0_109 = arith.constant 0 : index
    %85 = vector.load %arg8[%c1_106, %c1_107, %c1_108, %c0_109] : memref<2x10x16x8xf32, #tpu.memory_space<vmem>>, vector<1x8x8x8xf32>
    %86 = vector.shape_cast %85 : vector<1x8x8x8xf32> to vector<8x8x8xf32>
    %87 = vector.shape_cast %86 : vector<8x8x8xf32> to vector<64x8xf32>
    %c64_110 = arith.constant 64 : index
    %c24_111 = arith.constant 24 : index
    %88 = vector.load %arg10[%c64_110, %c24_111] : memref<128x32xf32, #tpu.memory_space<vmem>>, vector<64x8xf32>
    tpu.vector_store %arg10[%c64_110, %c24_111], %87 {strides = array<i32>} : memref<128x32xf32, #tpu.memory_space<vmem>>, vector<64x8xf32>,
    %c0_112 = arith.constant 0 : index
    %c0_113 = arith.constant 0 : index
    %89 = vector.load %arg10[%c0_112, %c0_113] : memref<128x32xf32, #tpu.memory_space<vmem>>, vector<128x32xf32>
    %c0_114 = arith.constant 0 : index
    %c0_115 = arith.constant 0 : index
    %c0_116 = arith.constant 0 : index
    %90 = vector.load %arg4[%c0_114, %c0_115, %c0_116] : memref<4x32x4xf32, #tpu.memory_space<vmem>>, vector<1x32x4xf32>
    %91 = vector.shape_cast %90 : vector<1x32x4xf32> to vector<32x4xf32>
    %cst_117 = arith.constant dense<0.000000e+00> : vector<128x4xf32>
    %92 = tpu.matmul %89, %91, %cst_117 {dimension_numbers = #tpu.dot_dimension_numbers<[1], [0], [0], [1], [0, 0, 1, 1], [], []>} : vector<128x32xf32>, vector<32x4xf32>, vector<128x4xf32> -> vector<128x4xf32>
    %c2_i32 = arith.constant 2 : i32
    %93 = arith.muli %arg0, %c2_i32 : i32
    %c0_i32_118 = arith.constant 0 : i32
    %94 = arith.addi %93, %c0_i32_118 : i32
    %95 = vector.extract_strided_slice %92 {offsets = [0, 0], sizes = [64, 4], strides = [1, 1]} : vector<128x4xf32> to vector<64x4xf32>
    %96 = arith.index_cast %94 : i32 to index
    %c0_119 = arith.constant 0 : index
    %c4 = arith.constant 4 : index
    %97 = vector.load %arg6[%96, %c0_119, %c4] : memref<2x256x8xf32, #tpu.memory_space<vmem>>, vector<1x64x4xf32>
    %98 = vector.shape_cast %97 : vector<1x64x4xf32> to vector<64x4xf32>
    %99 = vector.shape_cast %95 : vector<64x4xf32> to vector<1x64x4xf32>
    tpu.vector_store %arg6[%96, %c0_119, %c4], %99 {strides = array<i32>} : memref<2x256x8xf32, #tpu.memory_space<vmem>>, vector<1x64x4xf32>,
    %c2_i32_120 = arith.constant 2 : i32
    %100 = arith.muli %arg0, %c2_i32_120 : i32
    %c1_i32 = arith.constant 1 : i32
    %101 = arith.addi %100, %c1_i32 : i32
    %102 = vector.extract_strided_slice %92 {offsets = [64, 0], sizes = [64, 4], strides = [1, 1]} : vector<128x4xf32> to vector<64x4xf32>
    %103 = arith.index_cast %101 : i32 to index
    %c0_121 = arith.constant 0 : index
    %c4_122 = arith.constant 4 : index
    %104 = vector.load %arg6[%103, %c0_121, %c4_122] : memref<2x256x8xf32, #tpu.memory_space<vmem>>, vector<1x64x4xf32>
    %105 = vector.shape_cast %104 : vector<1x64x4xf32> to vector<64x4xf32>
    %106 = vector.shape_cast %102 : vector<64x4xf32> to vector<1x64x4xf32>
    tpu.vector_store %arg6[%103, %c0_121, %c4_122], %106 {strides = array<i32>} : memref<2x256x8xf32, #tpu.memory_space<vmem>>, vector<1x64x4xf32>,
    %c0_123 = arith.constant 0 : index
    %c0_124 = arith.constant 0 : index
    %c1_125 = arith.constant 1 : index
    %c0_126 = arith.constant 0 : index
    %107 = vector.load %arg8[%c0_123, %c0_124, %c1_125, %c0_126] : memref<2x10x16x8xf32, #tpu.memory_space<vmem>>, vector<1x8x8x8xf32>
    %108 = vector.shape_cast %107 : vector<1x8x8x8xf32> to vector<8x8x8xf32>
    %109 = vector.shape_cast %108 : vector<8x8x8xf32> to vector<64x8xf32>
    %c0_127 = arith.constant 0 : index
    %c0_128 = arith.constant 0 : index
    %110 = vector.load %arg10[%c0_127, %c0_128] : memref<128x32xf32, #tpu.memory_space<vmem>>, vector<64x8xf32>
    tpu.vector_store %arg10[%c0_127, %c0_128], %109 {strides = array<i32>} : memref<128x32xf32, #tpu.memory_space<vmem>>, vector<64x8xf32>,
    %c0_129 = arith.constant 0 : index
    %c0_130 = arith.constant 0 : index
    %c2 = arith.constant 2 : index
    %c0_131 = arith.constant 0 : index
    %111 = vector.load %arg8[%c0_129, %c0_130, %c2, %c0_131] : memref<2x10x16x8xf32, #tpu.memory_space<vmem>>, vector<1x8x8x8xf32>
    %112 = vector.shape_cast %111 : vector<1x8x8x8xf32> to vector<8x8x8xf32>
    %113 = vector.shape_cast %112 : vector<8x8x8xf32> to vector<64x8xf32>
    %c0_132 = arith.constant 0 : index
    %c8_133 = arith.constant 8 : index
    %114 = vector.load %arg10[%c0_132, %c8_133] : memref<128x32xf32, #tpu.memory_space<vmem>>, vector<64x8xf32>
    tpu.vector_store %arg10[%c0_132, %c8_133], %113 {strides = array<i32>} : memref<128x32xf32, #tpu.memory_space<vmem>>, vector<64x8xf32>,
    %c0_134 = arith.constant 0 : index
    %c1_135 = arith.constant 1 : index
    %c1_136 = arith.constant 1 : index
    %c0_137 = arith.constant 0 : index
    %115 = vector.load %arg8[%c0_134, %c1_135, %c1_136, %c0_137] : memref<2x10x16x8xf32, #tpu.memory_space<vmem>>, vector<1x8x8x8xf32>
    %116 = vector.shape_cast %115 : vector<1x8x8x8xf32> to vector<8x8x8xf32>
    %117 = vector.shape_cast %116 : vector<8x8x8xf32> to vector<64x8xf32>
    %c0_138 = arith.constant 0 : index
    %c16_139 = arith.constant 16 : index
    %118 = vector.load %arg10[%c0_138, %c16_139] : memref<128x32xf32, #tpu.memory_space<vmem>>, vector<64x8xf32>
    tpu.vector_store %arg10[%c0_138, %c16_139], %117 {strides = array<i32>} : memref<128x32xf32, #tpu.memory_space<vmem>>, vector<64x8xf32>,
    %c0_140 = arith.constant 0 : index
    %c1_141 = arith.constant 1 : index
    %c2_142 = arith.constant 2 : index
    %c0_143 = arith.constant 0 : index
    %119 = vector.load %arg8[%c0_140, %c1_141, %c2_142, %c0_143] : memref<2x10x16x8xf32, #tpu.memory_space<vmem>>, vector<1x8x8x8xf32>
    %120 = vector.shape_cast %119 : vector<1x8x8x8xf32> to vector<8x8x8xf32>
    %121 = vector.shape_cast %120 : vector<8x8x8xf32> to vector<64x8xf32>
    %c0_144 = arith.constant 0 : index
    %c24_145 = arith.constant 24 : index
    %122 = vector.load %arg10[%c0_144, %c24_145] : memref<128x32xf32, #tpu.memory_space<vmem>>, vector<64x8xf32>
    tpu.vector_store %arg10[%c0_144, %c24_145], %121 {strides = array<i32>} : memref<128x32xf32, #tpu.memory_space<vmem>>, vector<64x8xf32>,
    %c1_146 = arith.constant 1 : index
    %c0_147 = arith.constant 0 : index
    %c1_148 = arith.constant 1 : index
    %c0_149 = arith.constant 0 : index
    %123 = vector.load %arg8[%c1_146, %c0_147, %c1_148, %c0_149] : memref<2x10x16x8xf32, #tpu.memory_space<vmem>>, vector<1x8x8x8xf32>
    %124 = vector.shape_cast %123 : vector<1x8x8x8xf32> to vector<8x8x8xf32>
    %125 = vector.shape_cast %124 : vector<8x8x8xf32> to vector<64x8xf32>
    %c64_150 = arith.constant 64 : index
    %c0_151 = arith.constant 0 : index
    %126 = vector.load %arg10[%c64_150, %c0_151] : memref<128x32xf32, #tpu.memory_space<vmem>>, vector<64x8xf32>
    tpu.vector_store %arg10[%c64_150, %c0_151], %125 {strides = array<i32>} : memref<128x32xf32, #tpu.memory_space<vmem>>, vector<64x8xf32>,
    %c1_152 = arith.constant 1 : index
    %c0_153 = arith.constant 0 : index
    %c2_154 = arith.constant 2 : index
    %c0_155 = arith.constant 0 : index
    %127 = vector.load %arg8[%c1_152, %c0_153, %c2_154, %c0_155] : memref<2x10x16x8xf32, #tpu.memory_space<vmem>>, vector<1x8x8x8xf32>
    %128 = vector.shape_cast %127 : vector<1x8x8x8xf32> to vector<8x8x8xf32>
    %129 = vector.shape_cast %128 : vector<8x8x8xf32> to vector<64x8xf32>
    %c64_156 = arith.constant 64 : index
    %c8_157 = arith.constant 8 : index
    %130 = vector.load %arg10[%c64_156, %c8_157] : memref<128x32xf32, #tpu.memory_space<vmem>>, vector<64x8xf32>
    tpu.vector_store %arg10[%c64_156, %c8_157], %129 {strides = array<i32>} : memref<128x32xf32, #tpu.memory_space<vmem>>, vector<64x8xf32>,
    %c1_158 = arith.constant 1 : index
    %c1_159 = arith.constant 1 : index
    %c1_160 = arith.constant 1 : index
    %c0_161 = arith.constant 0 : index
    %131 = vector.load %arg8[%c1_158, %c1_159, %c1_160, %c0_161] : memref<2x10x16x8xf32, #tpu.memory_space<vmem>>, vector<1x8x8x8xf32>
    %132 = vector.shape_cast %131 : vector<1x8x8x8xf32> to vector<8x8x8xf32>
    %133 = vector.shape_cast %132 : vector<8x8x8xf32> to vector<64x8xf32>
    %c64_162 = arith.constant 64 : index
    %c16_163 = arith.constant 16 : index
    %134 = vector.load %arg10[%c64_162, %c16_163] : memref<128x32xf32, #tpu.memory_space<vmem>>, vector<64x8xf32>
    tpu.vector_store %arg10[%c64_162, %c16_163], %133 {strides = array<i32>} : memref<128x32xf32, #tpu.memory_space<vmem>>, vector<64x8xf32>,
    %c1_164 = arith.constant 1 : index
    %c1_165 = arith.constant 1 : index
    %c2_166 = arith.constant 2 : index
    %c0_167 = arith.constant 0 : index
    %135 = vector.load %arg8[%c1_164, %c1_165, %c2_166, %c0_167] : memref<2x10x16x8xf32, #tpu.memory_space<vmem>>, vector<1x8x8x8xf32>
    %136 = vector.shape_cast %135 : vector<1x8x8x8xf32> to vector<8x8x8xf32>
    %137 = vector.shape_cast %136 : vector<8x8x8xf32> to vector<64x8xf32>
    %c64_168 = arith.constant 64 : index
    %c24_169 = arith.constant 24 : index
    %138 = vector.load %arg10[%c64_168, %c24_169] : memref<128x32xf32, #tpu.memory_space<vmem>>, vector<64x8xf32>
    tpu.vector_store %arg10[%c64_168, %c24_169], %137 {strides = array<i32>} : memref<128x32xf32, #tpu.memory_space<vmem>>, vector<64x8xf32>,
    %c0_170 = arith.constant 0 : index
    %c0_171 = arith.constant 0 : index
    %139 = vector.load %arg10[%c0_170, %c0_171] : memref<128x32xf32, #tpu.memory_space<vmem>>, vector<128x32xf32>
    %c1_172 = arith.constant 1 : index
    %c0_173 = arith.constant 0 : index
    %c0_174 = arith.constant 0 : index
    %140 = vector.load %arg4[%c1_172, %c0_173, %c0_174] : memref<4x32x4xf32, #tpu.memory_space<vmem>>, vector<1x32x4xf32>
    %141 = vector.shape_cast %140 : vector<1x32x4xf32> to vector<32x4xf32>
    %cst_175 = arith.constant dense<0.000000e+00> : vector<128x4xf32>
    %142 = tpu.matmul %139, %141, %cst_175 {dimension_numbers = #tpu.dot_dimension_numbers<[1], [0], [0], [1], [0, 0, 1, 1], [], []>} : vector<128x32xf32>, vector<32x4xf32>, vector<128x4xf32> -> vector<128x4xf32>
    %c2_i32_176 = arith.constant 2 : i32
    %143 = arith.muli %arg0, %c2_i32_176 : i32
    %c0_i32_177 = arith.constant 0 : i32
    %144 = arith.addi %143, %c0_i32_177 : i32
    %145 = vector.extract_strided_slice %142 {offsets = [0, 0], sizes = [64, 4], strides = [1, 1]} : vector<128x4xf32> to vector<64x4xf32>
    %146 = arith.index_cast %144 : i32 to index
    %c64_178 = arith.constant 64 : index
    %c4_179 = arith.constant 4 : index
    %147 = vector.load %arg6[%146, %c64_178, %c4_179] : memref<2x256x8xf32, #tpu.memory_space<vmem>>, vector<1x64x4xf32>
    %148 = vector.shape_cast %147 : vector<1x64x4xf32> to vector<64x4xf32>
    %149 = vector.shape_cast %145 : vector<64x4xf32> to vector<1x64x4xf32>
    tpu.vector_store %arg6[%146, %c64_178, %c4_179], %149 {strides = array<i32>} : memref<2x256x8xf32, #tpu.memory_space<vmem>>, vector<1x64x4xf32>,
    %c2_i32_180 = arith.constant 2 : i32
    %150 = arith.muli %arg0, %c2_i32_180 : i32
    %c1_i32_181 = arith.constant 1 : i32
    %151 = arith.addi %150, %c1_i32_181 : i32
    %152 = vector.extract_strided_slice %142 {offsets = [64, 0], sizes = [64, 4], strides = [1, 1]} : vector<128x4xf32> to vector<64x4xf32>
    %153 = arith.index_cast %151 : i32 to index
    %c64_182 = arith.constant 64 : index
    %c4_183 = arith.constant 4 : index
    %154 = vector.load %arg6[%153, %c64_182, %c4_183] : memref<2x256x8xf32, #tpu.memory_space<vmem>>, vector<1x64x4xf32>
    %155 = vector.shape_cast %154 : vector<1x64x4xf32> to vector<64x4xf32>
    %156 = vector.shape_cast %152 : vector<64x4xf32> to vector<1x64x4xf32>
    tpu.vector_store %arg6[%153, %c64_182, %c4_183], %156 {strides = array<i32>} : memref<2x256x8xf32, #tpu.memory_space<vmem>>, vector<1x64x4xf32>,
    %c0_184 = arith.constant 0 : index
    %c1_185 = arith.constant 1 : index
    %c0_186 = arith.constant 0 : index
    %c0_187 = arith.constant 0 : index
    %157 = vector.load %arg8[%c0_184, %c1_185, %c0_186, %c0_187] : memref<2x10x16x8xf32, #tpu.memory_space<vmem>>, vector<1x8x8x8xf32>
    %158 = vector.shape_cast %157 : vector<1x8x8x8xf32> to vector<8x8x8xf32>
    %159 = vector.shape_cast %158 : vector<8x8x8xf32> to vector<64x8xf32>
    %c0_188 = arith.constant 0 : index
    %c0_189 = arith.constant 0 : index
    %160 = vector.load %arg10[%c0_188, %c0_189] : memref<128x32xf32, #tpu.memory_space<vmem>>, vector<64x8xf32>
    tpu.vector_store %arg10[%c0_188, %c0_189], %159 {strides = array<i32>} : memref<128x32xf32, #tpu.memory_space<vmem>>, vector<64x8xf32>,
    %c0_190 = arith.constant 0 : index
    %c1_191 = arith.constant 1 : index
    %c1_192 = arith.constant 1 : index
    %c0_193 = arith.constant 0 : index
    %161 = vector.load %arg8[%c0_190, %c1_191, %c1_192, %c0_193] : memref<2x10x16x8xf32, #tpu.memory_space<vmem>>, vector<1x8x8x8xf32>
    %162 = vector.shape_cast %161 : vector<1x8x8x8xf32> to vector<8x8x8xf32>
    %163 = vector.shape_cast %162 : vector<8x8x8xf32> to vector<64x8xf32>
    %c0_194 = arith.constant 0 : index
    %c8_195 = arith.constant 8 : index
    %164 = vector.load %arg10[%c0_194, %c8_195] : memref<128x32xf32, #tpu.memory_space<vmem>>, vector<64x8xf32>
    tpu.vector_store %arg10[%c0_194, %c8_195], %163 {strides = array<i32>} : memref<128x32xf32, #tpu.memory_space<vmem>>, vector<64x8xf32>,
    %c0_196 = arith.constant 0 : index
    %c2_197 = arith.constant 2 : index
    %c0_198 = arith.constant 0 : index
    %c0_199 = arith.constant 0 : index
    %165 = vector.load %arg8[%c0_196, %c2_197, %c0_198, %c0_199] : memref<2x10x16x8xf32, #tpu.memory_space<vmem>>, vector<1x8x8x8xf32>
    %166 = vector.shape_cast %165 : vector<1x8x8x8xf32> to vector<8x8x8xf32>
    %167 = vector.shape_cast %166 : vector<8x8x8xf32> to vector<64x8xf32>
    %c0_200 = arith.constant 0 : index
    %c16_201 = arith.constant 16 : index
    %168 = vector.load %arg10[%c0_200, %c16_201] : memref<128x32xf32, #tpu.memory_space<vmem>>, vector<64x8xf32>
    tpu.vector_store %arg10[%c0_200, %c16_201], %167 {strides = array<i32>} : memref<128x32xf32, #tpu.memory_space<vmem>>, vector<64x8xf32>,
    %c0_202 = arith.constant 0 : index
    %c2_203 = arith.constant 2 : index
    %c1_204 = arith.constant 1 : index
    %c0_205 = arith.constant 0 : index
    %169 = vector.load %arg8[%c0_202, %c2_203, %c1_204, %c0_205] : memref<2x10x16x8xf32, #tpu.memory_space<vmem>>, vector<1x8x8x8xf32>
    %170 = vector.shape_cast %169 : vector<1x8x8x8xf32> to vector<8x8x8xf32>
    %171 = vector.shape_cast %170 : vector<8x8x8xf32> to vector<64x8xf32>
    %c0_206 = arith.constant 0 : index
    %c24_207 = arith.constant 24 : index
    %172 = vector.load %arg10[%c0_206, %c24_207] : memref<128x32xf32, #tpu.memory_space<vmem>>, vector<64x8xf32>
    tpu.vector_store %arg10[%c0_206, %c24_207], %171 {strides = array<i32>} : memref<128x32xf32, #tpu.memory_space<vmem>>, vector<64x8xf32>,
    %c1_208 = arith.constant 1 : index
    %c1_209 = arith.constant 1 : index
    %c0_210 = arith.constant 0 : index
    %c0_211 = arith.constant 0 : index
    %173 = vector.load %arg8[%c1_208, %c1_209, %c0_210, %c0_211] : memref<2x10x16x8xf32, #tpu.memory_space<vmem>>, vector<1x8x8x8xf32>
    %174 = vector.shape_cast %173 : vector<1x8x8x8xf32> to vector<8x8x8xf32>
    %175 = vector.shape_cast %174 : vector<8x8x8xf32> to vector<64x8xf32>
    %c64_212 = arith.constant 64 : index
    %c0_213 = arith.constant 0 : index
    %176 = vector.load %arg10[%c64_212, %c0_213] : memref<128x32xf32, #tpu.memory_space<vmem>>, vector<64x8xf32>
    tpu.vector_store %arg10[%c64_212, %c0_213], %175 {strides = array<i32>} : memref<128x32xf32, #tpu.memory_space<vmem>>, vector<64x8xf32>,
    %c1_214 = arith.constant 1 : index
    %c1_215 = arith.constant 1 : index
    %c1_216 = arith.constant 1 : index
    %c0_217 = arith.constant 0 : index
    %177 = vector.load %arg8[%c1_214, %c1_215, %c1_216, %c0_217] : memref<2x10x16x8xf32, #tpu.memory_space<vmem>>, vector<1x8x8x8xf32>
    %178 = vector.shape_cast %177 : vector<1x8x8x8xf32> to vector<8x8x8xf32>
    %179 = vector.shape_cast %178 : vector<8x8x8xf32> to vector<64x8xf32>
    %c64_218 = arith.constant 64 : index
    %c8_219 = arith.constant 8 : index
    %180 = vector.load %arg10[%c64_218, %c8_219] : memref<128x32xf32, #tpu.memory_space<vmem>>, vector<64x8xf32>
    tpu.vector_store %arg10[%c64_218, %c8_219], %179 {strides = array<i32>} : memref<128x32xf32, #tpu.memory_space<vmem>>, vector<64x8xf32>,
    %c1_220 = arith.constant 1 : index
    %c2_221 = arith.constant 2 : index
    %c0_222 = arith.constant 0 : index
    %c0_223 = arith.constant 0 : index
    %181 = vector.load %arg8[%c1_220, %c2_221, %c0_222, %c0_223] : memref<2x10x16x8xf32, #tpu.memory_space<vmem>>, vector<1x8x8x8xf32>
    %182 = vector.shape_cast %181 : vector<1x8x8x8xf32> to vector<8x8x8xf32>
    %183 = vector.shape_cast %182 : vector<8x8x8xf32> to vector<64x8xf32>
    %c64_224 = arith.constant 64 : index
    %c16_225 = arith.constant 16 : index
    %184 = vector.load %arg10[%c64_224, %c16_225] : memref<128x32xf32, #tpu.memory_space<vmem>>, vector<64x8xf32>
    tpu.vector_store %arg10[%c64_224, %c16_225], %183 {strides = array<i32>} : memref<128x32xf32, #tpu.memory_space<vmem>>, vector<64x8xf32>,
    %c1_226 = arith.constant 1 : index
    %c2_227 = arith.constant 2 : index
    %c1_228 = arith.constant 1 : index
    %c0_229 = arith.constant 0 : index
    %185 = vector.load %arg8[%c1_226, %c2_227, %c1_228, %c0_229] : memref<2x10x16x8xf32, #tpu.memory_space<vmem>>, vector<1x8x8x8xf32>
    %186 = vector.shape_cast %185 : vector<1x8x8x8xf32> to vector<8x8x8xf32>
    %187 = vector.shape_cast %186 : vector<8x8x8xf32> to vector<64x8xf32>
    %c64_230 = arith.constant 64 : index
    %c24_231 = arith.constant 24 : index
    %188 = vector.load %arg10[%c64_230, %c24_231] : memref<128x32xf32, #tpu.memory_space<vmem>>, vector<64x8xf32>
    tpu.vector_store %arg10[%c64_230, %c24_231], %187 {strides = array<i32>} : memref<128x32xf32, #tpu.memory_space<vmem>>, vector<64x8xf32>,
    %c0_232 = arith.constant 0 : index
    %c0_233 = arith.constant 0 : index
    %189 = vector.load %arg10[%c0_232, %c0_233] : memref<128x32xf32, #tpu.memory_space<vmem>>, vector<128x32xf32>
    %c2_234 = arith.constant 2 : index
    %c0_235 = arith.constant 0 : index
    %c0_236 = arith.constant 0 : index
    %190 = vector.load %arg4[%c2_234, %c0_235, %c0_236] : memref<4x32x4xf32, #tpu.memory_space<vmem>>, vector<1x32x4xf32>
    %191 = vector.shape_cast %190 : vector<1x32x4xf32> to vector<32x4xf32>
    %cst_237 = arith.constant dense<0.000000e+00> : vector<128x4xf32>
    %192 = tpu.matmul %189, %191, %cst_237 {dimension_numbers = #tpu.dot_dimension_numbers<[1], [0], [0], [1], [0, 0, 1, 1], [], []>} : vector<128x32xf32>, vector<32x4xf32>, vector<128x4xf32> -> vector<128x4xf32>
    %c2_i32_238 = arith.constant 2 : i32
    %193 = arith.muli %arg0, %c2_i32_238 : i32
    %c0_i32_239 = arith.constant 0 : i32
    %194 = arith.addi %193, %c0_i32_239 : i32
    %195 = vector.extract_strided_slice %192 {offsets = [0, 0], sizes = [64, 4], strides = [1, 1]} : vector<128x4xf32> to vector<64x4xf32>
    %196 = arith.index_cast %194 : i32 to index
    %c128 = arith.constant 128 : index
    %c4_240 = arith.constant 4 : index
    %197 = vector.load %arg6[%196, %c128, %c4_240] : memref<2x256x8xf32, #tpu.memory_space<vmem>>, vector<1x64x4xf32>
    %198 = vector.shape_cast %197 : vector<1x64x4xf32> to vector<64x4xf32>
    %199 = vector.shape_cast %195 : vector<64x4xf32> to vector<1x64x4xf32>
    tpu.vector_store %arg6[%196, %c128, %c4_240], %199 {strides = array<i32>} : memref<2x256x8xf32, #tpu.memory_space<vmem>>, vector<1x64x4xf32>,
    %c2_i32_241 = arith.constant 2 : i32
    %200 = arith.muli %arg0, %c2_i32_241 : i32
    %c1_i32_242 = arith.constant 1 : i32
    %201 = arith.addi %200, %c1_i32_242 : i32
    %202 = vector.extract_strided_slice %192 {offsets = [64, 0], sizes = [64, 4], strides = [1, 1]} : vector<128x4xf32> to vector<64x4xf32>
    %203 = arith.index_cast %201 : i32 to index
    %c128_243 = arith.constant 128 : index
    %c4_244 = arith.constant 4 : index
    %204 = vector.load %arg6[%203, %c128_243, %c4_244] : memref<2x256x8xf32, #tpu.memory_space<vmem>>, vector<1x64x4xf32>
    %205 = vector.shape_cast %204 : vector<1x64x4xf32> to vector<64x4xf32>
    %206 = vector.shape_cast %202 : vector<64x4xf32> to vector<1x64x4xf32>
    tpu.vector_store %arg6[%203, %c128_243, %c4_244], %206 {strides = array<i32>} : memref<2x256x8xf32, #tpu.memory_space<vmem>>, vector<1x64x4xf32>,
    %c0_245 = arith.constant 0 : index
    %c1_246 = arith.constant 1 : index
    %c1_247 = arith.constant 1 : index
    %c0_248 = arith.constant 0 : index
    %207 = vector.load %arg8[%c0_245, %c1_246, %c1_247, %c0_248] : memref<2x10x16x8xf32, #tpu.memory_space<vmem>>, vector<1x8x8x8xf32>
    %208 = vector.shape_cast %207 : vector<1x8x8x8xf32> to vector<8x8x8xf32>
    %209 = vector.shape_cast %208 : vector<8x8x8xf32> to vector<64x8xf32>
    %c0_249 = arith.constant 0 : index
    %c0_250 = arith.constant 0 : index
    %210 = vector.load %arg10[%c0_249, %c0_250] : memref<128x32xf32, #tpu.memory_space<vmem>>, vector<64x8xf32>
    tpu.vector_store %arg10[%c0_249, %c0_250], %209 {strides = array<i32>} : memref<128x32xf32, #tpu.memory_space<vmem>>, vector<64x8xf32>,
    %c0_251 = arith.constant 0 : index
    %c1_252 = arith.constant 1 : index
    %c2_253 = arith.constant 2 : index
    %c0_254 = arith.constant 0 : index
    %211 = vector.load %arg8[%c0_251, %c1_252, %c2_253, %c0_254] : memref<2x10x16x8xf32, #tpu.memory_space<vmem>>, vector<1x8x8x8xf32>
    %212 = vector.shape_cast %211 : vector<1x8x8x8xf32> to vector<8x8x8xf32>
    %213 = vector.shape_cast %212 : vector<8x8x8xf32> to vector<64x8xf32>
    %c0_255 = arith.constant 0 : index
    %c8_256 = arith.constant 8 : index
    %214 = vector.load %arg10[%c0_255, %c8_256] : memref<128x32xf32, #tpu.memory_space<vmem>>, vector<64x8xf32>
    tpu.vector_store %arg10[%c0_255, %c8_256], %213 {strides = array<i32>} : memref<128x32xf32, #tpu.memory_space<vmem>>, vector<64x8xf32>,
    %c0_257 = arith.constant 0 : index
    %c2_258 = arith.constant 2 : index
    %c1_259 = arith.constant 1 : index
    %c0_260 = arith.constant 0 : index
    %215 = vector.load %arg8[%c0_257, %c2_258, %c1_259, %c0_260] : memref<2x10x16x8xf32, #tpu.memory_space<vmem>>, vector<1x8x8x8xf32>
    %216 = vector.shape_cast %215 : vector<1x8x8x8xf32> to vector<8x8x8xf32>
    %217 = vector.shape_cast %216 : vector<8x8x8xf32> to vector<64x8xf32>
    %c0_261 = arith.constant 0 : index
    %c16_262 = arith.constant 16 : index
    %218 = vector.load %arg10[%c0_261, %c16_262] : memref<128x32xf32, #tpu.memory_space<vmem>>, vector<64x8xf32>
    tpu.vector_store %arg10[%c0_261, %c16_262], %217 {strides = array<i32>} : memref<128x32xf32, #tpu.memory_space<vmem>>, vector<64x8xf32>,
    %c0_263 = arith.constant 0 : index
    %c2_264 = arith.constant 2 : index
    %c2_265 = arith.constant 2 : index
    %c0_266 = arith.constant 0 : index
    %219 = vector.load %arg8[%c0_263, %c2_264, %c2_265, %c0_266] : memref<2x10x16x8xf32, #tpu.memory_space<vmem>>, vector<1x8x8x8xf32>
    %220 = vector.shape_cast %219 : vector<1x8x8x8xf32> to vector<8x8x8xf32>
    %221 = vector.shape_cast %220 : vector<8x8x8xf32> to vector<64x8xf32>
    %c0_267 = arith.constant 0 : index
    %c24_268 = arith.constant 24 : index
    %222 = vector.load %arg10[%c0_267, %c24_268] : memref<128x32xf32, #tpu.memory_space<vmem>>, vector<64x8xf32>
    tpu.vector_store %arg10[%c0_267, %c24_268], %221 {strides = array<i32>} : memref<128x32xf32, #tpu.memory_space<vmem>>, vector<64x8xf32>,
    %c1_269 = arith.constant 1 : index
    %c1_270 = arith.constant 1 : index
    %c1_271 = arith.constant 1 : index
    %c0_272 = arith.constant 0 : index
    %223 = vector.load %arg8[%c1_269, %c1_270, %c1_271, %c0_272] : memref<2x10x16x8xf32, #tpu.memory_space<vmem>>, vector<1x8x8x8xf32>
    %224 = vector.shape_cast %223 : vector<1x8x8x8xf32> to vector<8x8x8xf32>
    %225 = vector.shape_cast %224 : vector<8x8x8xf32> to vector<64x8xf32>
    %c64_273 = arith.constant 64 : index
    %c0_274 = arith.constant 0 : index
    %226 = vector.load %arg10[%c64_273, %c0_274] : memref<128x32xf32, #tpu.memory_space<vmem>>, vector<64x8xf32>
    tpu.vector_store %arg10[%c64_273, %c0_274], %225 {strides = array<i32>} : memref<128x32xf32, #tpu.memory_space<vmem>>, vector<64x8xf32>,
    %c1_275 = arith.constant 1 : index
    %c1_276 = arith.constant 1 : index
    %c2_277 = arith.constant 2 : index
    %c0_278 = arith.constant 0 : index
    %227 = vector.load %arg8[%c1_275, %c1_276, %c2_277, %c0_278] : memref<2x10x16x8xf32, #tpu.memory_space<vmem>>, vector<1x8x8x8xf32>
    %228 = vector.shape_cast %227 : vector<1x8x8x8xf32> to vector<8x8x8xf32>
    %229 = vector.shape_cast %228 : vector<8x8x8xf32> to vector<64x8xf32>
    %c64_279 = arith.constant 64 : index
    %c8_280 = arith.constant 8 : index
    %230 = vector.load %arg10[%c64_279, %c8_280] : memref<128x32xf32, #tpu.memory_space<vmem>>, vector<64x8xf32>
    tpu.vector_store %arg10[%c64_279, %c8_280], %229 {strides = array<i32>} : memref<128x32xf32, #tpu.memory_space<vmem>>, vector<64x8xf32>,
    %c1_281 = arith.constant 1 : index
    %c2_282 = arith.constant 2 : index
    %c1_283 = arith.constant 1 : index
    %c0_284 = arith.constant 0 : index
    %231 = vector.load %arg8[%c1_281, %c2_282, %c1_283, %c0_284] : memref<2x10x16x8xf32, #tpu.memory_space<vmem>>, vector<1x8x8x8xf32>
    %232 = vector.shape_cast %231 : vector<1x8x8x8xf32> to vector<8x8x8xf32>
    %233 = vector.shape_cast %232 : vector<8x8x8xf32> to vector<64x8xf32>
    %c64_285 = arith.constant 64 : index
    %c16_286 = arith.constant 16 : index
    %234 = vector.load %arg10[%c64_285, %c16_286] : memref<128x32xf32, #tpu.memory_space<vmem>>, vector<64x8xf32>
    tpu.vector_store %arg10[%c64_285, %c16_286], %233 {strides = array<i32>} : memref<128x32xf32, #tpu.memory_space<vmem>>, vector<64x8xf32>,
    %c1_287 = arith.constant 1 : index
    %c2_288 = arith.constant 2 : index
    %c2_289 = arith.constant 2 : index
    %c0_290 = arith.constant 0 : index
    %235 = vector.load %arg8[%c1_287, %c2_288, %c2_289, %c0_290] : memref<2x10x16x8xf32, #tpu.memory_space<vmem>>, vector<1x8x8x8xf32>
    %236 = vector.shape_cast %235 : vector<1x8x8x8xf32> to vector<8x8x8xf32>
    %237 = vector.shape_cast %236 : vector<8x8x8xf32> to vector<64x8xf32>
    %c64_291 = arith.constant 64 : index
    %c24_292 = arith.constant 24 : index
    %238 = vector.load %arg10[%c64_291, %c24_292] : memref<128x32xf32, #tpu.memory_space<vmem>>, vector<64x8xf32>
    tpu.vector_store %arg10[%c64_291, %c24_292], %237 {strides = array<i32>} : memref<128x32xf32, #tpu.memory_space<vmem>>, vector<64x8xf32>,
    %c0_293 = arith.constant 0 : index
    %c0_294 = arith.constant 0 : index
    %239 = vector.load %arg10[%c0_293, %c0_294] : memref<128x32xf32, #tpu.memory_space<vmem>>, vector<128x32xf32>
    %c3 = arith.constant 3 : index
    %c0_295 = arith.constant 0 : index
    %c0_296 = arith.constant 0 : index
    %240 = vector.load %arg4[%c3, %c0_295, %c0_296] : memref<4x32x4xf32, #tpu.memory_space<vmem>>, vector<1x32x4xf32>
    %241 = vector.shape_cast %240 : vector<1x32x4xf32> to vector<32x4xf32>
    %cst_297 = arith.constant dense<0.000000e+00> : vector<128x4xf32>
    %242 = tpu.matmul %239, %241, %cst_297 {dimension_numbers = #tpu.dot_dimension_numbers<[1], [0], [0], [1], [0, 0, 1, 1], [], []>} : vector<128x32xf32>, vector<32x4xf32>, vector<128x4xf32> -> vector<128x4xf32>
    %c2_i32_298 = arith.constant 2 : i32
    %243 = arith.muli %arg0, %c2_i32_298 : i32
    %c0_i32_299 = arith.constant 0 : i32
    %244 = arith.addi %243, %c0_i32_299 : i32
    %245 = vector.extract_strided_slice %242 {offsets = [0, 0], sizes = [64, 4], strides = [1, 1]} : vector<128x4xf32> to vector<64x4xf32>
    %246 = arith.index_cast %244 : i32 to index
    %c192 = arith.constant 192 : index
    %c4_300 = arith.constant 4 : index
    %247 = vector.load %arg6[%246, %c192, %c4_300] : memref<2x256x8xf32, #tpu.memory_space<vmem>>, vector<1x64x4xf32>
    %248 = vector.shape_cast %247 : vector<1x64x4xf32> to vector<64x4xf32>
    %249 = vector.shape_cast %245 : vector<64x4xf32> to vector<1x64x4xf32>
    tpu.vector_store %arg6[%246, %c192, %c4_300], %249 {strides = array<i32>} : memref<2x256x8xf32, #tpu.memory_space<vmem>>, vector<1x64x4xf32>,
    %c2_i32_301 = arith.constant 2 : i32
    %250 = arith.muli %arg0, %c2_i32_301 : i32
    %c1_i32_302 = arith.constant 1 : i32
    %251 = arith.addi %250, %c1_i32_302 : i32
    %252 = vector.extract_strided_slice %242 {offsets = [64, 0], sizes = [64, 4], strides = [1, 1]} : vector<128x4xf32> to vector<64x4xf32>
    %253 = arith.index_cast %251 : i32 to index
    %c192_303 = arith.constant 192 : index
    %c4_304 = arith.constant 4 : index
    %254 = vector.load %arg6[%253, %c192_303, %c4_304] : memref<2x256x8xf32, #tpu.memory_space<vmem>>, vector<1x64x4xf32>
    %255 = vector.shape_cast %254 : vector<1x64x4xf32> to vector<64x4xf32>
    %256 = vector.shape_cast %252 : vector<64x4xf32> to vector<1x64x4xf32>
    tpu.vector_store %arg6[%253, %c192_303, %c4_304], %256 {strides = array<i32>} : memref<2x256x8xf32, #tpu.memory_space<vmem>>, vector<1x64x4xf32>,
    %c2_i32_305 = arith.constant 2 : i32
    %257 = arith.muli %arg0, %c2_i32_305 : i32
    %c0_i32_306 = arith.constant 0 : i32
    %258 = arith.addi %257, %c0_i32_306 : i32
    %c0_307 = arith.constant 0 : index
    %c0_308 = arith.constant 0 : index
    %c0_309 = arith.constant 0 : index
    %259 = vector.load %arg2[%c0_307, %c0_308, %c0_309] : memref<2x256x4xf32, #tpu.memory_space<vmem>>, vector<1x256x4xf32>
    %260 = vector.shape_cast %259 : vector<1x256x4xf32> to vector<256x4xf32>
    %261 = arith.index_cast %258 : i32 to index
    %c0_310 = arith.constant 0 : index
    %c0_311 = arith.constant 0 : index
    %262 = vector.load %arg6[%261, %c0_310, %c0_311] : memref<2x256x8xf32, #tpu.memory_space<vmem>>, vector<1x256x4xf32>
    %263 = vector.shape_cast %262 : vector<1x256x4xf32> to vector<256x4xf32>
    %264 = vector.shape_cast %260 : vector<256x4xf32> to vector<1x256x4xf32>
    tpu.vector_store %arg6[%261, %c0_310, %c0_311], %264 {strides = array<i32>} : memref<2x256x8xf32, #tpu.memory_space<vmem>>, vector<1x256x4xf32>,
    %c2_i32_312 = arith.constant 2 : i32
    %265 = arith.muli %arg0, %c2_i32_312 : i32
    %c1_i32_313 = arith.constant 1 : i32
    %266 = arith.addi %265, %c1_i32_313 : i32
    %c1_314 = arith.constant 1 : index
    %c0_315 = arith.constant 0 : index
    %c0_316 = arith.constant 0 : index
    %267 = vector.load %arg2[%c1_314, %c0_315, %c0_316] : memref<2x256x4xf32, #tpu.memory_space<vmem>>, vector<1x256x4xf32>
    %268 = vector.shape_cast %267 : vector<1x256x4xf32> to vector<256x4xf32>
    %269 = arith.index_cast %266 : i32 to index
    %c0_317 = arith.constant 0 : index
    %c0_318 = arith.constant 0 : index
    %270 = vector.load %arg6[%269, %c0_317, %c0_318] : memref<2x256x8xf32, #tpu.memory_space<vmem>>, vector<1x256x4xf32>
    %271 = vector.shape_cast %270 : vector<1x256x4xf32> to vector<256x4xf32>
    %272 = vector.shape_cast %268 : vector<256x4xf32> to vector<1x256x4xf32>
    tpu.vector_store %arg6[%269, %c0_317, %c0_318], %272 {strides = array<i32>} : memref<2x256x8xf32, #tpu.memory_space<vmem>>, vector<1x256x4xf32>,
    %c0_i32_319 = arith.constant 0 : i32
    %273 = arith.cmpi eq, %arg0, %c0_i32_319 : i32
    %274 = arith.extui %273 : i1 to i32
    %c0_i32_320 = arith.constant 0 : i32
    %275 = arith.cmpi ne, %274, %c0_i32_320 : i32
    scf.if %275 {
      %c0_321 = arith.constant 0 : index
      %c0_322 = arith.constant 0 : index
      %c4_323 = arith.constant 4 : index
      %276 = vector.load %arg6[%c0_321, %c0_322, %c4_323] : memref<2x256x8xf32, #tpu.memory_space<vmem>>, vector<2x256x4xf32>
      %cst_324 = arith.constant dense<0.000000e+00> : vector<256x4xf32>
      %277 = vector.multi_reduction <add>, %276, %cst_324 [0] : vector<2x256x4xf32> to vector<256x4xf32>
      %cst_325 = arith.constant dense<0.000000e+00> : vector<4xf32>
      %278 = vector.multi_reduction <add>, %277, %cst_325 [0] : vector<256x4xf32> to vector<4xf32>
      %279 = vector.shape_cast %278 : vector<4xf32> to vector<1x4xf32>
      %cst_326 = arith.constant 5.120000e+02 : f32
      %280 = vector.broadcast %cst_326 : f32 to vector<1x4xf32>
      %281 = arith.divf %279, %280 : vector<1x4xf32>
      %282 = vector.shape_cast %281 : vector<1x4xf32> to vector<1x1x4xf32>
      %283 = vector.broadcast %282 : vector<1x1x4xf32> to vector<2x256x4xf32>
      %284 = arith.subf %276, %283 : vector<2x256x4xf32>
      %285 = arith.mulf %284, %284 : vector<2x256x4xf32>
      %cst_327 = arith.constant dense<0.000000e+00> : vector<256x4xf32>
      %286 = vector.multi_reduction <add>, %285, %cst_327 [0] : vector<2x256x4xf32> to vector<256x4xf32>
      %cst_328 = arith.constant dense<0.000000e+00> : vector<4xf32>
      %287 = vector.multi_reduction <add>, %286, %cst_328 [0] : vector<256x4xf32> to vector<4xf32>
      %288 = vector.shape_cast %287 : vector<4xf32> to vector<1x4xf32>
      %cst_329 = arith.constant 5.120000e+02 : f32
      %289 = vector.broadcast %cst_329 : f32 to vector<1x4xf32>
      %290 = arith.divf %288, %289 : vector<1x4xf32>
      %c0_330 = arith.constant 0 : index
      %c0_331 = arith.constant 0 : index
      %291 = vector.load %arg5[%c0_330, %c0_331] : memref<2x4xf32, #tpu.memory_space<vmem>>, vector<1x4xf32>
      %cst_332 = arith.constant 9.99999974E-6 : f32
      %292 = vector.broadcast %cst_332 : f32 to vector<1x4xf32>
      %293 = arith.addf %290, %292 : vector<1x4xf32>
      %294 = math.rsqrt %293 : vector<1x4xf32>
      %295 = arith.mulf %291, %294 : vector<1x4xf32>
      %296 = vector.shape_cast %295 : vector<1x4xf32> to vector<1x1x4xf32>
      %297 = vector.broadcast %296 : vector<1x1x4xf32> to vector<2x256x4xf32>
      %298 = arith.mulf %284, %297 : vector<2x256x4xf32>
      %c1_333 = arith.constant 1 : index
      %c0_334 = arith.constant 0 : index
      %299 = vector.load %arg5[%c1_333, %c0_334] : memref<2x4xf32, #tpu.memory_space<vmem>>, vector<1x4xf32>
      %300 = vector.shape_cast %299 : vector<1x4xf32> to vector<1x1x4xf32>
      %301 = vector.broadcast %300 : vector<1x1x4xf32> to vector<2x256x4xf32>
      %302 = arith.addf %298, %301 : vector<2x256x4xf32>
      %c0_335 = arith.constant 0 : index
      %c0_336 = arith.constant 0 : index
      %c4_337 = arith.constant 4 : index
      %303 = vector.load %arg6[%c0_335, %c0_336, %c4_337] : memref<2x256x8xf32, #tpu.memory_space<vmem>>, vector<2x256x4xf32>
      tpu.vector_store %arg6[%c0_335, %c0_336, %c4_337], %302 {strides = array<i32>} : memref<2x256x8xf32, #tpu.memory_space<vmem>>, vector<2x256x4xf32>,
    } else {
    }
    return
  }
  func.func @transform_0(%arg0: i32) -> (i32, i32, i32, i32) {
    %c0_i32 = arith.constant 0 : i32
    %c0_i32_0 = arith.constant 0 : i32
    %c0_i32_1 = arith.constant 0 : i32
    %c0_i32_2 = arith.constant 0 : i32
    return %arg0, %c0_i32, %c0_i32_0, %c0_i32_1 : i32, i32, i32, i32
  }
  func.func @transform_1(%arg0: i32) -> (i32, i32, i32) {
    %c0_i32 = arith.constant 0 : i32
    %c0_i32_0 = arith.constant 0 : i32
    %c0_i32_1 = arith.constant 0 : i32
    return %arg0, %c0_i32, %c0_i32_0 : i32, i32, i32
  }
  func.func @transform_2(%arg0: i32) -> (i32, i32) {
    %c0_i32 = arith.constant 0 : i32
    %c0_i32_0 = arith.constant 0 : i32
    %c0_i32_1 = arith.constant 0 : i32
    return %c0_i32, %c0_i32_0 : i32, i32
  }
  func.func @transform_3(%arg0: i32) -> (i32, i32, i32) {
    %c0_i32 = arith.constant 0 : i32
    %c0_i32_0 = arith.constant 0 : i32
    %c0_i32_1 = arith.constant 0 : i32
    %c0_i32_2 = arith.constant 0 : i32
    return %c0_i32, %c0_i32_0, %c0_i32_1 : i32, i32, i32
  }
  func.func @transform_4(%arg0: i32) -> (i32, i32) {
    %c0_i32 = arith.constant 0 : i32
    %c0_i32_0 = arith.constant 0 : i32
    %c0_i32_1 = arith.constant 0 : i32
    return %c0_i32, %c0_i32_0 : i32, i32
  }
  func.func @transform_5(%arg0: i32) -> (i32, i32, i32) {
    %c0_i32 = arith.constant 0 : i32
    %c0_i32_0 = arith.constant 0 : i32
    %c0_i32_1 = arith.constant 0 : i32
    %c0_i32_2 = arith.constant 0 : i32
    return %c0_i32, %c0_i32_0, %c0_i32_1 : i32, i32, i32
  }
}

</mosaic_0001>

<bundles_post_ra>
// kernel: unet_innermost_forward.1
= control target key start
LH: loop header
LB: loop body
LE: loop exit
PB: predicated region body
PF: predicated region fallthrough
CT: control target
= control target key end

     0   :  { %vm209_vm0 = vcmask 130048   ;;  %vm211_vm1 = vcmask 122880   ;;  %s4698_s27 = smov 16   ;;  %s4699_s30 = smov 32   ;;  %s8596_s0 = inlined_call_operand.vmem [shape: f32[2,9,9,16], index: 0, kind: input, shape index: {}]   ;;  %s8597_s2 = inlined_call_operand.vmem [shape: f32[64,8], index: 2, kind: input, shape index: {}]   ;;  %s8598_s3 = inlined_call_operand.vmem [shape: f32[4,32,4], index: 3, kind: input, shape index: {}]   ;;  %s8599_s1 = inlined_call_operand.vmem [shape: f32[2,256,4], index: 1, kind: input, shape index: {}]   ;;  %s8600_s5 = inlined_call_operand.vmem [shape: f32[2,256,8], index: 5, kind: output, shape index: {}]   ;;  %s8601_s4 = inlined_call_operand.vmem [shape: f32[2,4], index: 4, kind: input, shape index: {}]  }
   0x1   :  { %v65_v0 = vld [vmem:[%s8596_s0] sm:$0xff]  ;;  %v66_v1 = vld [vmem:[%s8596_s0 + $0x8] sm:$0x1]  ;;  %v67_v2 = vld [vmem:[%s8596_s0 + $0x10] sm:$0xff]  ;;  %s4700_s24 = smov 48   ;;  %s4705_s15 = smov 124  }
   0x2   :  { %vm101_vm2 = vcmp.gt.f32.partialorder %v65_v0, 0.0  ;;  %vm102_vm3 = vcmp.gt.f32.partialorder %v66_v1, 0.0  ;;  %v137_v3 = vmul.f32 0.2, %v65_v0  ;;  %v138_v4 = vmul.f32 0.2, %v66_v1 }
   0x3   :  { %vm103_vm4 = vcmp.gt.f32.partialorder %v67_v2, 0.0  ;;  %v139_v5 = vmul.f32 0.2, %v67_v2  ;;  %v68_v6 = vld [vmem:[%s8596_s0 + $0x18] sm:$0x1]  ;;  %v69_v7 = vld [vmem:[%s8596_s0 + $0x20] sm:$0xff] }
   0x4   :  { %v173_v8 = vsel %vm101_vm2, %v65_v0, %v137_v3  ;;  %v174_v9 = vsel %vm102_vm3, %v66_v1, %v138_v4  ;;  %vm104_vm5 = vcmp.gt.f32.partialorder %v68_v6, 0.0  ;;  %v140_v10 = vmul.f32 0.2, %v68_v6  ;;  %v70_v11 = vld [vmem:[%s8596_s0 + $0x28] sm:$0x1]  ;;  %v71_v12 = vld [vmem:[%s8596_s0 + $0x30] sm:$0xff] }
   0x5   :  { %210 = vst.msk [vmem:[#allocation2] sm:$0xff] %vm209_vm0, %v173_v8  ;;  %v175_v13 = vsel %vm103_vm4, %v67_v2, %v139_v5  ;;  %vm105_vm6 = vcmp.gt.f32.partialorder %v69_v7, 0.0  ;;  %v141_v14 = vmul.f32 0.2, %v69_v7  ;;  %vm106_vm7 = vcmp.gt.f32.partialorder %v70_v11, 0.0  ;;  %v73_v18 = vld [vmem:[%s8596_s0 + $0x40] sm:$0xff] }
   0x6   :  { %212 = vst.msk [vmem:[#allocation2 + $0x8] sm:$0x1] %vm211_vm1, %v174_v9  ;;  %v72_v15 = vld [vmem:[%s8596_s0 + $0x38] sm:$0x1]  ;;  %v176_v16 = vsel %vm104_vm5, %v68_v6, %v140_v10  ;;  %v142_v17 = vmul.f32 0.2, %v70_v11 }
   0x7   :  { %213 = vst.msk [vmem:[#allocation2 + $0x10] sm:$0xff] %vm209_vm0, %v175_v13  ;;  %vm107_vm8 = vcmp.gt.f32.partialorder %v71_v12, 0.0  ;;  %vm108_vm9 = vcmp.gt.f32.partialorder %v72_v15, 0.0  ;;  %v75_v19 = vld [vmem:[%s8596_s0 + $0x50] sm:$0xff]  ;;  %v177_v20 = vsel %vm105_vm6, %v69_v7, %v141_v14  ;;  %v143_v21 = vmul.f32 0.2, %v71_v12 }
   0x8   :  { %214 = vst.msk [vmem:[#allocation2 + $0x18] sm:$0x1] %vm211_vm1, %v176_v16  ;;  %v144_v22 = vmul.f32 0.2, %v72_v15  ;;  %vm109_vm10 = vcmp.gt.f32.partialorder %v73_v18, 0.0  ;;  %v77_v23 = vld [vmem:[%s8596_s0 + $0x60] sm:$0xff]  ;;  %v178_v24 = vsel %vm106_vm7, %v70_v11, %v142_v17 }
   0x9   :  { %215 = vst.msk [vmem:[#allocation2 + $0x20] sm:$0xff] %vm209_vm0, %v177_v20  ;;  %v145_v25 = vmul.f32 0.2, %v73_v18  ;;  %v74_v26 = vld [vmem:[%s8596_s0 + $0x48] sm:$0x1]  ;;  %v179_v28 = vsel %vm107_vm8, %v71_v12, %v143_v21  ;;  %v79_v32 = vld [vmem:[%s8596_s0 + $0x70] sm:$0xff] }
   0xa   :  { %v76_v27 = vld [vmem:[%s8596_s0 + $0x58] sm:$0x1]  ;;  %216 = vst.msk [vmem:[#allocation2 + $0x28] sm:$0x1] %vm211_vm1, %v178_v24  ;;  %v180_v29 = vsel %vm108_vm9, %v72_v15, %v144_v22  ;;  %vm110_vm11 = vcmp.gt.f32.partialorder %v74_v26, 0.0  ;;  %vm111_vm12 = vcmp.gt.f32.partialorder %v75_v19, 0.0 }
   0xb   :  { %v146_v30 = vmul.f32 0.2, %v74_v26  ;;  %v78_v31 = vld [vmem:[%s8596_s0 + $0x68] sm:$0x1]  ;;  %217 = vst.msk [vmem:[#allocation2 + $0x30] sm:$0xff] %vm209_vm0, %v179_v28  ;;  %v181_v33 = vsel %vm109_vm10, %v73_v18, %v145_v25  ;;  %vm112_vm13 = vcmp.gt.f32.partialorder %v76_v27, 0.0 }
   0xc   :  { %218 = vst.msk [vmem:[#allocation2 + $0x38] sm:$0x1] %vm211_vm1, %v180_v29  ;;  %v147_v34 = vmul.f32 0.2, %v75_v19  ;;  %v80_v35 = vld [vmem:[%s8596_s0 + $0x78] sm:$0x1] }
   0xd   :  { %219 = vst.msk [vmem:[#allocation2 + $0x40] sm:$0xff] %vm209_vm0, %v181_v33  ;;  %v182_v36 = vsel %vm110_vm11, %v74_v26, %v146_v30  ;;  %v148_v37 = vmul.f32 0.2, %v76_v27  ;;  %vm113_vm14 = vcmp.gt.f32.partialorder %v77_v23, 0.0  ;;  %v149_v38 = vmul.f32 0.2, %v77_v23 }
   0xe   :  { %v81_v39 = vld [vmem:[%s8596_s0 + $0x80] sm:$0xff]  ;;  %220 = vst.msk [vmem:[#allocation2 + $0x48] sm:$0x1] %vm211_vm1, %v182_v36  ;;  %v183_v41 = vsel %vm111_vm12, %v75_v19, %v147_v34  ;;  %vm114_vm15 = vcmp.gt.f32.partialorder %v78_v31, 0.0  ;;  %v150_v42 = vmul.f32 0.2, %v78_v31 }
   0xf   :  { %v263_v40 = vld [vmem:[#allocation2 + $0x1] sm:$0xff]  ;;  %vm115_vm2 = vcmp.gt.f32.partialorder %v79_v32, 0.0  ;;  %v313_v44 = vld [vmem:[#allocation2 + $0x10] sm:$0xff]  ;;  %v184_v45 = vsel %vm112_vm13, %v76_v27, %v148_v37  ;;  %221 = vst.msk [vmem:[#allocation2 + $0x50] sm:$0xff] %vm209_vm0, %v183_v41  ;;  %v185_v46 = vsel %vm113_vm14, %v77_v23, %v149_v38  ;;  %vm116_vm3 = vcmp.gt.f32.partialorder %v80_v35, 0.0  ;;  %v592_v62 = vld [vmem:[%s8597_s2 + $0x18] sm:$0xff] }
  0x10   :  { %v247_v43 = vld [vmem:[#allocation2] sm:$0xff]  ;;  %279 = vrot.lane.b32.xlu0 %v263_v40, %s4698_s27  ;;  %v151_v47 = vmul.f32 0.2, %v79_v32  ;;  %v82_v48 = vld [vmem:[%s8596_s0 + $0x88] sm:$0x1]  ;;  %329 = vrot.lane.b32.xlu1 %v313_v44, %s4699_s30  ;;  %v264_v49 = vld [vmem:[#allocation2 + $0x11] sm:$0xff]  ;;  %v186_v50 = vsel %vm114_vm15, %v78_v31, %v150_v42 }
  0x11   :  { %255 = vst.msk [vmem:[#allocation4] sm:$0xff] %vm209_vm0, %v247_v43  ;;  %223 = vst.msk [vmem:[#allocation2 + $0x60] sm:$0xff] %vm209_vm0, %v185_v46  ;;  %v152_v51 = vmul.f32 0.2, %v80_v35  ;;  %vm117_vm4 = vcmp.gt.f32.partialorder %v81_v39, 0.0  ;;  %v314_v53 = vld [vmem:[#allocation2 + $0x20] sm:$0xff] }
  0x12   :  { %222 = vst.msk [vmem:[#allocation2 + $0x58] sm:$0x1] %vm211_vm1, %v184_v45  ;;  %v153_v52 = vmul.f32 0.2, %v81_v39  ;;  %224 = vst.msk [vmem:[#allocation2 + $0x68] sm:$0x1] %vm211_vm1, %v186_v50  ;;  %v187_v54 = vsel %vm115_vm2, %v79_v32, %v151_v47 }
  0x13   :  { %256 = vst.msk [vmem:[#allocation4 + $0x8] sm:$0xff] %vm209_vm0, %v313_v44  ;;  %vm118_vm5 = vcmp.gt.f32.partialorder %v82_v48, 0.0  ;;  %v154_v55 = vmul.f32 0.2, %v82_v48  ;;  %v589_v56 = vld [vmem:[%s8597_s2] sm:$0xff]  ;;  %v590_v57 = vld [vmem:[%s8597_s2 + $0x8] sm:$0xff]  ;;  %v188_v58 = vsel %vm116_vm3, %v80_v35, %v152_v51 }
  0x14   :  { %225 = vst.msk [vmem:[#allocation2 + $0x70] sm:$0xff] %vm209_vm0, %v187_v54  ;;  %v189_v59 = vsel %vm117_vm4, %v81_v39, %v153_v52  ;;  %v4636_v60 = vpack.c.bf16 %v590_v57, %v589_v56  ;;  %v591_v61 = vld [vmem:[%s8597_s2 + $0x10] sm:$0xff]  ;;  %257 = vst.msk [vmem:[#allocation4 + $0x10] sm:$0xff] %vm209_vm0, %v314_v53  ;;  %281 = vrot.lane.b32.xlu0 %v264_v49, %s4698_s27  ;;  %v593_v2 = vld [vmem:[%s8597_s2 + $0x20] sm:$0xff]  ;;  %331 = vrot.lane.b32.xlu1 %v314_v53, %s4699_s30 }
  0x15   :  { %v4832_v63 = vld [vmem:[#allocation2 + $0x30] sm:$0xff]  ;;  %226 = vst.msk [vmem:[#allocation2 + $0x78] sm:$0x1] %vm211_vm1, %v188_v58  ;;  %v190_v0 = vsel %vm118_vm5, %v82_v48, %v154_v55  ;;  %v4640_v1 = vpack.c.bf16 %v592_v62, %v591_v61  ;;  %v316_v3 = vld [vmem:[#allocation2 + $0x40] sm:$0xff]  ;;  %v594_v4 = vld [vmem:[%s8597_s2 + $0x28] sm:$0xff] }
  0x16   :  { %227 = vst.msk [vmem:[#allocation2 + $0x80] sm:$0xff] %vm209_vm0, %v189_v59  ;;  %4637 = vmatprep.subr.bf16.mxu0 %v4636_v60  ;;  %v83_v5 = vld [vmem:[%s8596_s0 + $0x90] sm:$0xff]  ;;  %258 = vst.msk [vmem:[#allocation4 + $0x18] sm:$0xff] %vm209_vm0, %v4832_v63  ;;  %v363_v6 = vld [vmem:[#allocation2 + $0x21] sm:$0xff]  ;;  %v4644_v10 = vpack.c.bf16 %v594_v4, %v593_v2 }
  0x17   :  { %228 = vst.msk [vmem:[#allocation2 + $0x88] sm:$0x1] %vm211_vm1, %v190_v0  ;;  %4639 = vmatpush3.bf16.msra.mxu0 %v4636_v60  ;;  %v84_v7 = vld [vmem:[%s8596_s0 + $0x98] sm:$0x1]  ;;  %vm119_vm6 = vcmp.gt.f32.partialorder %v83_v5, 0.0  ;;  %v4853_v9 = vld [vmem:[#allocation2 + $0x50] sm:$0xff] }
  0x18   :  { %v155_v8 = vmul.f32 0.2, %v83_v5  ;;  %259 = vst.msk [vmem:[#allocation4 + $0x20] sm:$0xff] %vm209_vm0, %v316_v3  ;;  %4641 = vmatprep.subr.bf16.mxu0 %v4640_v1  ;;  %vm120_vm7 = vcmp.gt.f32.partialorder %v84_v7, 0.0  ;;  %v156_v11 = vmul.f32 0.2, %v84_v7  ;;  %378 = vrot.lane.b32.xlu0 %v264_v49, %s4700_s24 }
  0x19   :  { %v85_v12 = vld [vmem:[%s8596_s0 + $0xa0] sm:$0xff]  ;;  %v86_v15 = vld [vmem:[%s8596_s0 + $0xa8] sm:$0x1]  ;;  %v595_v16 = vld [vmem:[%s8597_s2 + $0x30] sm:$0xff]  ;;  %260 = vst.msk [vmem:[#allocation4 + $0x28] sm:$0xff] %vm209_vm0, %v4853_v9  ;;  %380 = vrot.lane.b32.xlu1 %v363_v6, %s4700_s24 }
  0x1a   :  { %v4859_v13 = vld [vmem:[#allocation2 + $0x60] sm:$0xff]  ;;  %v191_v14 = vsel %vm119_vm6, %v83_v5, %v155_v8  ;;  %vm121_vm8 = vcmp.gt.f32.partialorder %v85_v12, 0.0  ;;  %v266_v17 = vld [vmem:[#allocation2 + $0x31] sm:$0xff]  ;;  %v192_v18 = vsel %vm120_vm7, %v84_v7, %v156_v11  ;;  %vm122_vm9 = vcmp.gt.f32.partialorder %v86_v15, 0.0  ;;  %v90_v33 = vld [vmem:[%s8596_s0 + $0xc8] sm:$0x1] }
  0x1b   :  { %229 = vst.msk [vmem:[#allocation2 + $0x90] sm:$0xff] %vm209_vm0, %v191_v14  ;;  %v157_v19 = vmul.f32 0.2, %v85_v12  ;;  %v158_v20 = vmul.f32 0.2, %v86_v15  ;;  %261 = vst.msk [vmem:[#allocation4 + $0x30] sm:$0xff] %vm209_vm0, %v4859_v13  ;;  %4643 = vmatpush3.bf16.msra.mxu0 %v4640_v1 }
  0x1c   :  { %v4873_v21 = vld [vmem:[#allocation2 + $0x70] sm:$0xff]  ;;  %230 = vst.msk [vmem:[#allocation2 + $0x98] sm:$0x1] %vm211_vm1, %v192_v18  ;;  %v596_v22 = vld [vmem:[%s8597_s2 + $0x38] sm:$0xff]  ;;  %4645 = vmatprep.subr.bf16.mxu0 %v4644_v10  ;;  %283 = vrot.lane.b32.xlu0 %v363_v6, %s4698_s27  ;;  %v89_v32 = vld [vmem:[%s8596_s0 + $0xc0] sm:$0xff]  ;;  %vm126_vm13 = vcmp.gt.f32.partialorder %v90_v33, 0.0 }
  0x1d   :  { %v87_v23 = vld [vmem:[%s8596_s0 + $0xb0] sm:$0xff]  ;;  %v193_v24 = vsel %vm121_vm8, %v85_v12, %v157_v19  ;;  %v194_v25 = vsel %vm122_vm9, %v86_v15, %v158_v20  ;;  %v4648_v26 = vpack.c.bf16 %v596_v22, %v595_v16  ;;  %v88_v27 = vld [vmem:[%s8596_s0 + $0xb8] sm:$0x1]  ;;  %262 = vst.msk [vmem:[#allocation4 + $0x38] sm:$0xff] %vm209_vm0, %v4873_v21  ;;  %285 = vrot.lane.b32.xlu1 %v266_v17, %s4698_s27  ;;  %v365_v35 = vld [vmem:[#allocation2 + $0x41] sm:$0xff]  ;;  %vm125_vm12 = vcmp.gt.f32.partialorder %v89_v32, 0.0 }
  0x1e   :  { %vm123_vm10 = vcmp.gt.f32.partialorder %v87_v23, 0.0  ;;  %231 = vst.msk [vmem:[#allocation2 + $0xa0] sm:$0xff] %vm209_vm0, %v193_v24  ;;  %v159_v28 = vmul.f32 0.2, %v87_v23  ;;  %vm124_vm11 = vcmp.gt.f32.partialorder %v88_v27, 0.0  ;;  %v91_v34 = vld [vmem:[%s8596_s0 + $0xd0] sm:$0xff] }
  0x1f   :  { %232 = vst.msk [vmem:[#allocation2 + $0xa8] sm:$0x1] %vm211_vm1, %v194_v25  ;;  %v160_v29 = vmul.f32 0.2, %v88_v27  ;;  %4647 = vmatpush3.bf16.msra.mxu0 %v4644_v10  ;;  %v161_v36 = vmul.f32 0.2, %v89_v32 }
  0x20   :  { %v195_v30 = vsel %vm123_vm10, %v87_v23, %v159_v28  ;;  %4649 = vmatprep.subr.bf16.mxu0 %v4648_v26  ;;  %333 = vrot.lane.b32.xlu0 %v4832_v63, %s4699_s30  ;;  %vm127_vm14 = vcmp.gt.f32.partialorder %v91_v34, 0.0  ;;  %v162_v37 = vmul.f32 0.2, %v90_v33  ;;  %v163_v38 = vmul.f32 0.2, %v91_v34  ;;  %v268_v46 = vld [vmem:[#allocation2 + $0x51] sm:$0xff] }
  0x21   :  { %v196_v31 = vsel %vm124_vm11, %v88_v27, %v160_v29  ;;  %233 = vst.msk [vmem:[#allocation2 + $0xb0] sm:$0xff] %vm209_vm0, %v195_v30  ;;  %335 = vrot.lane.b32.xlu1 %v316_v3, %s4699_s30  ;;  %v92_v39 = vld [vmem:[%s8596_s0 + $0xd8] sm:$0x1]  ;;  %v197_v41 = vsel %vm125_vm12, %v89_v32, %v161_v36  ;;  %v93_v50 = vld [vmem:[%s8596_s0 + $0xe0] sm:$0xff]  ;;  %v94_v52 = vld [vmem:[%s8596_s0 + $0xe8] sm:$0x1] }
  0x22   :  { %234 = vst.msk [vmem:[#allocation2 + $0xb8] sm:$0x1] %vm211_vm1, %v196_v31  ;;  %vm128_vm15 = vcmp.gt.f32.partialorder %v92_v39, 0.0  ;;  %v164_v42 = vmul.f32 0.2, %v92_v39  ;;  %v198_v43 = vsel %vm126_vm13, %v90_v33, %v162_v37  ;;  %v199_v44 = vsel %vm127_vm14, %v91_v34, %v163_v38  ;;  %v367_v51 = vld [vmem:[#allocation2 + $0x61] sm:$0xff] }
  0x23   :  { %4651 = vmatpush3.bf16.msra.mxu0 %v4648_v26  ;;  %235 = vst.msk [vmem:[#allocation2 + $0xc0] sm:$0xff] %vm209_vm0, %v197_v41  ;;  %237 = vst.msk [vmem:[#allocation2 + $0xd0] sm:$0xff] %vm209_vm0, %v199_v44  ;;  %vm129_vm2 = vcmp.gt.f32.partialorder %v93_v50, 0.0  ;;  %v165_v53 = vmul.f32 0.2, %v93_v50  ;;  %vm130_vm3 = vcmp.gt.f32.partialorder %v94_v52, 0.0 }
  0x24   :  { %382 = vrot.lane.b32.xlu0 %v266_v17, %s4700_s24  ;;  %236 = vst.msk [vmem:[#allocation2 + $0xc8] sm:$0x1] %vm211_vm1, %v198_v43  ;;  %v200_v45 = vsel %vm128_vm15, %v92_v39, %v164_v42  ;;  %v166_v54 = vmul.f32 0.2, %v94_v52  ;;  %v95_v55 = vld [vmem:[%s8596_s0 + $0xf0] sm:$0xff]  ;;  %v320_v0 = vld [vmem:[#allocation2 + $0x80] sm:$0xff] }
  0x25   :  { %v4909_v40 = vld [vmem:[#allocation2 + $0xa0] sm:$0xff]  ;;  %384 = vrot.lane.b32.xlu1 %v365_v35, %s4700_s24  ;;  %238 = vst.msk [vmem:[#allocation2 + $0xd8] sm:$0x1] %vm211_vm1, %v200_v45  ;;  %v96_v56 = vld [vmem:[%s8596_s0 + $0xf8] sm:$0x1]  ;;  %v201_v57 = vsel %vm129_vm2, %v93_v50, %v165_v53  ;;  %vm131_vm4 = vcmp.gt.f32.partialorder %v95_v55, 0.0 }
  0x26   :  { %421 = vst.msk [vmem:[#allocation4 + $0x48] sm:$0xff] %vm209_vm0, %v4909_v40  ;;  %v167_v58 = vmul.f32 0.2, %v95_v55  ;;  %vm132_vm5 = vcmp.gt.f32.partialorder %v96_v56, 0.0  ;;  %v202_v59 = vsel %vm130_vm3, %v94_v52, %v166_v54  ;;  %239 = vst.msk [vmem:[#allocation2 + $0xe0] sm:$0xff] %vm209_vm0, %v201_v57  ;;  %v270_v62 = vld [vmem:[#allocation2 + $0x71] sm:$0xff] }
  0x27   :  { %v168_v60 = vmul.f32 0.2, %v96_v56  ;;  %240 = vst.msk [vmem:[#allocation2 + $0xe8] sm:$0x1] %vm211_vm1, %v202_v59  ;;  %v412_v2 = vld [vmem:[#allocation2 + $0x90] sm:$0xff]  ;;  %v369_v4 = vld [vmem:[#allocation2 + $0x81] sm:$0xff] }
  0x28   :  { %v478_v47 = vld [vmem:[#allocation2 + $0xb0] sm:$0xff]  ;;  %287 = vrot.lane.b32.xlu0 %v365_v35, %s4698_s27  ;;  %v203_v61 = vsel %vm131_vm4, %v95_v55, %v167_v58  ;;  %420 = vst.msk [vmem:[#allocation4 + $0x40] sm:$0xff] %vm209_vm0, %v412_v2  ;;  %v429_v6 = vld [vmem:[#allocation2 + $0xa1] sm:$0xff]  ;;  %v100_v14 = vld [vmem:[%s8596_s0 + $0x118] sm:$0x1]  ;;  %vm24_vm10 = vcmask 64512  }
  0x29   :  { %422 = vst.msk [vmem:[#allocation4 + $0x50] sm:$0xff] %vm209_vm0, %v478_v47  ;;  %289 = vrot.lane.b32.xlu1 %v268_v46, %s4698_s27  ;;  %241 = vst.msk [vmem:[#allocation2 + $0xf0] sm:$0xff] %vm209_vm0, %v203_v61  ;;  %v204_v63 = vsel %vm132_vm5, %v96_v56, %v168_v60  ;;  %v428_v5 = vld [vmem:[#allocation2 + $0x91] sm:$0xff]  ;;  %v97_v7 = vld [vmem:[%s8596_s0 + $0x100] sm:$0xff]  ;;  %vm136_vm9 = vcmp.gt.f32.partialorder %v100_v14, 0.0  ;;  %v4701_v23 = vmov 0.0  }
  0x2a   :  { %v4922_v48 = vld [vmem:[#allocation2 + $0xc0] sm:$0xff]  ;;  %v4926_v49 = vld [vmem:[#allocation2 + $0xd0] sm:$0xff]  ;;  %242 = vst.msk [vmem:[#allocation2 + $0xf8] sm:$0x1] %vm211_vm1, %v204_v63  ;;  %v98_v8 = vld [vmem:[%s8596_s0 + $0x108] sm:$0x1] }
  0x2b   :  { %423 = vst.msk [vmem:[#allocation4 + $0x58] sm:$0xff] %vm209_vm0, %v4922_v48  ;;  %424 = vst.msk [vmem:[#allocation4 + $0x60] sm:$0xff] %vm209_vm0, %v4926_v49  ;;  %vm133_vm6 = vcmp.gt.f32.partialorder %v97_v7, 0.0  ;;  %vm134_vm7 = vcmp.gt.f32.partialorder %v98_v8, 0.0  ;;  %v169_v10 = vmul.f32 0.2, %v97_v7 }
  0x2c   :  { %337 = vrot.lane.b32.xlu0 %v4853_v9, %s4699_s30  ;;  %v99_v9 = vld [vmem:[%s8596_s0 + $0x110] sm:$0xff]  ;;  %v170_v11 = vmul.f32 0.2, %v98_v8  ;;  %v172_v17 = vmul.f32 0.2, %v100_v14  ;;  %v431_v20 = vld [vmem:[#allocation2 + $0xc1] sm:$0xff] }
  0x2d   :  { %339 = vrot.lane.b32.xlu1 %v4859_v13, %s4699_s30  ;;  %v4954_v1 = vld [vmem:[#allocation2 + $0xe0] sm:$0xff]  ;;  %v526_v12 = vld [vmem:[#allocation2 + $0xb1] sm:$0xff]  ;;  %vm135_vm8 = vcmp.gt.f32.partialorder %v99_v9, 0.0  ;;  %v171_v13 = vmul.f32 0.2, %v99_v9  ;;  %v205_v15 = vsel %vm133_vm6, %v97_v7, %v169_v10  ;;  %45 = vst.msk [vmem:[#allocation3 + $0xa0] sm:$0xff] %vm24_vm10, %v4701_v23 }
  0x2e   :  { %425 = vst.msk [vmem:[#allocation4 + $0x68] sm:$0xff] %vm209_vm0, %v4954_v1  ;;  %v206_v16 = vsel %vm134_vm7, %v98_v8, %v170_v11  ;;  %243 = vst.msk [vmem:[#allocation2 + $0x100] sm:$0xff] %vm209_vm0, %v205_v15  ;;  %v208_v19 = vsel %vm136_vm9, %v100_v14, %v172_v17  ;;  %v528_v22 = vld [vmem:[#allocation2 + $0xd1] sm:$0xff]  ;;  %v433_v24 = vld [vmem:[#allocation2 + $0xe1] sm:$0xff]  ;;  %s4702_s0 = smov 8   ;;  %vm402_vm11 = vcmask 523648  }
  0x2f   :  { %244 = vst.msk [vmem:[#allocation2 + $0x108] sm:$0x1] %vm211_vm1, %v206_v16  ;;  %v207_v18 = vsel %vm135_vm8, %v99_v9, %v171_v13  ;;  %246 = vst.msk [vmem:[#allocation2 + $0x118] sm:$0x1] %vm211_vm1, %v208_v19  ;;  %vm353_vm1 = vcmask 392448   ;;  %vm597_vm12 = vcmask 523264  }
  0x30   :  { %386 = vrot.lane.b32.xlu0 %v268_v46, %s4700_s24  ;;  %v4961_v3 = vld [vmem:[#allocation2 + $0xf0] sm:$0xff]  ;;  %245 = vst.msk [vmem:[#allocation2 + $0x110] sm:$0xff] %vm209_vm0, %v207_v18  ;;  %vm882_vm13 = vcmask 130112   ;;  %vm931_vm14 = vcmask 195712   ;;  %vm980_vm15 = vcmask 261312   ;;  %vm1170_vm2 = vcmask 261120  }
  0x31   :  { %388 = vrot.lane.b32.xlu1 %v367_v51, %s4700_s24  ;;  %426 = vst.msk [vmem:[#allocation4 + $0x70] sm:$0xff] %vm209_vm0, %v4961_v3  ;;  %v530_v25 = vld [vmem:[#allocation2 + $0xf1] sm:$0xff]  ;;  %vm1399_vm3 = vcmask 64544   ;;  %vm3327_vm4 = vcmask 31744  }
  0x32   :  { %46 = vst.msk [vmem:[#allocation3 + $0xa8] sm:$0xff] %vm24_vm10, %v4701_v23  ;;  %25 = vst.msk [vmem:[#allocation3] sm:$0xff] %vm24_vm10, %v4701_v23 }
  0x33   :  { %26 = vst.msk [vmem:[#allocation3 + $0x8] sm:$0xff] %vm24_vm10, %v4701_v23  ;;  %27 = vst.msk [vmem:[#allocation3 + $0x10] sm:$0xff] %vm24_vm10, %v4701_v23 }
  0x34   :  { %291 = vrot.lane.b32.xlu0 %v367_v51, %s4698_s27  ;;  %28 = vst.msk [vmem:[#allocation3 + $0x18] sm:$0xff] %vm24_vm10, %v4701_v23  ;;  %29 = vst.msk [vmem:[#allocation3 + $0x20] sm:$0xff] %vm24_vm10, %v4701_v23 }
  0x35   :  { %293 = vrot.lane.b32.xlu1 %v270_v62, %s4698_s27  ;;  %30 = vst.msk [vmem:[#allocation3 + $0x28] sm:$0xff] %vm24_vm10, %v4701_v23  ;;  %31 = vst.msk [vmem:[#allocation3 + $0x30] sm:$0xff] %vm24_vm10, %v4701_v23 }
  0x36   :  { %32 = vst.msk [vmem:[#allocation3 + $0x38] sm:$0xff] %vm24_vm10, %v4701_v23  ;;  %33 = vst.msk [vmem:[#allocation3 + $0x40] sm:$0xff] %vm24_vm10, %v4701_v23  ;;  %v435_v26 = vld [vmem:[#allocation2 + $0x101] sm:$0xff] }
  0x37   :  { %34 = vst.msk [vmem:[#allocation3 + $0x48] sm:$0xff] %vm24_vm10, %v4701_v23  ;;  %35 = vst.msk [vmem:[#allocation3 + $0x50] sm:$0xff] %vm24_vm10, %v4701_v23  ;;  %v484_v27 = vld [vmem:[#allocation2 + $0x110] sm:$0xff] }
  0x38   :  { %341 = vrot.lane.b32.xlu0 %v4873_v21, %s4699_s30  ;;  %v483_v21 = vld [vmem:[#allocation2 + $0x100] sm:$0xff]  ;;  %36 = vst.msk [vmem:[#allocation3 + $0x58] sm:$0xff] %vm24_vm10, %v4701_v23  ;;  %37 = vst.msk [vmem:[#allocation3 + $0x60] sm:$0xff] %vm24_vm10, %v4701_v23  ;;  %v532_v28 = vld [vmem:[#allocation2 + $0x111] sm:$0xff] }
  0x39   :  { %343 = vrot.lane.b32.xlu1 %v320_v0, %s4699_s30  ;;  %427 = vst.msk [vmem:[#allocation4 + $0x78] sm:$0xff] %vm209_vm0, %v483_v21  ;;  %v1006_v29 = vld [vmem:[#allocation3 + $0xa1] sm:$0xff]  ;;  %vm303_vm0 = vcmask 261248  }
  0x3a   :  { %38 = vst.msk [vmem:[#allocation3 + $0x68] sm:$0xff] %vm24_vm10, %v4701_v23  ;;  %39 = vst.msk [vmem:[#allocation3 + $0x70] sm:$0xff] %vm24_vm10, %v4701_v23  ;;  %v1467_v30 = vld [vmem:[#allocation3 + $0x2] sm:$0xff] }
  0x3b   :  { %40 = vst.msk [vmem:[#allocation3 + $0x78] sm:$0xff] %vm24_vm10, %v4701_v23  ;;  %41 = vst.msk [vmem:[#allocation3 + $0x80] sm:$0xff] %vm24_vm10, %v4701_v23 }
  0x3c   :  { %390 = vrot.lane.b32.xlu0 %v270_v62, %s4700_s24  ;;  %42 = vst.msk [vmem:[#allocation3 + $0x88] sm:$0xff] %vm24_vm10, %v4701_v23  ;;  %43 = vst.msk [vmem:[#allocation3 + $0x90] sm:$0xff] %vm24_vm10, %v4701_v23 }
  0x3d   :  { %392 = vrot.lane.b32.xlu1 %v369_v4, %s4700_s24  ;;  %44 = vst.msk [vmem:[#allocation3 + $0x98] sm:$0xff] %vm24_vm10, %v4701_v23  ;;  %47 = vst.msk [vmem:[#allocation3 + $0xb0] sm:$0xff] %vm24_vm10, %v4701_v23 }
  0x3e   :  { %48 = vst.msk [vmem:[#allocation3 + $0xb8] sm:$0xff] %vm24_vm10, %v4701_v23  ;;  %49 = vst.msk [vmem:[#allocation3 + $0xc0] sm:$0xff] %vm24_vm10, %v4701_v23 }
  0x3f   :  { %50 = vst.msk [vmem:[#allocation3 + $0xc8] sm:$0xff] %vm24_vm10, %v4701_v23  ;;  %51 = vst.msk [vmem:[#allocation3 + $0xd0] sm:$0xff] %vm24_vm10, %v4701_v23 }
  0x40   :  { %444 = vrot.lane.b32.xlu0 %v428_v5, %s4698_s27  ;;  %52 = vst.msk [vmem:[#allocation3 + $0xd8] sm:$0xff] %vm24_vm10, %v4701_v23  ;;  %53 = vst.msk [vmem:[#allocation3 + $0xe0] sm:$0xff] %vm24_vm10, %v4701_v23 }
  0x41   :  { %446 = vrot.lane.b32.xlu1 %v429_v6, %s4698_s27  ;;  %54 = vst.msk [vmem:[#allocation3 + $0xe8] sm:$0xff] %vm24_vm10, %v4701_v23  ;;  %55 = vst.msk [vmem:[#allocation3 + $0xf0] sm:$0xff] %vm24_vm10, %v4701_v23 }
  0x42   :  { %56 = vst.msk [vmem:[#allocation3 + $0xf8] sm:$0xff] %vm24_vm10, %v4701_v23  ;;  %57 = vst.msk [vmem:[#allocation3 + $0x100] sm:$0xff] %vm24_vm10, %v4701_v23 }
  0x43   :  { %58 = vst.msk [vmem:[#allocation3 + $0x108] sm:$0xff] %vm24_vm10, %v4701_v23  ;;  %59 = vst.msk [vmem:[#allocation3 + $0x110] sm:$0xff] %vm24_vm10, %v4701_v23 }
  0x44   :  { %493 = vrot.lane.b32.xlu0 %v4909_v40, %s4699_s30  ;;  %60 = vst.msk [vmem:[#allocation3 + $0x118] sm:$0xff] %vm24_vm10, %v4701_v23  ;;  %61 = vst.msk [vmem:[#allocation3 + $0x120] sm:$0xff] %vm24_vm10, %v4701_v23 }
  0x45   :  { %495 = vrot.lane.b32.xlu1 %v478_v47, %s4699_s30  ;;  %62 = vst.msk [vmem:[#allocation3 + $0x128] sm:$0xff] %vm24_vm10, %v4701_v23  ;;  %63 = vst.msk [vmem:[#allocation3 + $0x130] sm:$0xff] %vm24_vm10, %v4701_v23 }
  0x46   :  { %64 = vst.msk [vmem:[#allocation3 + $0x138] sm:$0xff] %vm24_vm10, %v4701_v23  ;;  %v5112_v23 = vld [vmem:[#allocation3 + $0x1] sm:$0xff] }
  0x48   :  { %541 = vrot.lane.b32.xlu0 %v429_v6, %s4700_s24 }
  0x49   :  { %543 = vrot.lane.b32.xlu1 %v526_v12, %s4700_s24 }
  0x4c   :  { %448 = vrot.lane.b32.xlu0 %v526_v12, %s4698_s27 }
  0x4d   :  { %450 = vrot.lane.b32.xlu1 %v431_v20, %s4698_s27 }
  0x50   :  { %497 = vrot.lane.b32.xlu0 %v4922_v48, %s4699_s30 }
  0x51   :  { %499 = vrot.lane.b32.xlu1 %v4926_v49, %s4699_s30 }
  0x54   :  { %545 = vrot.lane.b32.xlu0 %v431_v20, %s4700_s24 }
  0x55   :  { %547 = vrot.lane.b32.xlu1 %v528_v22, %s4700_s24 }
  0x58   :  { %452 = vrot.lane.b32.xlu0 %v528_v22, %s4698_s27 }
  0x59   :  { %454 = vrot.lane.b32.xlu1 %v433_v24, %s4698_s27 }
  0x5c   :  { %501 = vrot.lane.b32.xlu0 %v4954_v1, %s4699_s30 }
  0x5d   :  { %503 = vrot.lane.b32.xlu1 %v4961_v3, %s4699_s30 }
  0x60   :  { %549 = vrot.lane.b32.xlu0 %v433_v24, %s4700_s24  ;;  %v1627_v24 = vld [vmem:[#allocation3 + $0xa2] sm:$0xff] }
  0x61   :  { %551 = vrot.lane.b32.xlu1 %v530_v25, %s4700_s24 }
  0x64   :  { %456 = vrot.lane.b32.xlu0 %v530_v25, %s4698_s27  ;;  %v2185_v25 = vld [vmem:[#allocation3 + $0x91] sm:$0xff] }
  0x65   :  { %458 = vrot.lane.b32.xlu1 %v435_v26, %s4698_s27 }
  0x68   :  { %505 = vrot.lane.b32.xlu0 %v483_v21, %s4699_s30 }
  0x69   :  { %507 = vrot.lane.b32.xlu1 %v484_v27, %s4699_s30  ;;  %s4703_s30 = smov 24  }
  0x6c   :  { %553 = vrot.lane.b32.xlu0 %v435_v26, %s4700_s24  ;;  %v2137_v26 = vld [vmem:[#allocation3 + $0x90] sm:$0xff] }
  0x6d   :  { %555 = vrot.lane.b32.xlu1 %v532_v28, %s4700_s24 }
  0x70   :  { %1022 = vrot.lane.b32.xlu0 %v1006_v29, %s4702_s0 }
  0x71   :  { %858 = vrot.lane.b32.xlu1 %v5112_v23, %s4702_s0 }
  0x74   :  { %1483 = vrot.lane.b32.xlu0 %v1467_v30, %s4702_s0 }
  0x75   :  { %2208 = vrot.lane.b32.xlu1 %v2185_v25, %s4703_s30 }
  0x78   :  { %1643 = vrot.lane.b32.xlu0 %v1627_v24, %s4702_s0 }
  0x7c   :  { %2160 = vrot.lane.b32.xlu0 %v2137_v26, %s4698_s27 }
  0x82   :  { %v280_v31 = vpop.permute.xlu0 %279  ;;  %v330_v32 = vpop.permute.xlu1 %329 }
  0x83   :  { %304 = vst.msk [vmem:[#allocation4] sm:$0xff] %vm303_vm0, %v280_v31 }
  0x84   :  { %354 = vst.msk [vmem:[#allocation4] sm:$0xff] %vm353_vm1, %v330_v32 }
  0x86   :  { %v282_v33 = vpop.permute.xlu0 %281  ;;  %v332_v34 = vpop.permute.xlu1 %331 }
  0x87   :  { %305 = vst.msk [vmem:[#allocation4 + $0x8] sm:$0xff] %vm303_vm0, %v282_v33 }
  0x88   :  { %355 = vst.msk [vmem:[#allocation4 + $0x8] sm:$0xff] %vm353_vm1, %v332_v34 }
  0x8a   :  { %v379_v35 = vpop.permute.xlu0 %378 }
  0x8b   :  { %403 = vst.msk [vmem:[#allocation4] sm:$0xff] %vm402_vm11, %v379_v35  ;;  %v381_v36 = vpop.permute.xlu1 %380  ;;  %v990_v35 = vld [vmem:[#allocation3 + $0xa0] sm:$0xff] }
  0x8c   :  { %404 = vst.msk [vmem:[#allocation4 + $0x8] sm:$0xff] %vm402_vm11, %v381_v36 }
  0x8d   :  { %998 = vst.msk [vmem:[#allocation5 + $0x40] sm:$0xff] %vm24_vm10, %v990_v35 }
  0x8e   :  { %v284_v37 = vpop.permute.xlu0 %283 }
  0x8f   :  { %306 = vst.msk [vmem:[#allocation4 + $0x10] sm:$0xff] %vm303_vm0, %v284_v37  ;;  %v286_v38 = vpop.permute.xlu1 %285  ;;  %v826_v37 = vld [vmem:[#allocation3] sm:$0xff] }
  0x90   :  { %307 = vst.msk [vmem:[#allocation4 + $0x18] sm:$0xff] %vm303_vm0, %v286_v38 }
  0x91   :  { %834 = vst.msk [vmem:[#allocation5] sm:$0xff] %vm24_vm10, %v826_v37 }
  0x92   :  { %v573_v39 = vld [vmem:[#allocation4] sm:$0xff]  ;;  %v334_v40 = vpop.permute.xlu0 %333 }
  0x93   :  { %4484 = vmatprep.mubr.msk.f32.mxu0 %vm597_vm12, %v573_v39  ;;  %v574_v41 = vld [vmem:[#allocation4 + $0x8] sm:$0xff]  ;;  %356 = vst.msk [vmem:[#allocation4 + $0x10] sm:$0xff] %vm353_vm1, %v334_v40  ;;  %v336_v42 = vpop.permute.xlu1 %335 }
  0x94   :  { %4485 = vmatmul.mubr.msk.f32.vlgmr.msra.gmra.mrb[0].mxu0 %vm597_vm12, %v574_v41  ;;  %357 = vst.msk [vmem:[#allocation4 + $0x18] sm:$0xff] %vm353_vm1, %v336_v42 }
  0x96   :  { %v383_v43 = vpop.permute.xlu0 %382 }
  0x97   :  { %405 = vst.msk [vmem:[#allocation4 + $0x10] sm:$0xff] %vm402_vm11, %v383_v43  ;;  %v385_v44 = vpop.permute.xlu1 %384 }
  0x98   :  { %406 = vst.msk [vmem:[#allocation4 + $0x18] sm:$0xff] %vm402_vm11, %v385_v44 }
  0x9a   :  { %v288_v45 = vpop.permute.xlu0 %287 }
  0x9b   :  { %308 = vst.msk [vmem:[#allocation4 + $0x20] sm:$0xff] %vm303_vm0, %v288_v45  ;;  %v290_v46 = vpop.permute.xlu1 %289 }
  0x9c   :  { %309 = vst.msk [vmem:[#allocation4 + $0x28] sm:$0xff] %vm303_vm0, %v290_v46 }
  0x9e   :  { %v575_v47 = vld [vmem:[#allocation4 + $0x10] sm:$0xff]  ;;  %v338_v48 = vpop.permute.xlu0 %337 }
  0x9f   :  { %4487 = vmatprep.mubr.msk.f32.mxu0 %vm597_vm12, %v575_v47  ;;  %v576_v49 = vld [vmem:[#allocation4 + $0x18] sm:$0xff]  ;;  %358 = vst.msk [vmem:[#allocation4 + $0x20] sm:$0xff] %vm353_vm1, %v338_v48  ;;  %v340_v50 = vpop.permute.xlu1 %339 }
  0xa0   :  { %4488 = vmatmul.mubr.msk.f32.gmra.mrb[2].mxu0 %vm597_vm12, %v576_v49  ;;  %359 = vst.msk [vmem:[#allocation4 + $0x28] sm:$0xff] %vm353_vm1, %v340_v50 }
  0xa2   :  { %v387_v51 = vpop.permute.xlu0 %386 }
  0xa3   :  { %407 = vst.msk [vmem:[#allocation4 + $0x20] sm:$0xff] %vm402_vm11, %v387_v51  ;;  %v389_v52 = vpop.permute.xlu1 %388 }
  0xa4   :  { %408 = vst.msk [vmem:[#allocation4 + $0x28] sm:$0xff] %vm402_vm11, %v389_v52 }
  0xa6   :  { %v292_v53 = vpop.permute.xlu0 %291 }
  0xa7   :  { %310 = vst.msk [vmem:[#allocation4 + $0x30] sm:$0xff] %vm303_vm0, %v292_v53  ;;  %v294_v54 = vpop.permute.xlu1 %293 }
  0xa8   :  { %311 = vst.msk [vmem:[#allocation4 + $0x38] sm:$0xff] %vm303_vm0, %v294_v54 }
  0xaa   :  { %v577_v55 = vld [vmem:[#allocation4 + $0x20] sm:$0xff]  ;;  %v342_v56 = vpop.permute.xlu0 %341 }
  0xab   :  { %4490 = vmatprep.mubr.msk.f32.mxu0 %vm597_vm12, %v577_v55  ;;  %v578_v57 = vld [vmem:[#allocation4 + $0x28] sm:$0xff]  ;;  %360 = vst.msk [vmem:[#allocation4 + $0x30] sm:$0xff] %vm353_vm1, %v342_v56  ;;  %v344_v58 = vpop.permute.xlu1 %343 }
  0xac   :  { %4491 = vmatmul.mubr.msk.f32.gmra.mrb[4].mxu0 %vm597_vm12, %v578_v57  ;;  %361 = vst.msk [vmem:[#allocation4 + $0x38] sm:$0xff] %vm353_vm1, %v344_v58  ;;  %v1166_v58 = vld [vmem:[%s8598_s3] sm:$0xff] }
  0xae   :  { %v391_v59 = vpop.permute.xlu0 %390 }
  0xaf   :  { %409 = vst.msk [vmem:[#allocation4 + $0x30] sm:$0xff] %vm402_vm11, %v391_v59  ;;  %v393_v60 = vpop.permute.xlu1 %392  ;;  %v1167_v59 = vld [vmem:[%s8598_s3 + $0x8] sm:$0xff] }
  0xb0   :  { %410 = vst.msk [vmem:[#allocation4 + $0x38] sm:$0xff] %vm402_vm11, %v393_v60  ;;  %v4652_v60 = vpack.c.bf16 %v1167_v59, %v1166_v58 }
  0xb2   :  { %v445_v61 = vpop.permute.xlu0 %444  ;;  %4653 = vmatprep.subr.bf16.mxu0 %v4652_v60  ;;  %4684 = vmatprep.subr.bf16.mxu1 %v4652_v60 }
  0xb3   :  { %468 = vst.msk [vmem:[#allocation4 + $0x40] sm:$0xff] %vm303_vm0, %v445_v61  ;;  %v447_v62 = vpop.permute.xlu1 %446  ;;  %4655 = vmatpush3.bf16.msra.mxu0 %v4652_v60  ;;  %4686 = vmatpush3.bf16.msra.mxu1 %v4652_v60 }
  0xb4   :  { %469 = vst.msk [vmem:[#allocation4 + $0x48] sm:$0xff] %vm303_vm0, %v447_v62 }
  0xb6   :  { %v579_v63 = vld [vmem:[#allocation4 + $0x30] sm:$0xff]  ;;  %v494_v0 = vpop.permute.xlu0 %493 }
  0xb7   :  { %4493 = vmatprep.mubr.msk.f32.mxu0 %vm597_vm12, %v579_v63  ;;  %v580_v1 = vld [vmem:[#allocation4 + $0x38] sm:$0xff]  ;;  %517 = vst.msk [vmem:[#allocation4 + $0x40] sm:$0xff] %vm353_vm1, %v494_v0  ;;  %v496_v2 = vpop.permute.xlu1 %495 }
  0xb8   :  { %4494 = vmatmul.mubr.msk.f32.gmra.mrb[6].mxu0 %vm597_vm12, %v580_v1  ;;  %518 = vst.msk [vmem:[#allocation4 + $0x48] sm:$0xff] %vm353_vm1, %v496_v2  ;;  %v1168_v1 = vld [vmem:[%s8598_s3 + $0x10] sm:$0xff]  ;;  %v1169_v2 = vld [vmem:[%s8598_s3 + $0x18] sm:$0xff] }
  0xba   :  { %v542_v3 = vpop.permute.xlu0 %541 }
  0xbb   :  { %565 = vst.msk [vmem:[#allocation4 + $0x40] sm:$0xff] %vm402_vm11, %v542_v3  ;;  %v544_v4 = vpop.permute.xlu1 %543 }
  0xbc   :  { %566 = vst.msk [vmem:[#allocation4 + $0x48] sm:$0xff] %vm402_vm11, %v544_v4 }
  0xbe   :  { %v449_v5 = vpop.permute.xlu0 %448 }
  0xbf   :  { %470 = vst.msk [vmem:[#allocation4 + $0x50] sm:$0xff] %vm303_vm0, %v449_v5  ;;  %v451_v6 = vpop.permute.xlu1 %450  ;;  %v4656_v5 = vpack.c.bf16 %v1169_v2, %v1168_v1 }
  0xc0   :  { %471 = vst.msk [vmem:[#allocation4 + $0x58] sm:$0xff] %vm303_vm0, %v451_v6 }
  0xc1   :  { %4657 = vmatprep.subr.bf16.mxu0 %v4656_v5  ;;  %4685 = vmatprep.subr.bf16.mxu1 %v4656_v5 }
  0xc2   :  { %v581_v7 = vld [vmem:[#allocation4 + $0x40] sm:$0xff]  ;;  %v498_v8 = vpop.permute.xlu0 %497  ;;  %4659 = vmatpush3.bf16.msra.mxu0 %v4656_v5  ;;  %4687 = vmatpush3.bf16.msra.mxu1 %v4656_v5 }
  0xc3   :  { %4496 = vmatprep.mubr.msk.f32.mxu0 %vm597_vm12, %v581_v7  ;;  %v582_v9 = vld [vmem:[#allocation4 + $0x48] sm:$0xff]  ;;  %519 = vst.msk [vmem:[#allocation4 + $0x50] sm:$0xff] %vm353_vm1, %v498_v8  ;;  %v500_v10 = vpop.permute.xlu1 %499 }
  0xc4   :  { %4497 = vmatmul.mubr.msk.f32.gmra.mrb[8].mxu0 %vm597_vm12, %v582_v9  ;;  %520 = vst.msk [vmem:[#allocation4 + $0x58] sm:$0xff] %vm353_vm1, %v500_v10 }
  0xc6   :  { %v546_v11 = vpop.permute.xlu0 %545 }
  0xc7   :  { %567 = vst.msk [vmem:[#allocation4 + $0x50] sm:$0xff] %vm402_vm11, %v546_v11  ;;  %v548_v12 = vpop.permute.xlu1 %547 }
  0xc8   :  { %568 = vst.msk [vmem:[#allocation4 + $0x58] sm:$0xff] %vm402_vm11, %v548_v12 }
  0xca   :  { %v453_v13 = vpop.permute.xlu0 %452 }
  0xcb   :  { %472 = vst.msk [vmem:[#allocation4 + $0x60] sm:$0xff] %vm303_vm0, %v453_v13  ;;  %v455_v14 = vpop.permute.xlu1 %454 }
  0xcc   :  { %473 = vst.msk [vmem:[#allocation4 + $0x68] sm:$0xff] %vm303_vm0, %v455_v14 }
  0xce   :  { %v583_v15 = vld [vmem:[#allocation4 + $0x50] sm:$0xff]  ;;  %v502_v16 = vpop.permute.xlu0 %501 }
  0xcf   :  { %4499 = vmatprep.mubr.msk.f32.mxu0 %vm597_vm12, %v583_v15  ;;  %v584_v17 = vld [vmem:[#allocation4 + $0x58] sm:$0xff]  ;;  %521 = vst.msk [vmem:[#allocation4 + $0x60] sm:$0xff] %vm353_vm1, %v502_v16  ;;  %v504_v18 = vpop.permute.xlu1 %503 }
  0xd0   :  { %4500 = vmatmul.mubr.msk.f32.gmra.mrb[10].mxu0 %vm597_vm12, %v584_v17  ;;  %522 = vst.msk [vmem:[#allocation4 + $0x68] sm:$0xff] %vm353_vm1, %v504_v18 }
  0xd2   :  { %v550_v19 = vpop.permute.xlu0 %549 }
  0xd3   :  { %569 = vst.msk [vmem:[#allocation4 + $0x60] sm:$0xff] %vm402_vm11, %v550_v19  ;;  %v552_v20 = vpop.permute.xlu1 %551 }
  0xd4   :  { %570 = vst.msk [vmem:[#allocation4 + $0x68] sm:$0xff] %vm402_vm11, %v552_v20 }
  0xd6   :  { %v457_v27 = vpop.permute.xlu0 %456 }
  0xd7   :  { %474 = vst.msk [vmem:[#allocation4 + $0x70] sm:$0xff] %vm303_vm0, %v457_v27  ;;  %v459_v28 = vpop.permute.xlu1 %458 }
  0xd8   :  { %475 = vst.msk [vmem:[#allocation4 + $0x78] sm:$0xff] %vm303_vm0, %v459_v28 }
  0xda   :  { %v585_v21 = vld [vmem:[#allocation4 + $0x60] sm:$0xff]  ;;  %v506_v29 = vpop.permute.xlu0 %505 }
  0xdb   :  { %4502 = vmatprep.mubr.msk.f32.mxu0 %vm597_vm12, %v585_v21  ;;  %v586_v22 = vld [vmem:[#allocation4 + $0x68] sm:$0xff]  ;;  %523 = vst.msk [vmem:[#allocation4 + $0x70] sm:$0xff] %vm353_vm1, %v506_v29  ;;  %v508_v30 = vpop.permute.xlu1 %507 }
  0xdc   :  { %4503 = vmatmul.mubr.msk.f32.gmra.mrb[12].mxu0 %vm597_vm12, %v586_v22  ;;  %524 = vst.msk [vmem:[#allocation4 + $0x78] sm:$0xff] %vm353_vm1, %v508_v30 }
  0xde   :  { %v554_v31 = vpop.permute.xlu0 %553 }
  0xdf   :  { %571 = vst.msk [vmem:[#allocation4 + $0x70] sm:$0xff] %vm402_vm11, %v554_v31  ;;  %v556_v32 = vpop.permute.xlu1 %555 }
  0xe0   :  { %572 = vst.msk [vmem:[#allocation4 + $0x78] sm:$0xff] %vm402_vm11, %v556_v32 }
  0xe2   :  { %v1023_v36 = vpop.permute.xlu0 %1022 }
  0xe3   :  { %1046 = vst.msk [vmem:[#allocation5 + $0x40] sm:$0xff] %vm882_vm13, %v1023_v36  ;;  %v859_v38 = vpop.permute.xlu1 %858 }
  0xe4   :  { %883 = vst.msk [vmem:[#allocation5] sm:$0xff] %vm882_vm13, %v859_v38 }
  0xe6   :  { %v587_v33 = vld [vmem:[#allocation4 + $0x70] sm:$0xff]  ;;  %v5312_v35 = vpop.permute.xlu0 %1483 }
  0xe7   :  { %v588_v34 = vld [vmem:[#allocation4 + $0x78] sm:$0xff]  ;;  %4505 = vmatprep.mubr.msk.f32.mxu0 %vm597_vm12, %v587_v33 }
  0xe8   :  { %4506 = vmatmul.mubr.msk.f32.gmra.mrb[14].mxu0 %vm597_vm12, %v588_v34 }
  0xea   :  { %v5320_v37 = vpop.permute.xlu0 %1643 }
 0x167   :  { %v4486_v39 = vpop.f32.mrb[0].mxu0 }
 0x168   :  { %v792_v40 = vmax.f32 %v4486_v39, 0.0  ;;  %v712_v41 = vpop.f32.mrb[1].mxu0  ;;  %v5330_v39 = vpop.permute.xlu1 %2208 }
 0x169   :  { %v791_v42 = vmax.f32 %v712_v41, 0.0 }
 0x16a   :  { %810 = vst.msk [vmem:[#allocation3 + $0x21] sm:$0xff] %vm24_vm10, %v792_v40  ;;  %v5332_v40 = vpop.permute.xlu0 %2160 }
 0x16b   :  { %809 = vst.msk [vmem:[#allocation3 + $0x11] sm:$0xff] %vm24_vm10, %v791_v42 }
 0x171   :  { %v5133_v43 = vld [vmem:[#allocation3 + $0x21] sm:$0xff] }
 0x172   :  { %v5135_v44 = vld [vmem:[#allocation3 + $0x20] sm:$0xff]  ;;  %958 = vrot.lane.b32.xlu1 %v5133_v43, %s4703_s30  ;;  %v5141_v45 = vld [vmem:[#allocation3 + $0x10] sm:$0xff] }
 0x173   :  { %909 = vrot.lane.b32.xlu0 %v5135_v44, %s4698_s27  ;;  %836 = vst.msk [vmem:[#allocation5 + $0x10] sm:$0xff] %vm24_vm10, %v5135_v44  ;;  %v4489_v46 = vpop.f32.mrb[2].mxu0  ;;  %835 = vst.msk [vmem:[#allocation5 + $0x8] sm:$0xff] %vm24_vm10, %v5141_v45  ;;  %v1469_v49 = vld [vmem:[#allocation3 + $0x22] sm:$0xff]  ;;  %v5166_v56 = vld [vmem:[#allocation3 + $0x11] sm:$0xff] }
 0x174   :  { %v794_v47 = vmax.f32 %v4489_v46, 0.0  ;;  %v722_v48 = vpop.f32.mrb[3].mxu0  ;;  %v1563_v61 = vld [vmem:[#allocation3 + $0x12] sm:$0xff] }
 0x175   :  { %v793_v50 = vmax.f32 %v722_v48, 0.0 }
 0x176   :  { %862 = vrot.lane.b32.xlu1 %v5133_v43, %s4702_s0  ;;  %812 = vst.msk [vmem:[#allocation3 + $0x41] sm:$0xff] %vm24_vm10, %v794_v47 }
 0x177   :  { %1487 = vrot.lane.b32.xlu0 %v1469_v49, %s4702_s0  ;;  %811 = vst.msk [vmem:[#allocation3 + $0x31] sm:$0xff] %vm24_vm10, %v793_v50 }
 0x17a   :  { %1533 = vrot.lane.b32.xlu1 %v5133_v43, %s4698_s27 }
 0x17b   :  { %2099 = vrot.lane.b32.xlu0 %v5133_v43, %s4702_s0 }
 0x17d   :  { %v5156_v51 = vld [vmem:[#allocation3 + $0x40] sm:$0xff] }
 0x17e   :  { %1581 = vrot.lane.b32.xlu1 %v1469_v49, %s4703_s30  ;;  %v5160_v52 = vld [vmem:[#allocation3 + $0x30] sm:$0xff]  ;;  %838 = vst.msk [vmem:[#allocation5 + $0x20] sm:$0xff] %vm24_vm10, %v5156_v51  ;;  %v1471_v7 = vld [vmem:[#allocation3 + $0x42] sm:$0xff] }
 0x17f   :  { %2715 = vrot.lane.b32.xlu0 %v1469_v49, %s4702_s0  ;;  %v4492_v53 = vpop.f32.mrb[4].mxu0  ;;  %837 = vst.msk [vmem:[#allocation5 + $0x18] sm:$0xff] %vm24_vm10, %v5160_v52  ;;  %v5209_v8 = vld [vmem:[#allocation3 + $0x41] sm:$0xff]  ;;  %v5223_v14 = vld [vmem:[#allocation3 + $0x31] sm:$0xff] }
 0x180   :  { %v796_v54 = vmax.f32 %v4492_v53, 0.0  ;;  %v732_v55 = vpop.f32.mrb[5].mxu0  ;;  %v1565_v20 = vld [vmem:[#allocation3 + $0x32] sm:$0xff] }
 0x181   :  { %v795_v57 = vmax.f32 %v732_v55, 0.0 }
 0x182   :  { %2146 = vrot.lane.b32.xlu1 %v5135_v44, %s4698_s27  ;;  %814 = vst.msk [vmem:[#allocation3 + $0x61] sm:$0xff] %vm24_vm10, %v796_v54 }
 0x183   :  { %860 = vrot.lane.b32.xlu0 %v5166_v56, %s4702_s0  ;;  %813 = vst.msk [vmem:[#allocation3 + $0x51] sm:$0xff] %vm24_vm10, %v795_v57 }
 0x186   :  { %2194 = vrot.lane.b32.xlu1 %v5133_v43, %s4703_s30 }
 0x187   :  { %1531 = vrot.lane.b32.xlu0 %v5166_v56, %s4698_s27 }
 0x189   :  { %v5184_v62 = vld [vmem:[#allocation3 + $0x60] sm:$0xff] }
 0x18a   :  { %2761 = vrot.lane.b32.xlu1 %v5133_v43, %s4698_s27  ;;  %v5189_v63 = vld [vmem:[#allocation3 + $0x50] sm:$0xff]  ;;  %840 = vst.msk [vmem:[#allocation5 + $0x30] sm:$0xff] %vm24_vm10, %v5184_v62  ;;  %v5259_v25 = vld [vmem:[#allocation3 + $0x61] sm:$0xff] }
 0x18b   :  { %1579 = vrot.lane.b32.xlu0 %v1563_v61, %s4703_s30  ;;  %v4495_v0 = vpop.f32.mrb[6].mxu0  ;;  %839 = vst.msk [vmem:[#allocation5 + $0x28] sm:$0xff] %vm24_vm10, %v5189_v63  ;;  %v5270_v28 = vld [vmem:[#allocation3 + $0x62] sm:$0xff]  ;;  %v5282_v31 = vld [vmem:[#allocation3 + $0x51] sm:$0xff] }
 0x18c   :  { %v798_v3 = vmax.f32 %v4495_v0, 0.0  ;;  %v742_v4 = vpop.f32.mrb[7].mxu0  ;;  %v5299_v34 = vld [vmem:[#allocation3 + $0x52] sm:$0xff]  ;;  %v4244_v0 = vld [vmem:[%s8598_s3 + $0x48] sm:$0xff] }
 0x18d   :  { %v797_v6 = vmax.f32 %v742_v4, 0.0 }
 0x18e   :  { %2809 = vrot.lane.b32.xlu1 %v1469_v49, %s4703_s30  ;;  %816 = vst.msk [vmem:[#allocation3 + $0x81] sm:$0xff] %vm24_vm10, %v798_v3 }
 0x18f   :  { %913 = vrot.lane.b32.xlu0 %v5156_v51, %s4698_s27  ;;  %815 = vst.msk [vmem:[#allocation3 + $0x71] sm:$0xff] %vm24_vm10, %v797_v6 }
 0x192   :  { %907 = vrot.lane.b32.xlu1 %v5141_v45, %s4698_s27 }
 0x193   :  { %1491 = vrot.lane.b32.xlu0 %v1471_v7, %s4702_s0 }
 0x195   :  { %v5314_v36 = vld [vmem:[#allocation3 + $0x81] sm:$0xff] }
 0x196   :  { %956 = vrot.lane.b32.xlu1 %v5166_v56, %s4703_s30  ;;  %v5215_v9 = vld [vmem:[#allocation3 + $0x70] sm:$0xff] }
 0x197   :  { %2103 = vrot.lane.b32.xlu0 %v5209_v8, %s4702_s0  ;;  %v4498_v10 = vpop.f32.mrb[8].mxu0  ;;  %841 = vst.msk [vmem:[#allocation5 + $0x38] sm:$0xff] %vm24_vm10, %v5215_v9  ;;  %v5325_v38 = vld [vmem:[#allocation3 + $0x71] sm:$0xff] }
 0x198   :  { %v800_v11 = vmax.f32 %v4498_v10, 0.0  ;;  %v752_v12 = vpop.f32.mrb[9].mxu0  ;;  %v5338_v46 = vld [vmem:[#allocation3 + $0x72] sm:$0xff] }
 0x199   :  { %v799_v13 = vmax.f32 %v752_v12, 0.0 }
 0x19a   :  { %1485 = vrot.lane.b32.xlu1 %v1563_v61, %s4702_s0  ;;  %819 = vst.msk [vmem:[#allocation3 + $0xc1] sm:$0xff] %vm24_vm10, %v800_v11 }
 0x19b   :  { %2719 = vrot.lane.b32.xlu0 %v1471_v7, %s4702_s0  ;;  %818 = vst.msk [vmem:[#allocation3 + $0xb1] sm:$0xff] %vm24_vm10, %v799_v13 }
 0x19e   :  { %2097 = vrot.lane.b32.xlu1 %v5166_v56, %s4702_s0 }
 0x19f   :  { %864 = vrot.lane.b32.xlu0 %v5223_v14, %s4702_s0 }
 0x1a1   :  { %v5229_v15 = vld [vmem:[#allocation3 + $0xc0] sm:$0xff] }
 0x1a2   :  { %2713 = vrot.lane.b32.xlu1 %v1563_v61, %s4702_s0  ;;  %1000 = vst.msk [vmem:[#allocation5 + $0x50] sm:$0xff] %vm24_vm10, %v5229_v15  ;;  %v5236_v17 = vld [vmem:[#allocation3 + $0xb0] sm:$0xff]  ;;  %v5352_v55 = vld [vmem:[#allocation3 + $0xc1] sm:$0xff] }
 0x1a3   :  { %1535 = vrot.lane.b32.xlu0 %v5223_v14, %s4698_s27  ;;  %v4501_v16 = vpop.f32.mrb[10].mxu0  ;;  %999 = vst.msk [vmem:[#allocation5 + $0x48] sm:$0xff] %vm24_vm10, %v5236_v17  ;;  %v4243_v61 = vld [vmem:[%s8598_s3 + $0x40] sm:$0xff]  ;;  %v1054_v13 = vld [vmem:[#allocation3 + $0xb0] sm:$0xff] }
 0x1a4   :  { %v802_v18 = vmax.f32 %v4501_v16, 0.0  ;;  %v762_v19 = vpop.f32.mrb[11].mxu0  ;;  %v5369_v1 = vpack.c.bf16 %v4244_v0, %v4243_v61  ;;  %v1724_v4 = vld [vmem:[#allocation3 + $0xc2] sm:$0xff] }
 0x1a5   :  { %v801_v21 = vmax.f32 %v762_v19, 0.0  ;;  %v5409_v19 = vld [vmem:[#allocation3 + $0xb1] sm:$0xff] }
 0x1a6   :  { %962 = vrot.lane.b32.xlu1 %v5209_v8, %s4703_s30  ;;  %821 = vst.msk [vmem:[#allocation3 + $0xe1] sm:$0xff] %vm24_vm10, %v802_v18  ;;  %4669 = vmatprep.subr.bf16.mxu0 %v5369_v1 }
 0x1a7   :  { %1583 = vrot.lane.b32.xlu0 %v1565_v20, %s4703_s30  ;;  %820 = vst.msk [vmem:[#allocation3 + $0xd1] sm:$0xff] %vm24_vm10, %v801_v21 }
 0x1aa   :  { %866 = vrot.lane.b32.xlu1 %v5209_v8, %s4702_s0 }
 0x1ab   :  { %2148 = vrot.lane.b32.xlu0 %v5160_v52, %s4698_s27 }
 0x1ad   :  { %v5249_v22 = vld [vmem:[#allocation3 + $0xe0] sm:$0xff] }
 0x1ae   :  { %1537 = vrot.lane.b32.xlu1 %v5209_v8, %s4698_s27  ;;  %v5255_v24 = vld [vmem:[#allocation3 + $0xd0] sm:$0xff]  ;;  %1002 = vst.msk [vmem:[#allocation5 + $0x60] sm:$0xff] %vm24_vm10, %v5249_v22 }
 0x1af   :  { %2763 = vrot.lane.b32.xlu0 %v5223_v14, %s4698_s27  ;;  %1001 = vst.msk [vmem:[#allocation5 + $0x58] sm:$0xff] %vm24_vm10, %v5255_v24  ;;  %v4504_v26 = vpop.f32.mrb[12].mxu0 }
 0x1b0   :  { %v804_v27 = vmax.f32 %v4504_v26, 0.0  ;;  %v772_v29 = vpop.f32.mrb[13].mxu0  ;;  %v5418_v26 = vld [vmem:[#allocation3 + $0xb2] sm:$0xff] }
 0x1b1   :  { %v803_v30 = vmax.f32 %v772_v29, 0.0 }
 0x1b2   :  { %1585 = vrot.lane.b32.xlu1 %v1471_v7, %s4703_s30  ;;  %823 = vst.msk [vmem:[#allocation3 + $0x101] sm:$0xff] %vm24_vm10, %v804_v27 }
 0x1b3   :  { %870 = vrot.lane.b32.xlu0 %v5259_v25, %s4702_s0  ;;  %822 = vst.msk [vmem:[#allocation3 + $0xf1] sm:$0xff] %vm24_vm10, %v803_v30  ;;  %v4245_v30 = vld [vmem:[%s8598_s3 + $0x50] sm:$0xff] }
 0x1b6   :  { %2150 = vrot.lane.b32.xlu1 %v5156_v51, %s4698_s27 }
 0x1b7   :  { %917 = vrot.lane.b32.xlu0 %v5184_v62, %s4698_s27 }
 0x1b9   :  { %v5287_v32 = vld [vmem:[#allocation3 + $0x100] sm:$0xff] }
 0x1ba   :  { %2198 = vrot.lane.b32.xlu1 %v5209_v8, %s4703_s30  ;;  %1004 = vst.msk [vmem:[#allocation5 + $0x70] sm:$0xff] %vm24_vm10, %v5287_v32  ;;  %v5291_v33 = vld [vmem:[#allocation3 + $0xf0] sm:$0xff] }
 0x1bb   :  { %1495 = vrot.lane.b32.xlu0 %v5270_v28, %s4702_s0  ;;  %1003 = vst.msk [vmem:[#allocation5 + $0x68] sm:$0xff] %vm24_vm10, %v5291_v33  ;;  %v4507_v47 = vpop.f32.mrb[14].mxu0 }
 0x1bc   :  { %v806_v50 = vmax.f32 %v4507_v47, 0.0  ;;  %v782_v53 = vpop.f32.mrb[15].mxu0 }
 0x1bd   :  { %v805_v54 = vmax.f32 %v782_v53, 0.0  ;;  %v5443_v53 = vld [vmem:[#allocation3 + $0x80] sm:$0xff] }
 0x1be   :  { %2765 = vrot.lane.b32.xlu1 %v5209_v8, %s4698_s27  ;;  %825 = vst.msk [vmem:[#allocation3 + $0x121] sm:$0xff] %vm24_vm10, %v806_v50 }
 0x1bf   :  { %2107 = vrot.lane.b32.xlu0 %v5259_v25, %s4702_s0  ;;  %824 = vst.msk [vmem:[#allocation3 + $0x111] sm:$0xff] %vm24_vm10, %v805_v54 }
 0x1c2   :  { %2813 = vrot.lane.b32.xlu1 %v1471_v7, %s4703_s30 }
 0x1c3   :  { %868 = vrot.lane.b32.xlu0 %v5282_v31, %s4702_s0 }
 0x1c6   :  { %911 = vrot.lane.b32.xlu1 %v5160_v52, %s4698_s27 }
 0x1c7   :  { %1539 = vrot.lane.b32.xlu0 %v5282_v31, %s4698_s27 }
 0x1ca   :  { %960 = vrot.lane.b32.xlu1 %v5223_v14, %s4703_s30 }
 0x1cb   :  { %1587 = vrot.lane.b32.xlu0 %v5299_v34, %s4703_s30 }
 0x1ce   :  { %1489 = vrot.lane.b32.xlu1 %v1565_v20, %s4702_s0 }
 0x1cf   :  { %2152 = vrot.lane.b32.xlu0 %v5189_v63, %s4698_s27 }
 0x1d2   :  { %2196 = vrot.lane.b32.xlu1 %v5223_v14, %s4703_s30 }
 0x1d3   :  { %2767 = vrot.lane.b32.xlu0 %v5282_v31, %s4698_s27 }
 0x1d6   :  { %2101 = vrot.lane.b32.xlu1 %v5223_v14, %s4702_s0 }
 0x1d7   :  { %2111 = vrot.lane.b32.xlu0 %v5314_v36, %s4702_s0 }
 0x1da   :  { %2811 = vrot.lane.b32.xlu1 %v1565_v20, %s4703_s30 }
 0x1db   :  { %919 = vrot.lane.b32.xlu0 %v5215_v9, %s4698_s27 }
 0x1de   :  { %2717 = vrot.lane.b32.xlu1 %v1565_v20, %s4702_s0 }
 0x1df   :  { %968 = vrot.lane.b32.xlu0 %v5325_v38, %s4703_s30 }
 0x1e2   :  { %966 = vrot.lane.b32.xlu1 %v5259_v25, %s4703_s30 }
 0x1e3   :  { %1543 = vrot.lane.b32.xlu0 %v5325_v38, %s4698_s27 }
 0x1e4   :  { %v959_v41 = vpop.permute.xlu1 %958 }
 0x1e5   :  { %v910_v42 = vpop.permute.xlu0 %909 }
 0x1e6   :  { %1541 = vrot.lane.b32.xlu1 %v5259_v25, %s4698_s27 }
 0x1e7   :  { %1591 = vrot.lane.b32.xlu0 %v5338_v46, %s4703_s30 }
 0x1e8   :  { %v863_v49 = vpop.permute.xlu1 %862 }
 0x1e9   :  { %v5344_v48 = vpop.permute.xlu0 %1487  ;;  %885 = vst.msk [vmem:[#allocation5 + $0x10] sm:$0xff] %vm882_vm13, %v863_v49 }
 0x1ea   :  { %1589 = vrot.lane.b32.xlu1 %v5270_v28, %s4703_s30 }
 0x1eb   :  { %2156 = vrot.lane.b32.xlu0 %v5215_v9, %s4698_s27 }
 0x1ec   :  { %v1534_v58 = vpop.permute.xlu1 %1533 }
 0x1ed   :  { %v5354_v57 = vpop.permute.xlu0 %2099 }
 0x1ee   :  { %2154 = vrot.lane.b32.xlu1 %v5184_v62, %s4698_s27  ;;  %v5376_v62 = vld [vmem:[#allocation3 + $0x110] sm:$0xff] }
 0x1ef   :  { %1026 = vrot.lane.b32.xlu0 %v5352_v55, %s4702_s0  ;;  %1005 = vst.msk [vmem:[#allocation5 + $0x78] sm:$0xff] %vm24_vm10, %v5376_v62 }
 0x1f0   :  { %v1582_v60 = vpop.permute.xlu1 %1581 }
 0x1f1   :  { %v5361_v59 = vpop.permute.xlu0 %2715 }
 0x1f2   :  { %2202 = vrot.lane.b32.xlu1 %v5259_v25, %s4703_s30 }
 0x1f3   :  { %1693 = vrot.lane.b32.xlu0 %v5352_v55, %s4698_s27 }
 0x1f4   :  { %v5378_v2 = vpop.permute.xlu1 %2146 }
 0x1f5   :  { %v861_v3 = vpop.permute.xlu0 %860 }
 0x1f6   :  { %884 = vst.msk [vmem:[#allocation5 + $0x8] sm:$0xff] %vm882_vm13, %v861_v3  ;;  %915 = vrot.lane.b32.xlu1 %v5189_v63, %s4698_s27 }
 0x1f7   :  { %933 = vst.msk [vmem:[#allocation5 + $0x8] sm:$0xff] %vm931_vm14, %v910_v42  ;;  %1741 = vrot.lane.b32.xlu0 %v1724_v4, %s4703_s30 }
 0x1f8   :  { %982 = vst.msk [vmem:[#allocation5 + $0x8] sm:$0xff] %vm980_vm15, %v959_v41  ;;  %v5388_v5 = vpop.permute.xlu1 %2194  ;;  %v4246_v41 = vld [vmem:[%s8598_s3 + $0x58] sm:$0xff] }
 0x1f9   :  { %v1532_v6 = vpop.permute.xlu0 %1531  ;;  %v4672_v50 = vpack.c.bf16 %v4246_v41, %v4245_v30 }
 0x1fa   :  { %964 = vrot.lane.b32.xlu1 %v5282_v31, %s4703_s30 }
 0x1fb   :  { %1647 = vrot.lane.b32.xlu0 %v1724_v4, %s4702_s0 }
 0x1fc   :  { %v5393_v7 = vpop.permute.xlu1 %2761 }
 0x1fd   :  { %v1580_v9 = vpop.permute.xlu0 %1579 }
 0x1fe   :  { %1493 = vrot.lane.b32.xlu1 %v5299_v34, %s4702_s0 }
 0x1ff   :  { %2260 = vrot.lane.b32.xlu0 %v5352_v55, %s4702_s0  ;;  %v1151_v10 = vld [vmem:[#allocation5 + $0x8] sm:$0xff] }
 0x200   :  { %1460 = vst.msk [vmem:[#allocation5 + $0x8] sm:$0xff] %vm24_vm10, %v5166_v56  ;;  %v5401_v11 = vpop.permute.xlu1 %2809 }
 0x201   :  { %v914_v12 = vpop.permute.xlu0 %913 }
 0x202   :  { %2200 = vrot.lane.b32.xlu1 %v5282_v31, %s4703_s30 }
 0x203   :  { %1070 = vrot.lane.b32.xlu0 %v1054_v13, %s4698_s27  ;;  %v5540_v13 = vld [vmem:[#allocation3 + $0xd2] sm:$0xff] }
 0x204   :  { %v908_v16 = vpop.permute.xlu1 %907 }
 0x205   :  { %v5406_v18 = vpop.permute.xlu0 %1491  ;;  %932 = vst.msk [vmem:[#allocation5] sm:$0xff] %vm931_vm14, %v908_v16 }
 0x206   :  { %2105 = vrot.lane.b32.xlu1 %v5282_v31, %s4702_s0 }
 0x207   :  { %1118 = vrot.lane.b32.xlu0 %v5409_v19, %s4703_s30 }
 0x208   :  { %v957_v20 = vpop.permute.xlu1 %956 }
 0x209   :  { %v5415_v21 = vpop.permute.xlu0 %2103  ;;  %981 = vst.msk [vmem:[#allocation5] sm:$0xff] %vm980_vm15, %v957_v20 }
 0x20a   :  { %2815 = vrot.lane.b32.xlu1 %v5299_v34, %s4703_s30 }
 0x20b   :  { %1645 = vrot.lane.b32.xlu0 %v5418_v26, %s4702_s0 }
 0x20c   :  { %v1486_v27 = vpop.permute.xlu1 %1485 }
 0x20d   :  { %v5424_v29 = vpop.permute.xlu0 %2719  ;;  %1508 = vst.msk [vmem:[#allocation5 + $0x8] sm:$0xff] %vm882_vm13, %v1486_v27 }
 0x20e   :  { %1556 = vst.msk [vmem:[#allocation5 + $0x8] sm:$0xff] %vm931_vm14, %v1534_v58  ;;  %2721 = vrot.lane.b32.xlu1 %v5299_v34, %s4702_s0 }
 0x20f   :  { %2258 = vrot.lane.b32.xlu0 %v5409_v19, %s4702_s0  ;;  %1604 = vst.msk [vmem:[#allocation5 + $0x8] sm:$0xff] %vm980_vm15, %v1582_v60 }
 0x210   :  { %v1150_v42 = vld [vmem:[#allocation5] sm:$0xff]  ;;  %v2098_v47 = vpop.permute.xlu1 %2097 }
 0x211   :  { %v865_v49 = vpop.permute.xlu0 %864  ;;  %1459 = vst.msk [vmem:[#allocation5] sm:$0xff] %vm24_vm10, %v5112_v23  ;;  %4516 = vmatprep.mubr.msk.f32.mxu0 %vm1170_vm2, %v1150_v42 }
 0x212   :  { %886 = vst.msk [vmem:[#allocation5 + $0x18] sm:$0xff] %vm882_vm13, %v865_v49  ;;  %1507 = vst.msk [vmem:[#allocation5] sm:$0xff] %vm882_vm13, %v5312_v35  ;;  %4517 = vmatmul.mubr.msk.f32.vlgmr.msra.gmra.mrb[16].mxu0 %vm1170_vm2, %v1151_v10  ;;  %921 = vrot.lane.b32.xlu1 %v5443_v53, %s4698_s27  ;;  %v5460_v35 = vld [vmem:[#allocation3 + $0xe1] sm:$0xff] }
 0x213   :  { %935 = vst.msk [vmem:[#allocation5 + $0x18] sm:$0xff] %vm931_vm14, %v914_v12  ;;  %1555 = vst.msk [vmem:[#allocation5] sm:$0xff] %vm931_vm14, %v1532_v6  ;;  %1076 = vrot.lane.b32.xlu0 %v5249_v22, %s4698_s27  ;;  %4671 = vmatpush3.bf16.msra.mxu0 %v5369_v1  ;;  %v5530_v12 = vld [vmem:[#allocation3 + $0xd1] sm:$0xff] }
 0x214   :  { %1603 = vst.msk [vmem:[#allocation5] sm:$0xff] %vm980_vm15, %v1580_v9  ;;  %v2714_v23 = vpop.permute.xlu1 %2713  ;;  %4673 = vmatprep.subr.bf16.mxu0 %v4672_v50 }
 0x215   :  { %v5456_v34 = vpop.permute.xlu0 %1535 }
 0x216   :  { %970 = vrot.lane.b32.xlu1 %v5314_v36, %s4703_s30  ;;  %v5462_v54 = vld [vmem:[#allocation5 + $0x8] sm:$0xff] }
 0x217   :  { %1124 = vrot.lane.b32.xlu0 %v5460_v35, %s4703_s30  ;;  %2074 = vst.msk [vmem:[#allocation5 + $0x8] sm:$0xff] %vm24_vm10, %v5135_v44  ;;  %4675 = vmatpush3.bf16.msra.mxu0 %v4672_v50 }
 0x218   :  { %v963_v58 = vpop.permute.xlu1 %962  ;;  %2122 = vst.msk [vmem:[#allocation5 + $0x8] sm:$0xff] %vm882_vm13, %v5354_v57  ;;  %v5484_v57 = vld [vmem:[#allocation3 + $0x82] sm:$0xff] }
 0x219   :  { %v5468_v60 = vpop.permute.xlu0 %1583  ;;  %984 = vst.msk [vmem:[#allocation5 + $0x18] sm:$0xff] %vm980_vm15, %v963_v58 }
 0x21a   :  { %1545 = vrot.lane.b32.xlu1 %v5314_v36, %s4698_s27 }
 0x21b   :  { %v5475_v61 = vld [vmem:[#allocation5] sm:$0xff]  ;;  %1030 = vrot.lane.b32.xlu0 %v5460_v35, %s4702_s0 }
 0x21c   :  { %2073 = vst.msk [vmem:[#allocation5] sm:$0xff] %vm24_vm10, %v5141_v45  ;;  %v867_v44 = vpop.permute.xlu1 %866 }
 0x21d   :  { %v2149_v0 = vpop.permute.xlu0 %2148  ;;  %2121 = vst.msk [vmem:[#allocation5] sm:$0xff] %vm882_vm13, %v2098_v47  ;;  %887 = vst.msk [vmem:[#allocation5 + $0x20] sm:$0xff] %vm882_vm13, %v867_v44  ;;  %v5584_v44 = vld [vmem:[#allocation3 + $0x101] sm:$0xff] }
 0x21e   :  { %2171 = vst.msk [vmem:[#allocation5 + $0x8] sm:$0xff] %vm931_vm14, %v2149_v0  ;;  %2170 = vst.msk [vmem:[#allocation5] sm:$0xff] %vm931_vm14, %v5378_v2  ;;  %1593 = vrot.lane.b32.xlu1 %v5484_v57, %s4703_s30  ;;  %v5500_v2 = vld [vmem:[#allocation3 + $0xe2] sm:$0xff] }
 0x21f   :  { %2218 = vst.msk [vmem:[#allocation5] sm:$0xff] %vm980_vm15, %v5388_v5  ;;  %1697 = vrot.lane.b32.xlu0 %v5460_v35, %s4698_s27 }
 0x220   :  { %v1538_v45 = vpop.permute.xlu1 %1537  ;;  %v1153_v3 = vld [vmem:[#allocation5 + $0x18] sm:$0xff] }
 0x221   :  { %v5494_v1 = vpop.permute.xlu0 %2763  ;;  %1462 = vst.msk [vmem:[#allocation5 + $0x18] sm:$0xff] %vm24_vm10, %v5223_v14 }
 0x222   :  { %2158 = vrot.lane.b32.xlu1 %v5443_v53, %s4698_s27 }
 0x223   :  { %1745 = vrot.lane.b32.xlu0 %v5500_v2, %s4703_s30 }
 0x224   :  { %v1586_v4 = vpop.permute.xlu1 %1585 }
 0x225   :  { %v871_v5 = vpop.permute.xlu0 %870 }
 0x226   :  { %889 = vst.msk [vmem:[#allocation5 + $0x30] sm:$0xff] %vm882_vm13, %v871_v5  ;;  %v5505_v6 = vld [vmem:[#allocation5] sm:$0xff]  ;;  %2206 = vrot.lane.b32.xlu1 %v5314_v36, %s4703_s30 }
 0x227   :  { %2689 = vst.msk [vmem:[#allocation5] sm:$0xff] %vm24_vm10, %v5166_v56  ;;  %1651 = vrot.lane.b32.xlu0 %v5500_v2, %s4702_s0 }
 0x228   :  { %2737 = vst.msk [vmem:[#allocation5] sm:$0xff] %vm882_vm13, %v2714_v23  ;;  %v5514_v9 = vpop.permute.xlu1 %2150 }
 0x229   :  { %v918_v10 = vpop.permute.xlu0 %917  ;;  %2785 = vst.msk [vmem:[#allocation5] sm:$0xff] %vm931_vm14, %v5393_v7 }
 0x22a   :  { %2833 = vst.msk [vmem:[#allocation5] sm:$0xff] %vm980_vm15, %v5401_v11  ;;  %872 = vrot.lane.b32.xlu1 %v5325_v38, %s4702_s0 }
 0x22b   :  { %2264 = vrot.lane.b32.xlu0 %v5460_v35, %s4702_s0 }
 0x22c   :  { %v5524_v56 = vpop.permute.xlu1 %2198 }
 0x22d   :  { %v5526_v36 = vpop.permute.xlu0 %1495 }
 0x22e   :  { %1497 = vrot.lane.b32.xlu1 %v5338_v46, %s4702_s0 }
 0x22f   :  { %1028 = vrot.lane.b32.xlu0 %v5530_v12, %s4702_s0 }
 0x230   :  { %v5534_v7 = vpop.permute.xlu1 %2765 }
 0x231   :  { %v5536_v11 = vpop.permute.xlu0 %2107 }
 0x232   :  { %2204 = vrot.lane.b32.xlu1 %v5325_v38, %s4703_s30 }
 0x233   :  { %1649 = vrot.lane.b32.xlu0 %v5540_v13, %s4702_s0 }
 0x234   :  { %v5544_v16 = vpop.permute.xlu1 %2813 }
 0x235   :  { %v869_v20 = vpop.permute.xlu0 %868 }
 0x236   :  { %888 = vst.msk [vmem:[#allocation5 + $0x28] sm:$0xff] %vm882_vm13, %v869_v20  ;;  %2109 = vrot.lane.b32.xlu1 %v5325_v38, %s4702_s0 }
 0x237   :  { %937 = vst.msk [vmem:[#allocation5 + $0x28] sm:$0xff] %vm931_vm14, %v918_v10  ;;  %2309 = vrot.lane.b32.xlu0 %v5255_v24, %s4698_s27 }
 0x238   :  { %v912_v27 = vpop.permute.xlu1 %911 }
 0x239   :  { %v5552_v30 = vpop.permute.xlu0 %1539  ;;  %934 = vst.msk [vmem:[#allocation5 + $0x10] sm:$0xff] %vm931_vm14, %v912_v27 }
 0x23a   :  { %1072 = vrot.lane.b32.xlu1 %v5229_v15, %s4698_s27 }
 0x23b   :  { %2357 = vrot.lane.b32.xlu0 %v5530_v12, %s4703_s30 }
 0x23c   :  { %v961_v41 = vpop.permute.xlu1 %960 }
 0x23d   :  { %v5559_v42 = vpop.permute.xlu0 %1587  ;;  %983 = vst.msk [vmem:[#allocation5 + $0x10] sm:$0xff] %vm980_vm15, %v961_v41 }
 0x23e   :  { %1120 = vrot.lane.b32.xlu1 %v5352_v55, %s4703_s30 }
 0x23f   :  { %2262 = vrot.lane.b32.xlu0 %v5530_v12, %s4702_s0 }
 0x240   :  { %v1490_v47 = vpop.permute.xlu1 %1489 }
 0x241   :  { %v2153_v49 = vpop.permute.xlu0 %2152  ;;  %1510 = vst.msk [vmem:[#allocation5 + $0x18] sm:$0xff] %vm882_vm13, %v1490_v47 }
 0x242   :  { %1558 = vst.msk [vmem:[#allocation5 + $0x18] sm:$0xff] %vm931_vm14, %v1538_v45  ;;  %2307 = vrot.lane.b32.xlu1 %v5229_v15, %s4698_s27 }
 0x243   :  { %1606 = vst.msk [vmem:[#allocation5 + $0x18] sm:$0xff] %vm980_vm15, %v1586_v4  ;;  %1080 = vrot.lane.b32.xlu0 %v5287_v32, %s4698_s27 }
 0x244   :  { %v2197_v50 = vpop.permute.xlu1 %2196  ;;  %v1152_v58 = vld [vmem:[#allocation5 + $0x10] sm:$0xff] }
 0x245   :  { %v5573_v23 = vpop.permute.xlu0 %2767  ;;  %2219 = vst.msk [vmem:[#allocation5 + $0x8] sm:$0xff] %vm980_vm15, %v2197_v50  ;;  %4519 = vmatprep.mubr.msk.f32.mxu0 %vm1170_vm2, %v1152_v58 }
 0x246   :  { %1461 = vst.msk [vmem:[#allocation5 + $0x10] sm:$0xff] %vm24_vm10, %v5133_v43  ;;  %4520 = vmatmul.mubr.msk.f32.gmra.mrb[18].mxu0 %vm1170_vm2, %v1153_v3  ;;  %2355 = vrot.lane.b32.xlu1 %v5352_v55, %s4703_s30 }
 0x247   :  { %1509 = vst.msk [vmem:[#allocation5 + $0x10] sm:$0xff] %vm882_vm13, %v5344_v48  ;;  %1128 = vrot.lane.b32.xlu0 %v5584_v44, %s4703_s30 }
 0x248   :  { %1557 = vst.msk [vmem:[#allocation5 + $0x10] sm:$0xff] %vm931_vm14, %v5456_v34  ;;  %v2102_v0 = vpop.permute.xlu1 %2101 }
 0x249   :  { %1605 = vst.msk [vmem:[#allocation5 + $0x10] sm:$0xff] %vm980_vm15, %v5468_v60  ;;  %v5592_v45 = vpop.permute.xlu0 %2111 }
 0x24a   :  { %v5594_v48 = vld [vmem:[#allocation5 + $0x18] sm:$0xff]  ;;  %1024 = vrot.lane.b32.xlu1 %v5409_v19, %s4702_s0 }
 0x24b   :  { %2076 = vst.msk [vmem:[#allocation5 + $0x18] sm:$0xff] %vm24_vm10, %v5156_v51  ;;  %1034 = vrot.lane.b32.xlu0 %v5584_v44, %s4702_s0 }
 0x24c   :  { %2124 = vst.msk [vmem:[#allocation5 + $0x18] sm:$0xff] %vm882_vm13, %v5415_v21  ;;  %v5604_v55 = vld [vmem:[#allocation5 + $0x8] sm:$0xff]  ;;  %v2812_v34 = vpop.permute.xlu1 %2811 }
 0x24d   :  { %v920_v60 = vpop.permute.xlu0 %919  ;;  %2173 = vst.msk [vmem:[#allocation5 + $0x18] sm:$0xff] %vm931_vm14, %v2153_v49 }
 0x24e   :  { %2690 = vst.msk [vmem:[#allocation5 + $0x8] sm:$0xff] %vm24_vm10, %v5133_v43  ;;  %1691 = vrot.lane.b32.xlu1 %v5409_v19, %s4698_s27 }
 0x24f   :  { %938 = vst.msk [vmem:[#allocation5 + $0x30] sm:$0xff] %vm931_vm14, %v920_v60  ;;  %1701 = vrot.lane.b32.xlu0 %v5584_v44, %s4698_s27 }
 0x250   :  { %2738 = vst.msk [vmem:[#allocation5 + $0x8] sm:$0xff] %vm882_vm13, %v5361_v59  ;;  %v5616_v51 = vld [vmem:[#allocation5 + $0x10] sm:$0xff]  ;;  %v2718_v43 = vpop.permute.xlu1 %2717  ;;  %v5629_v59 = vld [vmem:[#allocation3 + $0x102] sm:$0xff] }
 0x251   :  { %2786 = vst.msk [vmem:[#allocation5 + $0x8] sm:$0xff] %vm931_vm14, %v5494_v1  ;;  %v969_v21 = vpop.permute.xlu0 %968 }
 0x252   :  { %2075 = vst.msk [vmem:[#allocation5 + $0x10] sm:$0xff] %vm24_vm10, %v5160_v52  ;;  %1739 = vrot.lane.b32.xlu1 %v5418_v26, %s4703_s30 }
 0x253   :  { %2834 = vst.msk [vmem:[#allocation5 + $0x8] sm:$0xff] %vm980_vm15, %v2812_v34  ;;  %987 = vst.msk [vmem:[#allocation5 + $0x30] sm:$0xff] %vm980_vm15, %v969_v21  ;;  %1749 = vrot.lane.b32.xlu0 %v5629_v59, %s4703_s30  ;;  %v5706_v34 = vld [vmem:[#allocation3 + $0x120] sm:$0xff] }
 0x254   :  { %2123 = vst.msk [vmem:[#allocation5 + $0x10] sm:$0xff] %vm882_vm13, %v2102_v0  ;;  %v967_v52 = vpop.permute.xlu1 %966  ;;  %v5725_v21 = vld [vmem:[#allocation3 + $0x121] sm:$0xff] }
 0x255   :  { %2172 = vst.msk [vmem:[#allocation5 + $0x10] sm:$0xff] %vm931_vm14, %v5514_v9  ;;  %v1544_v19 = vpop.permute.xlu0 %1543 }
 0x256   :  { %2220 = vst.msk [vmem:[#allocation5 + $0x10] sm:$0xff] %vm980_vm15, %v5524_v56  ;;  %986 = vst.msk [vmem:[#allocation5 + $0x28] sm:$0xff] %vm980_vm15, %v967_v52  ;;  %2311 = vrot.lane.b32.xlu1 %v5249_v22, %s4698_s27  ;;  %v2070_v52 = vld [vmem:[#allocation3 + $0x60] sm:$0xff] }
 0x257   :  { %1655 = vrot.lane.b32.xlu0 %v5629_v59, %s4702_s0 }
 0x258   :  { %v1542_v1 = vpop.permute.xlu1 %1541 }
 0x259   :  { %v1592_v3 = vpop.permute.xlu0 %1591 }
 0x25a   :  { %v1156_v4 = vld [vmem:[#allocation5 + $0x30] sm:$0xff]  ;;  %2359 = vrot.lane.b32.xlu1 %v5460_v35, %s4703_s30 }
 0x25b   :  { %4525 = vmatprep.mubr.msk.f32.mxu1 %vm1170_vm2, %v1156_v4  ;;  %1465 = vst.msk [vmem:[#allocation5 + $0x30] sm:$0xff] %vm24_vm10, %v5259_v25  ;;  %2268 = vrot.lane.b32.xlu0 %v5584_v44, %s4702_s0 }
 0x25c   :  { %1513 = vst.msk [vmem:[#allocation5 + $0x30] sm:$0xff] %vm882_vm13, %v5526_v36  ;;  %v1590_v22 = vpop.permute.xlu1 %1589  ;;  %v5675_v36 = vld [vmem:[#allocation3 + $0xf2] sm:$0xff] }
 0x25d   :  { %v5643_v5 = vld [vmem:[#allocation5 + $0x10] sm:$0xff]  ;;  %1561 = vst.msk [vmem:[#allocation5 + $0x30] sm:$0xff] %vm931_vm14, %v1544_v19  ;;  %v5656_v25 = vpop.permute.xlu0 %2156  ;;  %v1155_v9 = vld [vmem:[#allocation5 + $0x28] sm:$0xff] }
 0x25e   :  { %2691 = vst.msk [vmem:[#allocation5 + $0x10] sm:$0xff] %vm24_vm10, %v5223_v14  ;;  %1464 = vst.msk [vmem:[#allocation5 + $0x28] sm:$0xff] %vm24_vm10, %v5282_v31  ;;  %1074 = vrot.lane.b32.xlu1 %v5255_v24, %s4698_s27  ;;  %v5666_v14 = vld [vmem:[#allocation3 + $0xf1] sm:$0xff] }
 0x25f   :  { %2739 = vst.msk [vmem:[#allocation5 + $0x10] sm:$0xff] %vm882_vm13, %v2718_v43  ;;  %1032 = vrot.lane.b32.xlu0 %v5666_v14, %s4702_s0 }
 0x260   :  { %1609 = vst.msk [vmem:[#allocation5 + $0x30] sm:$0xff] %vm980_vm15, %v1592_v3  ;;  %v5670_v10 = vpop.permute.xlu1 %2154  ;;  %v4216_v3 = vld [vmem:[%s8598_s3 + $0x28] sm:$0xff] }
 0x261   :  { %2787 = vst.msk [vmem:[#allocation5 + $0x10] sm:$0xff] %vm931_vm14, %v5534_v7  ;;  %v1027_v56 = vpop.permute.xlu0 %1026 }
 0x262   :  { %2835 = vst.msk [vmem:[#allocation5 + $0x10] sm:$0xff] %vm980_vm15, %v5544_v16  ;;  %1122 = vrot.lane.b32.xlu1 %v5530_v12, %s4703_s30  ;;  %v2071_v16 = vld [vmem:[#allocation3 + $0x70] sm:$0xff] }
 0x263   :  { %1048 = vst.msk [vmem:[#allocation5 + $0x50] sm:$0xff] %vm882_vm13, %v1027_v56  ;;  %1653 = vrot.lane.b32.xlu0 %v5675_v36, %s4702_s0 }
 0x264   :  { %v5681_v20 = vpop.permute.xlu1 %2202 }
 0x265   :  { %v5683_v27 = vpop.permute.xlu0 %1693 }
 0x266   :  { %1695 = vrot.lane.b32.xlu1 %v5530_v12, %s4698_s27 }
 0x267   :  { %v5679_v7 = vld [vmem:[#allocation5 + $0x30] sm:$0xff]  ;;  %2313 = vrot.lane.b32.xlu0 %v5291_v33, %s4698_s27 }
 0x268   :  { %2079 = vst.msk [vmem:[#allocation5 + $0x30] sm:$0xff] %vm24_vm10, %v2071_v16  ;;  %v916_v41 = vpop.permute.xlu1 %915 }
 0x269   :  { %v5690_v47 = vpop.permute.xlu0 %1741  ;;  %936 = vst.msk [vmem:[#allocation5 + $0x20] sm:$0xff] %vm931_vm14, %v916_v41 }
 0x26a   :  { %1743 = vrot.lane.b32.xlu1 %v5540_v13, %s4703_s30 }
 0x26b   :  { %2361 = vrot.lane.b32.xlu0 %v5666_v14, %s4703_s30 }
 0x26c   :  { %v965_v49 = vpop.permute.xlu1 %964 }
 0x26d   :  { %v5697_v50 = vpop.permute.xlu0 %1647  ;;  %985 = vst.msk [vmem:[#allocation5 + $0x20] sm:$0xff] %vm980_vm15, %v965_v49 }
 0x26e   :  { %2315 = vrot.lane.b32.xlu1 %v5287_v32, %s4698_s27 }
 0x26f   :  { %2266 = vrot.lane.b32.xlu0 %v5666_v14, %s4702_s0 }
 0x270   :  { %v1494_v58 = vpop.permute.xlu1 %1493 }
 0x271   :  { %v5704_v0 = vpop.permute.xlu0 %2260  ;;  %1512 = vst.msk [vmem:[#allocation5 + $0x28] sm:$0xff] %vm882_vm13, %v1494_v58 }
 0x272   :  { %1560 = vst.msk [vmem:[#allocation5 + $0x28] sm:$0xff] %vm931_vm14, %v1542_v1  ;;  %1078 = vrot.lane.b32.xlu1 %v5291_v33, %s4698_s27 }
 0x273   :  { %1608 = vst.msk [vmem:[#allocation5 + $0x28] sm:$0xff] %vm980_vm15, %v1590_v22  ;;  %1084 = vrot.lane.b32.xlu0 %v5706_v34, %s4698_s27 }
 0x274   :  { %v2201_v32 = vpop.permute.xlu1 %2200  ;;  %v1154_v43 = vld [vmem:[#allocation5 + $0x20] sm:$0xff] }
 0x275   :  { %v1071_v60 = vpop.permute.xlu0 %1070  ;;  %2221 = vst.msk [vmem:[#allocation5 + $0x18] sm:$0xff] %vm980_vm15, %v2201_v32  ;;  %4522 = vmatprep.mubr.msk.f32.mxu0 %vm1170_vm2, %v1154_v43 }
 0x276   :  { %1094 = vst.msk [vmem:[#allocation5 + $0x40] sm:$0xff] %vm931_vm14, %v1071_v60  ;;  %4523 = vmatmul.mubr.msk.f32.gmra.mrb[20].mxu0 %vm1170_vm2, %v1155_v9  ;;  %1126 = vrot.lane.b32.xlu1 %v5666_v14, %s4703_s30 }
 0x277   :  { %1463 = vst.msk [vmem:[#allocation5 + $0x20] sm:$0xff] %vm24_vm10, %v5209_v8  ;;  %1132 = vrot.lane.b32.xlu0 %v5725_v21, %s4703_s30  ;;  %4580 = vmatprep.mubr.msk.f32.mxu0 %vm1170_vm2, %v5505_v6  ;;  %v2684_v6 = vld [vmem:[#allocation3 + $0x41] sm:$0xff] }
 0x278   :  { %1511 = vst.msk [vmem:[#allocation5 + $0x20] sm:$0xff] %vm882_vm13, %v5406_v18  ;;  %v2106_v8 = vpop.permute.xlu1 %2105 }
 0x279   :  { %1559 = vst.msk [vmem:[#allocation5 + $0x20] sm:$0xff] %vm931_vm14, %v5552_v30  ;;  %v1119_v18 = vpop.permute.xlu0 %1118 }
 0x27a   :  { %1607 = vst.msk [vmem:[#allocation5 + $0x20] sm:$0xff] %vm980_vm15, %v5559_v42  ;;  %1142 = vst.msk [vmem:[#allocation5 + $0x40] sm:$0xff] %vm980_vm15, %v1119_v18  ;;  %4581 = vmatmul.mubr.msk.f32.vlgmr.msra.gmra.mrb[22].mxu0 %vm1170_vm2, %v5604_v55  ;;  %1699 = vrot.lane.b32.xlu1 %v5666_v14, %s4698_s27  ;;  %v5740_v30 = vld [vmem:[#allocation5 + $0x28] sm:$0xff]  ;;  %v4215_v55 = vld [vmem:[%s8598_s3 + $0x20] sm:$0xff] }
 0x27b   :  { %1705 = vrot.lane.b32.xlu0 %v5725_v21, %s4698_s27  ;;  %4583 = vmatprep.mubr.msk.f32.mxu0 %vm1170_vm2, %v5643_v5  ;;  %2078 = vst.msk [vmem:[#allocation5 + $0x28] sm:$0xff] %vm24_vm10, %v2070_v52  ;;  %v5760_v4 = vpack.c.bf16 %v4216_v3, %v4215_v55  ;;  %v1611_v5 = vld [vmem:[#allocation3 + $0xa1] sm:$0xff]  ;;  %v4217_v55 = vld [vmem:[%s8598_s3 + $0x30] sm:$0xff]  ;;  %v4218_v3 = vld [vmem:[%s8598_s3 + $0x38] sm:$0xff] }
 0x27c   :  { %v2816_v42 = vpop.permute.xlu1 %2815  ;;  %v2390_v19 = vld [vmem:[#allocation5 + $0x18] sm:$0xff]  ;;  %2126 = vst.msk [vmem:[#allocation5 + $0x28] sm:$0xff] %vm882_vm13, %v5536_v11  ;;  %v5767_v11 = vld [vmem:[#allocation3 + $0x122] sm:$0xff] }
 0x27d   :  { %v5747_v1 = vpop.permute.xlu0 %1645  ;;  %2692 = vst.msk [vmem:[#allocation5 + $0x18] sm:$0xff] %vm24_vm10, %v2684_v6  ;;  %4661 = vmatprep.subr.bf16.mxu1 %v5760_v4  ;;  %v2797_v18 = vld [vmem:[#allocation3 + $0x62] sm:$0xff] }
 0x27e   :  { %2175 = vst.msk [vmem:[#allocation5 + $0x28] sm:$0xff] %vm931_vm14, %v5656_v25  ;;  %4584 = vmatmul.mubr.msk.f32.gmra.mrb[24].mxu0 %vm1170_vm2, %v2390_v19  ;;  %1747 = vrot.lane.b32.xlu1 %v5675_v36, %s4703_s30 }
 0x27f   :  { %2740 = vst.msk [vmem:[#allocation5 + $0x18] sm:$0xff] %vm882_vm13, %v5424_v29  ;;  %1753 = vrot.lane.b32.xlu0 %v5767_v11, %s4703_s30 }
 0x280   :  { %2788 = vst.msk [vmem:[#allocation5 + $0x18] sm:$0xff] %vm931_vm14, %v5573_v23  ;;  %v2722_v29 = vpop.permute.xlu1 %2721  ;;  %v5789_v23 = vld [vmem:[#allocation3 + $0x111] sm:$0xff] }
 0x281   :  { %v5769_v22 = vld [vmem:[#allocation5 + $0x20] sm:$0xff]  ;;  %2836 = vst.msk [vmem:[#allocation5 + $0x18] sm:$0xff] %vm980_vm15, %v2816_v42  ;;  %v5779_v25 = vpop.permute.xlu0 %2258 }
 0x282   :  { %2077 = vst.msk [vmem:[#allocation5 + $0x20] sm:$0xff] %vm24_vm10, %v5189_v63  ;;  %v5781_v9 = vld [vmem:[#allocation5 + $0x40] sm:$0xff]  ;;  %1082 = vrot.lane.b32.xlu1 %v5376_v62, %s4698_s27 }
 0x283   :  { %2125 = vst.msk [vmem:[#allocation5 + $0x20] sm:$0xff] %vm882_vm13, %v2106_v8  ;;  %1036 = vrot.lane.b32.xlu0 %v5789_v23, %s4702_s0 }
 0x284   :  { %1619 = vst.msk [vmem:[#allocation5 + $0x40] sm:$0xff] %vm24_vm10, %v1611_v5  ;;  %v922_v63 = vpop.permute.xlu1 %921 }
 0x285   :  { %2174 = vst.msk [vmem:[#allocation5 + $0x20] sm:$0xff] %vm931_vm14, %v5670_v10  ;;  %v1077_v56 = vpop.permute.xlu0 %1076  ;;  %v5799_v10 = vld [vmem:[#allocation3 + $0x112] sm:$0xff] }
 0x286   :  { %1667 = vst.msk [vmem:[#allocation5 + $0x40] sm:$0xff] %vm882_vm13, %v5320_v37  ;;  %1130 = vrot.lane.b32.xlu1 %v5789_v23, %s4703_s30 }
 0x287   :  { %2222 = vst.msk [vmem:[#allocation5 + $0x20] sm:$0xff] %vm980_vm15, %v5681_v20  ;;  %1657 = vrot.lane.b32.xlu0 %v5799_v10, %s4702_s0 }
 0x288   :  { %v971_v16 = vpop.permute.xlu1 %970 }
 0x289   :  { %v1125_v41 = vpop.permute.xlu0 %1124 }
 0x28a   :  { %1703 = vrot.lane.b32.xlu1 %v5789_v23, %s4698_s27 }
 0x28b   :  { %2723 = vrot.lane.b32.xlu0 %v5270_v28, %s4702_s0 }
 0x28c   :  { %v1546_v37 = vpop.permute.xlu1 %1545 }
 0x28d   :  { %v1031_v20 = vpop.permute.xlu0 %1030 }
 0x28e   :  { %v2391_v49 = vld [vmem:[#allocation5 + $0x20] sm:$0xff]  ;;  %1050 = vst.msk [vmem:[#allocation5 + $0x60] sm:$0xff] %vm882_vm13, %v1031_v20  ;;  %1751 = vrot.lane.b32.xlu1 %v5799_v10, %s4703_s30  ;;  %v2752_v20 = vld [vmem:[#allocation3 + $0x91] sm:$0xff] }
 0x28f   :  { %2693 = vst.msk [vmem:[#allocation5 + $0x20] sm:$0xff] %vm24_vm10, %v5282_v31  ;;  %4586 = vmatprep.mubr.msk.f32.mxu0 %vm1170_vm2, %v2391_v49  ;;  %2317 = vrot.lane.b32.xlu0 %v5376_v62, %s4698_s27  ;;  %v5818_v31 = vld [vmem:[#allocation3 + $0x61] sm:$0xff] }
 0x290   :  { %2741 = vst.msk [vmem:[#allocation5 + $0x20] sm:$0xff] %vm882_vm13, %v2722_v29  ;;  %v1594_v58 = vpop.permute.xlu1 %1593  ;;  %v2298_v29 = vld [vmem:[#allocation3 + $0x130] sm:$0xff]  ;;  %v4271_v49 = vld [vmem:[%s8598_s3 + $0x60] sm:$0xff] }
 0x291   :  { %v5816_v32 = vpop.permute.xlu0 %1697 }
 0x292   :  { %2769 = vrot.lane.b32.xlu1 %v5818_v31, %s4698_s27 }
 0x293   :  { %2771 = vrot.lane.b32.xlu0 %v5325_v38, %s4698_s27 }
 0x294   :  { %v2159_v28 = vpop.permute.xlu1 %2158 }
 0x295   :  { %v5824_v60 = vpop.permute.xlu0 %1745 }
 0x296   :  { %2363 = vrot.lane.b32.xlu1 %v5584_v44, %s4703_s30 }
 0x297   :  { %2365 = vrot.lane.b32.xlu0 %v5789_v23, %s4703_s30 }
 0x298   :  { %v2207_v43 = vpop.permute.xlu1 %2206 }
 0x299   :  { %v5830_v8 = vpop.permute.xlu0 %1651 }
 0x29a   :  { %2817 = vrot.lane.b32.xlu1 %v2797_v18, %s4703_s30 }
 0x29b   :  { %2270 = vrot.lane.b32.xlu0 %v5789_v23, %s4702_s0 }
 0x29c   :  { %v873_v52 = vpop.permute.xlu1 %872 }
 0x29d   :  { %890 = vst.msk [vmem:[#allocation5 + $0x38] sm:$0xff] %vm882_vm13, %v873_v52  ;;  %v5836_v6 = vpop.permute.xlu0 %2264 }
 0x29e   :  { %939 = vst.msk [vmem:[#allocation5 + $0x38] sm:$0xff] %vm931_vm14, %v922_v63  ;;  %2819 = vrot.lane.b32.xlu1 %v5338_v46, %s4703_s30  ;;  %v4664_v63 = vpack.c.bf16 %v4218_v3, %v4217_v55  ;;  %v5925_v55 = vld [vmem:[#allocation3 + $0xc1] sm:$0xff] }
 0x29f   :  { %988 = vst.msk [vmem:[#allocation5 + $0x38] sm:$0xff] %vm980_vm15, %v971_v16  ;;  %2272 = vrot.lane.b32.xlu0 %v5725_v21, %s4702_s0 }
 0x2a0   :  { %v1498_v42 = vpop.permute.xlu1 %1497 }
 0x2a1   :  { %v1029_v19 = vpop.permute.xlu0 %1028 }
 0x2a2   :  { %1049 = vst.msk [vmem:[#allocation5 + $0x58] sm:$0xff] %vm882_vm13, %v1029_v19  ;;  %2725 = vrot.lane.b32.xlu1 %v5338_v46, %s4702_s0 }
 0x2a3   :  { %1097 = vst.msk [vmem:[#allocation5 + $0x58] sm:$0xff] %vm931_vm14, %v1077_v56  ;;  %2727 = vrot.lane.b32.xlu0 %v5484_v57, %s4702_s0  ;;  %v4272_v56 = vld [vmem:[%s8598_s3 + $0x68] sm:$0xff] }
 0x2a4   :  { %1145 = vst.msk [vmem:[#allocation5 + $0x58] sm:$0xff] %vm980_vm15, %v1125_v41  ;;  %v2205_v5 = vpop.permute.xlu1 %2204  ;;  %v5878_v52 = vpack.c.bf16 %v4272_v56, %v4271_v49  ;;  %v1612_v56 = vld [vmem:[#allocation3 + $0xb1] sm:$0xff] }
 0x2a5   :  { %2223 = vst.msk [vmem:[#allocation5 + $0x28] sm:$0xff] %vm980_vm15, %v2205_v5  ;;  %v1650_v46 = vpop.permute.xlu0 %1649  ;;  %v2858_v5 = vld [vmem:[#allocation3 + $0xc2] sm:$0xff] }
 0x2a6   :  { %v1157_v16 = vld [vmem:[#allocation5 + $0x38] sm:$0xff]  ;;  %2319 = vrot.lane.b32.xlu1 %v5706_v34, %s4698_s27 }
 0x2a7   :  { %1466 = vst.msk [vmem:[#allocation5 + $0x38] sm:$0xff] %vm24_vm10, %v5325_v38  ;;  %2321 = vrot.lane.b32.xlu0 %v2298_v29, %s4698_s27  ;;  %4526 = vmatmul.mubr.msk.f32.vlgmr.msra.gmra.mrb[0].mxu1 %vm1170_vm2, %v1157_v16  ;;  %v2751_v38 = vld [vmem:[#allocation3 + $0x81] sm:$0xff] }
 0x2a8   :  { %1514 = vst.msk [vmem:[#allocation5 + $0x38] sm:$0xff] %vm882_vm13, %v1498_v42  ;;  %v2110_v41 = vpop.permute.xlu1 %2109  ;;  %4528 = vmatprep.mubr.msk.f32.mxu1 %vm1170_vm2, %v5781_v9  ;;  %4663 = vmatpush3.bf16.msra.mxu1 %v5760_v4  ;;  %v5889_v42 = vld [vmem:[#allocation3 + $0x131] sm:$0xff] }
 0x2a9   :  { %1562 = vst.msk [vmem:[#allocation5 + $0x38] sm:$0xff] %vm931_vm14, %v1546_v37  ;;  %v5876_v18 = vpop.permute.xlu0 %2309  ;;  %4665 = vmatprep.subr.bf16.mxu1 %v4664_v63 }
 0x2aa   :  { %2127 = vst.msk [vmem:[#allocation5 + $0x30] sm:$0xff] %vm882_vm13, %v2110_v41  ;;  %2773 = vrot.lane.b32.xlu1 %v2751_v38, %s4698_s27 }
 0x2ab   :  { %1610 = vst.msk [vmem:[#allocation5 + $0x38] sm:$0xff] %vm980_vm15, %v1594_v58  ;;  %v5883_v9 = vld [vmem:[#allocation5 + $0x58] sm:$0xff]  ;;  %2775 = vrot.lane.b32.xlu0 %v2752_v20, %s4698_s27 }
 0x2ac   :  { %2176 = vst.msk [vmem:[#allocation5 + $0x30] sm:$0xff] %vm931_vm14, %v2159_v28  ;;  %v1073_v4 = vpop.permute.xlu1 %1072  ;;  %v2392_v37 = vld [vmem:[#allocation5 + $0x28] sm:$0xff]  ;;  %4667 = vmatpush3.bf16.msra.mxu1 %v4664_v63 }
 0x2ad   :  { %2224 = vst.msk [vmem:[#allocation5 + $0x30] sm:$0xff] %vm980_vm15, %v2207_v43  ;;  %v5892_v58 = vpop.permute.xlu0 %2357  ;;  %4587 = vmatmul.mubr.msk.f32.gmra.mrb[26].mxu0 %vm1170_vm2, %v2392_v37  ;;  %4677 = vmatprep.subr.bf16.mxu1 %v5878_v52 }
 0x2ae   :  { %1622 = vst.msk [vmem:[#allocation5 + $0x58] sm:$0xff] %vm24_vm10, %v5530_v12  ;;  %2694 = vst.msk [vmem:[#allocation5 + $0x28] sm:$0xff] %vm24_vm10, %v5818_v31  ;;  %2367 = vrot.lane.b32.xlu1 %v5725_v21, %s4703_s30  ;;  %v2687_v31 = vld [vmem:[#allocation3 + $0x71] sm:$0xff] }
 0x2af   :  { %1670 = vst.msk [vmem:[#allocation5 + $0x58] sm:$0xff] %vm882_vm13, %v1650_v46  ;;  %2369 = vrot.lane.b32.xlu0 %v5889_v42, %s4703_s30 }
 0x2b0   :  { %1718 = vst.msk [vmem:[#allocation5 + $0x58] sm:$0xff] %vm931_vm14, %v5816_v32  ;;  %v1121_v28 = vpop.permute.xlu1 %1120 }
 0x2b1   :  { %1766 = vst.msk [vmem:[#allocation5 + $0x58] sm:$0xff] %vm980_vm15, %v5824_v60  ;;  %v5908_v19 = vpop.permute.xlu0 %2262  ;;  %v2800_v60 = vld [vmem:[#allocation3 + $0x92] sm:$0xff] }
 0x2b2   :  { %v5906_v43 = vld [vmem:[#allocation5 + $0x38] sm:$0xff]  ;;  %2821 = vrot.lane.b32.xlu1 %v5484_v57, %s4703_s30 }
 0x2b3   :  { %2080 = vst.msk [vmem:[#allocation5 + $0x38] sm:$0xff] %vm24_vm10, %v5443_v53  ;;  %2873 = vrot.lane.b32.xlu0 %v5418_v26, %s4702_s0  ;;  %v2229_v26 = vld [vmem:[#allocation3 + $0xe0] sm:$0xff] }
 0x2b4   :  { %v2393_v32 = vld [vmem:[#allocation5 + $0x30] sm:$0xff]  ;;  %2128 = vst.msk [vmem:[#allocation5 + $0x38] sm:$0xff] %vm882_vm13, %v5592_v45  ;;  %v2308_v53 = vpop.permute.xlu1 %2307 }
 0x2b5   :  { %4589 = vmatprep.mubr.msk.f32.mxu0 %vm1170_vm2, %v2393_v32  ;;  %2695 = vst.msk [vmem:[#allocation5 + $0x30] sm:$0xff] %vm24_vm10, %v2687_v31  ;;  %v1081_v57 = vpop.permute.xlu0 %1080 }
 0x2b6   :  { %2177 = vst.msk [vmem:[#allocation5 + $0x38] sm:$0xff] %vm931_vm14, %v5332_v40  ;;  %2823 = vrot.lane.b32.xlu1 %v2800_v60, %s4703_s30 }
 0x2b7   :  { %2225 = vst.msk [vmem:[#allocation5 + $0x38] sm:$0xff] %vm980_vm15, %v5330_v39  ;;  %2921 = vrot.lane.b32.xlu0 %v5925_v55, %s4698_s27 }
 0x2b8   :  { %v5927_v45 = vld [vmem:[#allocation5 + $0x58] sm:$0xff]  ;;  %v2356_v3 = vpop.permute.xlu1 %2355 }
 0x2b9   :  { %2237 = vst.msk [vmem:[#allocation5 + $0x58] sm:$0xff] %vm24_vm10, %v2229_v26  ;;  %v1129_v40 = vpop.permute.xlu0 %1128 }
 0x2ba   :  { %2285 = vst.msk [vmem:[#allocation5 + $0x58] sm:$0xff] %vm882_vm13, %v5836_v6  ;;  %2875 = vrot.lane.b32.xlu1 %v2858_v5, %s4702_s0 }
 0x2bb   :  { %2969 = vrot.lane.b32.xlu0 %v2858_v5, %s4703_s30  ;;  %v2843_v5 = vld [vmem:[#allocation3 + $0xd1] sm:$0xff] }
 0x2bc   :  { %v1025_v39 = vpop.permute.xlu1 %1024 }
 0x2bd   :  { %1047 = vst.msk [vmem:[#allocation5 + $0x48] sm:$0xff] %vm882_vm13, %v1025_v39  ;;  %v1035_v46 = vpop.permute.xlu0 %1034 }
 0x2be   :  { %v2394_v29 = vld [vmem:[#allocation5 + $0x38] sm:$0xff]  ;;  %1095 = vst.msk [vmem:[#allocation5 + $0x48] sm:$0xff] %vm931_vm14, %v1073_v4  ;;  %2923 = vrot.lane.b32.xlu1 %v5530_v12, %s4698_s27 }
 0x2bf   :  { %4590 = vmatmul.mubr.msk.f32.gmra.mrb[28].mxu0 %vm1170_vm2, %v2394_v29  ;;  %2696 = vst.msk [vmem:[#allocation5 + $0x38] sm:$0xff] %vm24_vm10, %v2751_v38  ;;  %2877 = vrot.lane.b32.xlu0 %v5540_v13, %s4702_s0 }
 0x2c0   :  { %1052 = vst.msk [vmem:[#allocation5 + $0x70] sm:$0xff] %vm882_vm13, %v1035_v46  ;;  %v1692_v6 = vpop.permute.xlu1 %1691 }
 0x2c1   :  { %1143 = vst.msk [vmem:[#allocation5 + $0x48] sm:$0xff] %vm980_vm15, %v1121_v28  ;;  %v5947_v63 = vpop.permute.xlu0 %1701  ;;  %v1615_v28 = vld [vmem:[#allocation3 + $0xe1] sm:$0xff] }
 0x2c2   :  { %1715 = vst.msk [vmem:[#allocation5 + $0x40] sm:$0xff] %vm931_vm14, %v1692_v6  ;;  %2971 = vrot.lane.b32.xlu1 %v5540_v13, %s4703_s30 }
 0x2c3   :  { %2925 = vrot.lane.b32.xlu0 %v5460_v35, %s4698_s27 }
 0x2c4   :  { %v1740_v16 = vpop.permute.xlu1 %1739 }
 0x2c5   :  { %1763 = vst.msk [vmem:[#allocation5 + $0x40] sm:$0xff] %vm980_vm15, %v1740_v16  ;;  %v5954_v12 = vpop.permute.xlu0 %1749 }
 0x2c6   :  { %2879 = vrot.lane.b32.xlu1 %v5500_v2, %s4702_s0 }
 0x2c7   :  { %2973 = vrot.lane.b32.xlu0 %v5500_v2, %s4703_s30 }
 0x2c8   :  { %v1159_v49 = vld [vmem:[#allocation5 + $0x48] sm:$0xff]  ;;  %v5964_v35 = vpop.permute.xlu1 %2311 }
 0x2c9   :  { %4529 = vmatmul.mubr.msk.f32.gmra.mrb[2].mxu1 %vm1170_vm2, %v1159_v49  ;;  %1620 = vst.msk [vmem:[#allocation5 + $0x48] sm:$0xff] %vm24_vm10, %v1612_v56  ;;  %v5968_v13 = vpop.permute.xlu0 %1655 }
 0x2ca   :  { %1668 = vst.msk [vmem:[#allocation5 + $0x48] sm:$0xff] %vm882_vm13, %v5747_v1  ;;  %2927 = vrot.lane.b32.xlu1 %v5666_v14, %s4698_s27 }
 0x2cb   :  { %1716 = vst.msk [vmem:[#allocation5 + $0x48] sm:$0xff] %vm931_vm14, %v5683_v27  ;;  %2881 = vrot.lane.b32.xlu0 %v5675_v36, %s4702_s0 }
 0x2cc   :  { %1764 = vst.msk [vmem:[#allocation5 + $0x48] sm:$0xff] %vm980_vm15, %v5690_v47  ;;  %v5976_v2 = vld [vmem:[#allocation5 + $0x40] sm:$0xff]  ;;  %v5978_v41 = vpop.permute.xlu1 %2359 }
 0x2cd   :  { %2234 = vst.msk [vmem:[#allocation5 + $0x40] sm:$0xff] %vm24_vm10, %v5236_v17  ;;  %v5982_v1 = vpop.permute.xlu0 %2268 }
 0x2ce   :  { %2282 = vst.msk [vmem:[#allocation5 + $0x40] sm:$0xff] %vm882_vm13, %v5779_v25  ;;  %2975 = vrot.lane.b32.xlu1 %v5675_v36, %s4703_s30 }
 0x2cf   :  { %2331 = vst.msk [vmem:[#allocation5 + $0x40] sm:$0xff] %vm931_vm14, %v2308_v53  ;;  %2929 = vrot.lane.b32.xlu0 %v5584_v44, %s4698_s27 }
 0x2d0   :  { %2379 = vst.msk [vmem:[#allocation5 + $0x40] sm:$0xff] %vm980_vm15, %v2356_v3  ;;  %v1075_v27 = vpop.permute.xlu1 %1074 }
 0x2d1   :  { %1096 = vst.msk [vmem:[#allocation5 + $0x50] sm:$0xff] %vm931_vm14, %v1075_v27  ;;  %v1033_v17 = vpop.permute.xlu0 %1032 }
 0x2d2   :  { %1051 = vst.msk [vmem:[#allocation5 + $0x68] sm:$0xff] %vm882_vm13, %v1033_v17  ;;  %2883 = vrot.lane.b32.xlu1 %v5629_v59, %s4702_s0 }
 0x2d3   :  { %v5992_v47 = vld [vmem:[#allocation5 + $0x48] sm:$0xff]  ;;  %1099 = vst.msk [vmem:[#allocation5 + $0x68] sm:$0xff] %vm931_vm14, %v1081_v57  ;;  %2977 = vrot.lane.b32.xlu0 %v5629_v59, %s4703_s30 }
 0x2d4   :  { %2235 = vst.msk [vmem:[#allocation5 + $0x48] sm:$0xff] %vm24_vm10, %v5229_v15  ;;  %v1123_v36 = vpop.permute.xlu1 %1122 }
 0x2d5   :  { %2283 = vst.msk [vmem:[#allocation5 + $0x48] sm:$0xff] %vm882_vm13, %v5704_v0  ;;  %v1654_v15 = vpop.permute.xlu0 %1653 }
 0x2d6   :  { %2332 = vst.msk [vmem:[#allocation5 + $0x48] sm:$0xff] %vm931_vm14, %v5876_v18  ;;  %2931 = vrot.lane.b32.xlu1 %v5789_v23, %s4698_s27 }
 0x2d7   :  { %1147 = vst.msk [vmem:[#allocation5 + $0x68] sm:$0xff] %vm980_vm15, %v1129_v40  ;;  %2380 = vst.msk [vmem:[#allocation5 + $0x48] sm:$0xff] %vm980_vm15, %v5892_v58  ;;  %2885 = vrot.lane.b32.xlu0 %v5799_v10, %s4702_s0  ;;  %v2395_v0 = vld [vmem:[#allocation5 + $0x40] sm:$0xff] }
 0x2d8   :  { %1144 = vst.msk [vmem:[#allocation5 + $0x50] sm:$0xff] %vm980_vm15, %v1123_v36  ;;  %4592 = vmatprep.mubr.msk.f32.mxu0 %vm1170_vm2, %v2395_v0  ;;  %v1696_v59 = vpop.permute.xlu1 %1695  ;;  %v2845_v36 = vld [vmem:[#allocation3 + $0xf1] sm:$0xff] }
 0x2d9   :  { %2849 = vst.msk [vmem:[#allocation5 + $0x40] sm:$0xff] %vm24_vm10, %v1612_v56  ;;  %v2314_v25 = vpop.permute.xlu0 %2313 }
 0x2da   :  { %2334 = vst.msk [vmem:[#allocation5 + $0x58] sm:$0xff] %vm931_vm14, %v2314_v25  ;;  %2979 = vrot.lane.b32.xlu1 %v5799_v10, %s4703_s30 }
 0x2db   :  { %2933 = vrot.lane.b32.xlu0 %v5725_v21, %s4698_s27  ;;  %v2960_v21 = vld [vmem:[#allocation3 + $0x132] sm:$0xff] }
 0x2dc   :  { %v1744_v38 = vpop.permute.xlu1 %1743 }
 0x2dd   :  { %v2362_v37 = vpop.permute.xlu0 %2361 }
 0x2de   :  { %v1163_v20 = vld [vmem:[#allocation5 + $0x68] sm:$0xff]  ;;  %2382 = vst.msk [vmem:[#allocation5 + $0x58] sm:$0xff] %vm980_vm15, %v2362_v37  ;;  %2887 = vrot.lane.b32.xlu1 %v5767_v11, %s4702_s0  ;;  %s4704_s0 = smov 4  }
 0x2df   :  { %1624 = vst.msk [vmem:[#allocation5 + $0x68] sm:$0xff] %vm24_vm10, %v5666_v14  ;;  %v1160_v18 = vld [vmem:[#allocation5 + $0x50] sm:$0xff]  ;;  %v2396_v4 = vld [vmem:[#allocation5 + $0x48] sm:$0xff]  ;;  %2981 = vrot.lane.b32.xlu0 %v5767_v11, %s4703_s30  ;;  %v2231_v11 = vld [vmem:[#allocation3 + $0x100] sm:$0xff] }
 0x2e0   :  { %1672 = vst.msk [vmem:[#allocation5 + $0x68] sm:$0xff] %vm882_vm13, %v1654_v15  ;;  %4531 = vmatprep.mubr.msk.f32.mxu1 %vm1170_vm2, %v1160_v18  ;;  %4593 = vmatmul.mubr.msk.f32.gmra.mrb[30].mxu0 %vm1170_vm2, %v2396_v4  ;;  %v2316_v14 = vpop.permute.xlu1 %2315  ;;  %v2846_v15 = vld [vmem:[#allocation3 + $0x101] sm:$0xff] }
 0x2e1   :  { %1621 = vst.msk [vmem:[#allocation5 + $0x50] sm:$0xff] %vm24_vm10, %v5925_v55  ;;  %2850 = vst.msk [vmem:[#allocation5 + $0x48] sm:$0xff] %vm24_vm10, %v5925_v55  ;;  %4532 = vmatmul.mubr.msk.f32.gmra.mrb[4].mxu1 %vm1170_vm2, %v5883_v9  ;;  %v3001_v18 = vld [vmem:[#allocation5] sm:$0xff]  ;;  %v3002_v37 = vld [vmem:[#allocation5 + $0x8] sm:$0xff] }
 0x2e2   :  { %1720 = vst.msk [vmem:[#allocation5 + $0x68] sm:$0xff] %vm931_vm14, %v5947_v63  ;;  %2935 = vrot.lane.b32.xlu1 %v5889_v42, %s4698_s27 }
 0x2e3   :  { %1669 = vst.msk [vmem:[#allocation5 + $0x50] sm:$0xff] %vm882_vm13, %v5697_v50  ;;  %v2267_v50 = vpop.permute.xlu0 %2266 }
 0x2e4   :  { %1768 = vst.msk [vmem:[#allocation5 + $0x68] sm:$0xff] %vm980_vm15, %v5954_v12  ;;  %v1079_v10 = vpop.permute.xlu1 %1078 }
 0x2e5   :  { %1717 = vst.msk [vmem:[#allocation5 + $0x50] sm:$0xff] %vm931_vm14, %v1696_v59  ;;  %1098 = vst.msk [vmem:[#allocation5 + $0x60] sm:$0xff] %vm931_vm14, %v1079_v10  ;;  %v4518_v58 = vpop.f32.mrb[16].mxu0  ;;  %v2398_v32 = vld [vmem:[#allocation5 + $0x58] sm:$0xff] }
 0x2e6   :  { %1765 = vst.msk [vmem:[#allocation5 + $0x50] sm:$0xff] %vm980_vm15, %v1744_v38  ;;  %v1285_v31 = vpop.f32.mrb[17].mxu0  ;;  %2983 = vrot.lane.b32.xlu1 %v2960_v21, %s4703_s30 }
 0x2e7   :  { %v1085_v9 = vpop.permute.xlu0 %1084  ;;  %2852 = vst.msk [vmem:[#allocation5 + $0x58] sm:$0xff] %vm24_vm10, %v1615_v28  ;;  %1373 = vrot.lane.b32.xlu0 %v1285_v31, %s4704_s0 }
 0x2e8   :  { %v1127_v42 = vpop.permute.xlu1 %1126 }
 0x2e9   :  { %1146 = vst.msk [vmem:[#allocation5 + $0x60] sm:$0xff] %vm980_vm15, %v1127_v42 }
 0x2ea   :  { %1375 = vrot.lane.b32.xlu1 %v4518_v58, %s4704_s0  ;;  %v3004_v58 = vld [vmem:[#allocation5 + $0x18] sm:$0xff] }
 0x2eb   :  { %v6050_v60 = vld [vmem:[#allocation5 + $0x68] sm:$0xff]  ;;  %v1133_v57 = vpop.permute.xlu0 %1132 }
 0x2ec   :  { %2239 = vst.msk [vmem:[#allocation5 + $0x68] sm:$0xff] %vm24_vm10, %v2231_v11  ;;  %v1700_v55 = vpop.permute.xlu1 %1699 }
 0x2ed   :  { %v6053_v53 = vld [vmem:[#allocation5 + $0x50] sm:$0xff]  ;;  %2287 = vst.msk [vmem:[#allocation5 + $0x68] sm:$0xff] %vm882_vm13, %v5982_v1 }
 0x2ee   :  { %2236 = vst.msk [vmem:[#allocation5 + $0x50] sm:$0xff] %vm24_vm10, %v5255_v24 }
 0x2ef   :  { %2284 = vst.msk [vmem:[#allocation5 + $0x50] sm:$0xff] %vm882_vm13, %v5908_v19  ;;  %v1706_v24 = vpop.permute.xlu0 %1705 }
 0x2f0   :  { %2333 = vst.msk [vmem:[#allocation5 + $0x50] sm:$0xff] %vm931_vm14, %v5964_v35  ;;  %v1162_v26 = vld [vmem:[#allocation5 + $0x60] sm:$0xff]  ;;  %v1748_v3 = vpop.permute.xlu1 %1747  ;;  %v4273_v35 = vld [vmem:[%s8598_s3 + $0x70] sm:$0xff] }
 0x2f1   :  { %2381 = vst.msk [vmem:[#allocation5 + $0x50] sm:$0xff] %vm980_vm15, %v5978_v41  ;;  %4534 = vmatprep.mubr.msk.f32.mxu1 %vm1170_vm2, %v1162_v26  ;;  %v4274_v41 = vld [vmem:[%s8598_s3 + $0x78] sm:$0xff] }
 0x2f2   :  { %1623 = vst.msk [vmem:[#allocation5 + $0x60] sm:$0xff] %vm24_vm10, %v1615_v28  ;;  %4535 = vmatmul.mubr.msk.f32.gmra.mrb[6].mxu1 %vm1170_vm2, %v1163_v20  ;;  %v4680_v1 = vpack.c.bf16 %v4274_v41, %v4273_v35  ;;  %v2848_v28 = vld [vmem:[#allocation3 + $0x121] sm:$0xff] }
 0x2f3   :  { %v1754_v40 = vpop.permute.xlu0 %1753  ;;  %1671 = vst.msk [vmem:[#allocation5 + $0x60] sm:$0xff] %vm882_vm13, %v5830_v8 }
 0x2f4   :  { %1719 = vst.msk [vmem:[#allocation5 + $0x60] sm:$0xff] %vm931_vm14, %v1700_v55  ;;  %v1083_v39 = vpop.permute.xlu1 %1082 }
 0x2f5   :  { %1767 = vst.msk [vmem:[#allocation5 + $0x60] sm:$0xff] %vm980_vm15, %v1748_v3 }
 0x2f6   :  { %1100 = vst.msk [vmem:[#allocation5 + $0x70] sm:$0xff] %vm931_vm14, %v1083_v39 }
 0x2f7   :  { %v1037_v29 = vpop.permute.xlu0 %1036 }
 0x2f8   :  { %v2397_v19 = vld [vmem:[#allocation5 + $0x50] sm:$0xff]  ;;  %1053 = vst.msk [vmem:[#allocation5 + $0x78] sm:$0xff] %vm882_vm13, %v1037_v29  ;;  %v1131_v8 = vpop.permute.xlu1 %1130 }
 0x2f9   :  { %4595 = vmatprep.mubr.msk.f32.mxu0 %vm1170_vm2, %v2397_v19  ;;  %2851 = vst.msk [vmem:[#allocation5 + $0x50] sm:$0xff] %vm24_vm10, %v2843_v5 }
 0x2fa   :  { %4596 = vmatmul.mubr.msk.f32.gmra.mrb[32].mxu0 %vm1170_vm2, %v2398_v32  ;;  %1101 = vst.msk [vmem:[#allocation5 + $0x78] sm:$0xff] %vm931_vm14, %v1085_v9 }
 0x2fb   :  { %1149 = vst.msk [vmem:[#allocation5 + $0x78] sm:$0xff] %vm980_vm15, %v1133_v57  ;;  %1148 = vst.msk [vmem:[#allocation5 + $0x70] sm:$0xff] %vm980_vm15, %v1131_v8  ;;  %v1658_v46 = vpop.permute.xlu0 %1657 }
 0x2fc   :  { %v6084_v6 = vld [vmem:[#allocation5 + $0x60] sm:$0xff]  ;;  %v1704_v63 = vpop.permute.xlu1 %1703 }
 0x2fd   :  { %2238 = vst.msk [vmem:[#allocation5 + $0x60] sm:$0xff] %vm24_vm10, %v5291_v33 }
 0x2fe   :  { %2286 = vst.msk [vmem:[#allocation5 + $0x60] sm:$0xff] %vm882_vm13, %v2267_v50 }
 0x2ff   :  { %v2724_v16 = vpop.permute.xlu0 %2723  ;;  %2335 = vst.msk [vmem:[#allocation5 + $0x60] sm:$0xff] %vm931_vm14, %v2316_v14  ;;  %v3003_v14 = vld [vmem:[#allocation5 + $0x10] sm:$0xff] }
 0x300   :  { %2742 = vst.msk [vmem:[#allocation5 + $0x28] sm:$0xff] %vm882_vm13, %v2724_v16  ;;  %v1752_v56 = vpop.permute.xlu1 %1751 }
 0x302   :  { %v1165_v12 = vld [vmem:[#allocation5 + $0x78] sm:$0xff]  ;;  %v1164_v49 = vld [vmem:[#allocation5 + $0x70] sm:$0xff] }
 0x303   :  { %1626 = vst.msk [vmem:[#allocation5 + $0x78] sm:$0xff] %vm24_vm10, %v5789_v23  ;;  %1625 = vst.msk [vmem:[#allocation5 + $0x70] sm:$0xff] %vm24_vm10, %v5584_v44  ;;  %v2318_v33 = vpop.permute.xlu0 %2317  ;;  %4537 = vmatprep.mubr.msk.f32.mxu1 %vm1170_vm2, %v1164_v49 }
 0x304   :  { %1674 = vst.msk [vmem:[#allocation5 + $0x78] sm:$0xff] %vm882_vm13, %v1658_v46  ;;  %1673 = vst.msk [vmem:[#allocation5 + $0x70] sm:$0xff] %vm882_vm13, %v5968_v13  ;;  %4538 = vmatmul.mubr.msk.f32.gmra.mrb[8].mxu1 %vm1170_vm2, %v1165_v12  ;;  %v2770_v44 = vpop.permute.xlu1 %2769 }
 0x305   :  { %1722 = vst.msk [vmem:[#allocation5 + $0x78] sm:$0xff] %vm931_vm14, %v1706_v24  ;;  %2336 = vst.msk [vmem:[#allocation5 + $0x68] sm:$0xff] %vm931_vm14, %v2318_v33  ;;  %4548 = vmatprep.mubr.msk.f32.mxu1 %vm1170_vm2, %v5475_v61 }
 0x306   :  { %1770 = vst.msk [vmem:[#allocation5 + $0x78] sm:$0xff] %vm980_vm15, %v1754_v40 }
 0x307   :  { %1721 = vst.msk [vmem:[#allocation5 + $0x70] sm:$0xff] %vm931_vm14, %v1704_v63  ;;  %2789 = vst.msk [vmem:[#allocation5 + $0x20] sm:$0xff] %vm931_vm14, %v2770_v44  ;;  %v2772_v27 = vpop.permute.xlu0 %2771 }
 0x308   :  { %1769 = vst.msk [vmem:[#allocation5 + $0x70] sm:$0xff] %vm980_vm15, %v1752_v56  ;;  %4549 = vmatmul.mubr.msk.f32.vlgmr.msra.gmra.mrb[10].mxu1 %vm1170_vm2, %v5462_v54  ;;  %v2364_v13 = vpop.permute.xlu1 %2363 }
 0x309   :  { %2790 = vst.msk [vmem:[#allocation5 + $0x28] sm:$0xff] %vm931_vm14, %v2772_v27  ;;  %4551 = vmatprep.mubr.msk.f32.mxu1 %vm1170_vm2, %v5616_v51  ;;  %4679 = vmatpush3.bf16.msra.mxu1 %v5878_v52 }
 0x30a   :  { %4681 = vmatprep.subr.bf16.mxu1 %v4680_v1  ;;  %2383 = vst.msk [vmem:[#allocation5 + $0x60] sm:$0xff] %vm980_vm15, %v2364_v13 }
 0x30b   :  { %v2366_v61 = vpop.permute.xlu0 %2365 }
 0x30c   :  { %2384 = vst.msk [vmem:[#allocation5 + $0x68] sm:$0xff] %vm980_vm15, %v2366_v61  ;;  %4552 = vmatmul.mubr.msk.f32.gmra.mrb[12].mxu1 %vm1170_vm2, %v5594_v48  ;;  %v2818_v51 = vpop.permute.xlu1 %2817 }
 0x30d   :  { %v1786_v17 = vld [vmem:[#allocation5 + $0x78] sm:$0xff]  ;;  %4554 = vmatprep.mubr.msk.f32.mxu1 %vm1170_vm2, %v5769_v22  ;;  %4683 = vmatpush3.bf16.msra.mxu1 %v4680_v1  ;;  %2837 = vst.msk [vmem:[#allocation5 + $0x20] sm:$0xff] %vm980_vm15, %v2818_v51 }
 0x30e   :  { %2241 = vst.msk [vmem:[#allocation5 + $0x78] sm:$0xff] %vm24_vm10, %v5706_v34 }
 0x30f   :  { %v1785_v54 = vld [vmem:[#allocation5 + $0x70] sm:$0xff]  ;;  %v2271_v52 = vpop.permute.xlu0 %2270 }
 0x310   :  { %2240 = vst.msk [vmem:[#allocation5 + $0x70] sm:$0xff] %vm24_vm10, %v5376_v62  ;;  %4555 = vmatmul.mubr.msk.f32.gmra.mrb[14].mxu1 %vm1170_vm2, %v5740_v30  ;;  %v2820_v48 = vpop.permute.xlu1 %2819 }
 0x311   :  { %2288 = vst.msk [vmem:[#allocation5 + $0x70] sm:$0xff] %vm882_vm13, %v2271_v52  ;;  %4557 = vmatprep.mubr.msk.f32.mxu1 %vm1170_vm2, %v5679_v7  ;;  %v2399_v22 = vld [vmem:[#allocation5 + $0x60] sm:$0xff] }
 0x312   :  { %2838 = vst.msk [vmem:[#allocation5 + $0x28] sm:$0xff] %vm980_vm15, %v2820_v48  ;;  %4598 = vmatprep.mubr.msk.f32.mxu0 %vm1170_vm2, %v2399_v22  ;;  %v3295_v22 = vld [vmem:[%s8599_s1] sm:$0xff] }
 0x313   :  { %v2273_v34 = vpop.permute.xlu0 %2272  ;;  %v2400_v62 = vld [vmem:[#allocation5 + $0x68] sm:$0xff]  ;;  %2853 = vst.msk [vmem:[#allocation5 + $0x60] sm:$0xff] %vm24_vm10, %v2845_v36 }
 0x314   :  { %2289 = vst.msk [vmem:[#allocation5 + $0x78] sm:$0xff] %vm882_vm13, %v2273_v34  ;;  %4558 = vmatmul.mubr.msk.f32.gmra.mrb[16].mxu1 %vm1170_vm2, %v5906_v43  ;;  %4599 = vmatmul.mubr.msk.f32.gmra.mrb[34].mxu0 %vm1170_vm2, %v2400_v62  ;;  %v2726_v7 = vpop.permute.xlu1 %2725  ;;  %v3005_v32 = vld [vmem:[#allocation5 + $0x20] sm:$0xff]  ;;  %v3296_v62 = vld [vmem:[%s8599_s1 + $0x8] sm:$0xff] }
 0x315   :  { %2854 = vst.msk [vmem:[#allocation5 + $0x68] sm:$0xff] %vm24_vm10, %v2846_v15  ;;  %4560 = vmatprep.mubr.msk.f32.mxu1 %vm1170_vm2, %v5976_v2 }
 0x316   :  { %2743 = vst.msk [vmem:[#allocation5 + $0x30] sm:$0xff] %vm882_vm13, %v2726_v7 }
 0x317   :  { %v2728_v30 = vpop.permute.xlu0 %2727 }
 0x318   :  { %2744 = vst.msk [vmem:[#allocation5 + $0x38] sm:$0xff] %vm882_vm13, %v2728_v30  ;;  %4561 = vmatmul.mubr.msk.f32.gmra.mrb[18].mxu1 %vm1170_vm2, %v5992_v47  ;;  %v2320_v43 = vpop.permute.xlu1 %2319 }
 0x319   :  { %4563 = vmatprep.mubr.msk.f32.mxu1 %vm1170_vm2, %v6053_v53  ;;  %2337 = vst.msk [vmem:[#allocation5 + $0x70] sm:$0xff] %vm931_vm14, %v2320_v43  ;;  %v4521_v59 = vpop.f32.mrb[18].mxu0  ;;  %v3006_v11 = vld [vmem:[#allocation5 + $0x28] sm:$0xff] }
 0x31a   :  { %v1295_v2 = vpop.f32.mrb[19].mxu0  ;;  %1379 = vrot.lane.b32.xlu0 %v4521_v59, %s4704_s0 }
 0x31b   :  { %v2322_v0 = vpop.permute.xlu0 %2321 }
 0x31c   :  { %2338 = vst.msk [vmem:[#allocation5 + $0x78] sm:$0xff] %vm931_vm14, %v2322_v0  ;;  %4564 = vmatmul.mubr.msk.f32.gmra.mrb[20].mxu1 %vm1170_vm2, %v5927_v45  ;;  %v2774_v47 = vpop.permute.xlu1 %2773 }
 0x31d   :  { %4566 = vmatprep.mubr.msk.f32.mxu1 %vm1170_vm2, %v6084_v6  ;;  %2791 = vst.msk [vmem:[#allocation5 + $0x30] sm:$0xff] %vm931_vm14, %v2774_v47 }
 0x31e   :  { %1377 = vrot.lane.b32.xlu0 %v1295_v2, %s4704_s0  ;;  %v3298_v2 = vld [vmem:[%s8599_s1 + $0x18] sm:$0xff] }
 0x31f   :  { %v2776_v25 = vpop.permute.xlu0 %2775 }
 0x320   :  { %2792 = vst.msk [vmem:[#allocation5 + $0x38] sm:$0xff] %vm931_vm14, %v2776_v25  ;;  %4567 = vmatmul.mubr.msk.f32.gmra.mrb[22].mxu1 %vm1170_vm2, %v6050_v60  ;;  %v2368_v20 = vpop.permute.xlu1 %2367  ;;  %v3297_v25 = vld [vmem:[%s8599_s1 + $0x10] sm:$0xff] }
 0x321   :  { %4569 = vmatprep.mubr.msk.f32.mxu1 %vm1170_vm2, %v1785_v54  ;;  %2385 = vst.msk [vmem:[#allocation5 + $0x70] sm:$0xff] %vm980_vm15, %v2368_v20 }
 0x323   :  { %v2370_v45 = vpop.permute.xlu0 %2369 }
 0x324   :  { %2386 = vst.msk [vmem:[#allocation5 + $0x78] sm:$0xff] %vm980_vm15, %v2370_v45  ;;  %4570 = vmatmul.mubr.msk.f32.gmra.mrb[24].mxu1 %vm1170_vm2, %v1786_v17  ;;  %v2822_v38 = vpop.permute.xlu1 %2821 }
 0x325   :  { %4612 = vmatprep.mubr.msk.f32.mxu1 %vm1170_vm2, %v3001_v18  ;;  %2839 = vst.msk [vmem:[#allocation5 + $0x30] sm:$0xff] %vm980_vm15, %v2822_v38 }
 0x327   :  { %v2874_v4 = vpop.permute.xlu0 %2873 }
 0x328   :  { %2897 = vst.msk [vmem:[#allocation5 + $0x40] sm:$0xff] %vm882_vm13, %v2874_v4  ;;  %4613 = vmatmul.mubr.msk.f32.vlgmr.msra.gmra.mrb[26].mxu1 %vm1170_vm2, %v3002_v37  ;;  %v2824_v50 = vpop.permute.xlu1 %2823  ;;  %v2401_v21 = vld [vmem:[#allocation5 + $0x70] sm:$0xff] }
 0x329   :  { %4615 = vmatprep.mubr.msk.f32.mxu1 %vm1170_vm2, %v3003_v14  ;;  %2840 = vst.msk [vmem:[#allocation5 + $0x38] sm:$0xff] %vm980_vm15, %v2824_v50  ;;  %4601 = vmatprep.mubr.msk.f32.mxu0 %vm1170_vm2, %v2401_v21 }
 0x32a   :  { %2855 = vst.msk [vmem:[#allocation5 + $0x70] sm:$0xff] %vm24_vm10, %v5789_v23 }
 0x32b   :  { %v2922_v10 = vpop.permute.xlu0 %2921  ;;  %v2402_v9 = vld [vmem:[#allocation5 + $0x78] sm:$0xff] }
 0x32c   :  { %2945 = vst.msk [vmem:[#allocation5 + $0x40] sm:$0xff] %vm931_vm14, %v2922_v10  ;;  %4602 = vmatmul.mubr.msk.f32.gmra.mrb[36].mxu0 %vm1170_vm2, %v2402_v9  ;;  %4616 = vmatmul.mubr.msk.f32.gmra.mrb[28].mxu1 %vm1170_vm2, %v3004_v58  ;;  %v2876_v31 = vpop.permute.xlu1 %2875  ;;  %v3007_v23 = vld [vmem:[#allocation5 + $0x30] sm:$0xff]  ;;  %v3300_v10 = vld [vmem:[%s8599_s1 + $0x28] sm:$0xff]  ;;  %v3299_v58 = vld [vmem:[%s8599_s1 + $0x20] sm:$0xff] }
 0x32d   :  { %2856 = vst.msk [vmem:[#allocation5 + $0x78] sm:$0xff] %vm24_vm10, %v2848_v28  ;;  %4618 = vmatprep.mubr.msk.f32.mxu1 %vm1170_vm2, %v3005_v32 }
 0x32e   :  { %2898 = vst.msk [vmem:[#allocation5 + $0x48] sm:$0xff] %vm882_vm13, %v2876_v31 }
 0x32f   :  { %v2970_v60 = vpop.permute.xlu0 %2969 }
 0x330   :  { %2993 = vst.msk [vmem:[#allocation5 + $0x40] sm:$0xff] %vm980_vm15, %v2970_v60  ;;  %4619 = vmatmul.mubr.msk.f32.gmra.mrb[30].mxu1 %vm1170_vm2, %v3006_v11  ;;  %v2924_v53 = vpop.permute.xlu1 %2923  ;;  %v3008_v42 = vld [vmem:[#allocation5 + $0x38] sm:$0xff] }
 0x331   :  { %4621 = vmatprep.mubr.msk.f32.mxu1 %vm1170_vm2, %v3007_v23  ;;  %2946 = vst.msk [vmem:[#allocation5 + $0x48] sm:$0xff] %vm931_vm14, %v2924_v53 }
 0x333   :  { %v2878_v57 = vpop.permute.xlu0 %2877 }
 0x334   :  { %2899 = vst.msk [vmem:[#allocation5 + $0x50] sm:$0xff] %vm882_vm13, %v2878_v57  ;;  %4622 = vmatmul.mubr.msk.f32.gmra.mrb[32].mxu1 %vm1170_vm2, %v3008_v42  ;;  %v2972_v55 = vpop.permute.xlu1 %2971 }
 0x335   :  { %2994 = vst.msk [vmem:[#allocation5 + $0x48] sm:$0xff] %vm980_vm15, %v2972_v55 }
 0x337   :  { %v2926_v24 = vpop.permute.xlu0 %2925  ;;  %v3009_v26 = vld [vmem:[#allocation5 + $0x40] sm:$0xff] }
 0x338   :  { %2947 = vst.msk [vmem:[#allocation5 + $0x50] sm:$0xff] %vm931_vm14, %v2926_v24  ;;  %4624 = vmatprep.mubr.msk.f32.mxu1 %vm1170_vm2, %v3009_v26  ;;  %v2880_v3 = vpop.permute.xlu1 %2879 }
 0x339   :  { %2900 = vst.msk [vmem:[#allocation5 + $0x58] sm:$0xff] %vm882_vm13, %v2880_v3 }
 0x33b   :  { %v2974_v40 = vpop.permute.xlu0 %2973 }
 0x33c   :  { %2995 = vst.msk [vmem:[#allocation5 + $0x50] sm:$0xff] %vm980_vm15, %v2974_v40  ;;  %v2928_v19 = vpop.permute.xlu1 %2927  ;;  %v3010_v5 = vld [vmem:[#allocation5 + $0x48] sm:$0xff] }
 0x33d   :  { %2948 = vst.msk [vmem:[#allocation5 + $0x58] sm:$0xff] %vm931_vm14, %v2928_v19  ;;  %4625 = vmatmul.mubr.msk.f32.gmra.mrb[34].mxu1 %vm1170_vm2, %v3010_v5 }
 0x33f   :  { %v2882_v39 = vpop.permute.xlu0 %2881 }
 0x340   :  { %2901 = vst.msk [vmem:[#allocation5 + $0x60] sm:$0xff] %vm882_vm13, %v2882_v39  ;;  %v2976_v29 = vpop.permute.xlu1 %2975 }
 0x341   :  { %2996 = vst.msk [vmem:[#allocation5 + $0x58] sm:$0xff] %vm980_vm15, %v2976_v29 }
 0x343   :  { %v2930_v8 = vpop.permute.xlu0 %2929  ;;  %v3011_v46 = vld [vmem:[#allocation5 + $0x50] sm:$0xff] }
 0x344   :  { %2949 = vst.msk [vmem:[#allocation5 + $0x60] sm:$0xff] %vm931_vm14, %v2930_v8  ;;  %4627 = vmatprep.mubr.msk.f32.mxu1 %vm1170_vm2, %v3011_v46  ;;  %v2884_v6 = vpop.permute.xlu1 %2883  ;;  %v3302_v46 = vld [vmem:[%s8599_s1 + $0x38] sm:$0xff] }
 0x345   :  { %2902 = vst.msk [vmem:[#allocation5 + $0x68] sm:$0xff] %vm882_vm13, %v2884_v6 }
 0x347   :  { %v2978_v63 = vpop.permute.xlu0 %2977 }
 0x348   :  { %2997 = vst.msk [vmem:[#allocation5 + $0x60] sm:$0xff] %vm980_vm15, %v2978_v63  ;;  %v2932_v16 = vpop.permute.xlu1 %2931  ;;  %v3012_v12 = vld [vmem:[#allocation5 + $0x58] sm:$0xff] }
 0x349   :  { %2950 = vst.msk [vmem:[#allocation5 + $0x68] sm:$0xff] %vm931_vm14, %v2932_v16  ;;  %v4524_v56 = vpop.f32.mrb[20].mxu0  ;;  %4628 = vmatmul.mubr.msk.f32.gmra.mrb[36].mxu1 %vm1170_vm2, %v3012_v12  ;;  %v3301_v12 = vld [vmem:[%s8599_s1 + $0x30] sm:$0xff] }
 0x34a   :  { %v1305_v33 = vpop.f32.mrb[21].mxu0  ;;  %1383 = vrot.lane.b32.xlu0 %v4524_v56, %s4704_s0 }
 0x34b   :  { %v2886_v49 = vpop.permute.xlu0 %2885 }
 0x34c   :  { %2903 = vst.msk [vmem:[#allocation5 + $0x70] sm:$0xff] %vm882_vm13, %v2886_v49  ;;  %v2980_v35 = vpop.permute.xlu1 %2979 }
 0x34d   :  { %2998 = vst.msk [vmem:[#allocation5 + $0x68] sm:$0xff] %vm980_vm15, %v2980_v35  ;;  %v4582_v44 = vpop.f32.mrb[22].mxu0 }
 0x34e   :  { %v2522_v27 = vpop.f32.mrb[23].mxu0  ;;  %1381 = vrot.lane.b32.xlu0 %v1305_v33, %s4704_s0 }
 0x34f   :  { %v2934_v41 = vpop.permute.xlu0 %2933  ;;  %v3013_v1 = vld [vmem:[#allocation5 + $0x60] sm:$0xff] }
 0x350   :  { %2951 = vst.msk [vmem:[#allocation5 + $0x70] sm:$0xff] %vm931_vm14, %v2934_v41  ;;  %4630 = vmatprep.mubr.msk.f32.mxu1 %vm1170_vm2, %v3013_v1  ;;  %v2888_v13 = vpop.permute.xlu1 %2887 }
 0x351   :  { %2904 = vst.msk [vmem:[#allocation5 + $0x78] sm:$0xff] %vm882_vm13, %v2888_v13  ;;  %v4585_v17 = vpop.f32.mrb[24].mxu0 }
 0x352   :  { %v2532_v54 = vpop.f32.mrb[25].mxu0 }
 0x353   :  { %v2982_v61 = vpop.permute.xlu0 %2981 }
 0x354   :  { %2999 = vst.msk [vmem:[#allocation5 + $0x70] sm:$0xff] %vm980_vm15, %v2982_v61  ;;  %v2936_v51 = vpop.permute.xlu1 %2935  ;;  %v3014_v52 = vld [vmem:[#allocation5 + $0x68] sm:$0xff] }
 0x355   :  { %2952 = vst.msk [vmem:[#allocation5 + $0x78] sm:$0xff] %vm931_vm14, %v2936_v51  ;;  %4631 = vmatmul.mubr.msk.f32.gmra.mrb[38].mxu1 %vm1170_vm2, %v3014_v52 }
 0x358   :  { %v2984_v48 = vpop.permute.xlu1 %2983 }
 0x359   :  { %3000 = vst.msk [vmem:[#allocation5 + $0x78] sm:$0xff] %vm980_vm15, %v2984_v48  ;;  %v1374_v36 = vpop.permute.xlu0 %1373 }
 0x35a   :  { %1400 = vst.msk [vmem:[%s8600_s5] sm:$0xff] %vm1399_vm3, %v1374_v36 }
 0x35b   :  { %v3015_v34 = vld [vmem:[#allocation5 + $0x70] sm:$0xff]  ;;  %3328 = vst.msk [vmem:[%s8600_s5] sm:$0xff] %vm3327_vm4, %v3295_v22  ;;  %v4300_v22 = vld [vmem:[%s8599_s1 + $0x108] sm:$0xff] }
 0x35c   :  { %4633 = vmatprep.mubr.msk.f32.mxu1 %vm1170_vm2, %v3015_v34  ;;  %v1376_v15 = vpop.permute.xlu1 %1375  ;;  %v4299_v34 = vld [vmem:[%s8599_s1 + $0x100] sm:$0xff] }
 0x35d   :  { %1401 = vst.msk [vmem:[%s8600_s5 + $0x8] sm:$0xff] %vm1399_vm3, %v1376_v15 }
 0x35e   :  { %3329 = vst.msk [vmem:[%s8600_s5 + $0x8] sm:$0xff] %vm3327_vm4, %v3296_v62 }
 0x360   :  { %v3016_v7 = vld [vmem:[#allocation5 + $0x78] sm:$0xff] }
 0x361   :  { %4634 = vmatmul.mubr.msk.f32.gmra.mrb[40].mxu1 %vm1170_vm2, %v3016_v7 }
 0x37a   :  { %v4527_v30 = vpop.f32.mrb[0].mxu1 }
 0x37b   :  { %v1315_v43 = vpop.f32.mrb[1].mxu1  ;;  %1387 = vrot.lane.b32.xlu0 %v4527_v30, %s4704_s0  ;;  %v3312_v30 = vld [vmem:[%s8599_s1 + $0x88] sm:$0xff] }
 0x37f   :  { %1385 = vrot.lane.b32.xlu0 %v1315_v43, %s4704_s0 }
 0x380   :  { %v4588_v0 = vpop.f32.mrb[26].mxu0 }
 0x381   :  { %v2542_v59 = vpop.f32.mrb[27].mxu0 }
 0x38c   :  { %v1380_v47 = vpop.permute.xlu0 %1379 }
 0x38d   :  { %1403 = vst.msk [vmem:[%s8600_s5 + $0x18] sm:$0xff] %vm1399_vm3, %v1380_v47 }
 0x38e   :  { %3331 = vst.msk [vmem:[%s8600_s5 + $0x18] sm:$0xff] %vm3327_vm4, %v3298_v2  ;;  %v3314_v2 = vld [vmem:[%s8599_s1 + $0x98] sm:$0xff] }
 0x390   :  { %v1378_v45 = vpop.permute.xlu0 %1377 }
 0x391   :  { %1402 = vst.msk [vmem:[%s8600_s5 + $0x10] sm:$0xff] %vm1399_vm3, %v1378_v45  ;;  %v3313_v45 = vld [vmem:[%s8599_s1 + $0x90] sm:$0xff] }
 0x392   :  { %v6255_v20 = vpop.f32.mrb[28].mxu0  ;;  %3330 = vst.msk [vmem:[%s8600_s5 + $0x10] sm:$0xff] %vm3327_vm4, %v3297_v25 }
 0x393   :  { %v2552_v18 = vpop.f32.mrb[29].mxu0 }
 0x39c   :  { %v4530_v38 = vpop.f32.mrb[2].mxu1 }
 0x39d   :  { %v1325_v4 = vpop.f32.mrb[3].mxu1  ;;  %1419 = vrot.lane.b32.xlu1 %v4530_v38, %s4704_s0  ;;  %v3316_v38 = vld [vmem:[%s8599_s1 + $0xa8] sm:$0xff] }
 0x39e   :  { %1417 = vrot.lane.b32.xlu0 %v1325_v4, %s4704_s0 }
 0x3a2   :  { %2611 = vrot.lane.b32.xlu0 %v4582_v44, %s4704_s0 }
 0x3a6   :  { %2609 = vrot.lane.b32.xlu0 %v2522_v27, %s4704_s0 }
 0x3aa   :  { %2615 = vrot.lane.b32.xlu0 %v4585_v17, %s4704_s0 }
 0x3ae   :  { %2613 = vrot.lane.b32.xlu0 %v2532_v54, %s4704_s0 }
 0x3b2   :  { %2619 = vrot.lane.b32.xlu0 %v4588_v0, %s4704_s0  ;;  %v3311_v0 = vld [vmem:[%s8599_s1 + $0x80] sm:$0xff] }
 0x3b3   :  { %v4594_v37 = vpop.f32.mrb[30].mxu0 }
 0x3b4   :  { %v4533_v14 = vpop.f32.mrb[4].mxu1  ;;  %v2562_v50 = vpop.f32.mrb[31].mxu0 }
 0x3b5   :  { %v1335_v21 = vpop.f32.mrb[5].mxu1  ;;  %1423 = vrot.lane.b32.xlu1 %v4533_v14, %s4704_s0 }
 0x3b6   :  { %2617 = vrot.lane.b32.xlu0 %v2542_v59, %s4704_s0 }
 0x3b9   :  { %1421 = vrot.lane.b32.xlu1 %v1335_v21, %s4704_s0 }
 0x3bc   :  { %v1384_v9 = vpop.permute.xlu0 %1383 }
 0x3bd   :  { %1405 = vst.msk [vmem:[%s8600_s5 + $0x28] sm:$0xff] %vm1399_vm3, %v1384_v9 }
 0x3be   :  { %3333 = vst.msk [vmem:[%s8600_s5 + $0x28] sm:$0xff] %vm3327_vm4, %v3300_v10  ;;  %v4301_v10 = vld [vmem:[%s8599_s1 + $0x110] sm:$0xff] }
 0x3c0   :  { %v1382_v28 = vpop.permute.xlu0 %1381 }
 0x3c1   :  { %1404 = vst.msk [vmem:[%s8600_s5 + $0x20] sm:$0xff] %vm1399_vm3, %v1382_v28 }
 0x3c2   :  { %3332 = vst.msk [vmem:[%s8600_s5 + $0x20] sm:$0xff] %vm3327_vm4, %v3299_v58 }
 0x3c5   :  { %v4536_v32 = vpop.f32.mrb[6].mxu1 }
 0x3c6   :  { %v1345_v31 = vpop.f32.mrb[7].mxu1  ;;  %1427 = vrot.lane.b32.xlu1 %v4536_v32, %s4704_s0 }
 0x3ca   :  { %1425 = vrot.lane.b32.xlu1 %v1345_v31, %s4704_s0 }
 0x3cd   :  { %v4597_v60 = vpop.f32.mrb[32].mxu0 }
 0x3ce   :  { %v2572_v11 = vpop.f32.mrb[33].mxu0 }
 0x3d7   :  { %v4539_v23 = vpop.f32.mrb[8].mxu1 }
 0x3d8   :  { %1431 = vrot.lane.b32.xlu1 %v4539_v23, %s4704_s0  ;;  %v1355_v53 = vpop.f32.mrb[9].mxu1  ;;  %v4303_v23 = vld [vmem:[%s8599_s1 + $0x120] sm:$0xff] }
 0x3db   :  { %v4550_v42 = vpop.f32.mrb[10].mxu1 }
 0x3dc   :  { %1429 = vrot.lane.b32.xlu1 %v1355_v53, %s4704_s0  ;;  %1995 = vrot.lane.b32.xlu0 %v4550_v42, %s4704_s0  ;;  %v1906_v57 = vpop.f32.mrb[11].mxu1  ;;  %v4306_v42 = vld [vmem:[%s8599_s1 + $0x138] sm:$0xff] }
 0x3df   :  { %v4553_v55 = vpop.f32.mrb[12].mxu1 }
 0x3e0   :  { %2651 = vrot.lane.b32.xlu1 %v4594_v37, %s4704_s0  ;;  %1993 = vrot.lane.b32.xlu0 %v1906_v57, %s4704_s0  ;;  %v1916_v24 = vpop.f32.mrb[13].mxu1  ;;  %v4302_v37 = vld [vmem:[%s8599_s1 + $0x118] sm:$0xff] }
 0x3e3   :  { %v4556_v26 = vpop.f32.mrb[14].mxu1 }
 0x3e4   :  { %2649 = vrot.lane.b32.xlu1 %v2562_v50, %s4704_s0  ;;  %2621 = vrot.lane.b32.xlu0 %v2552_v18, %s4704_s0  ;;  %v1926_v3 = vpop.f32.mrb[15].mxu1  ;;  %v3315_v50 = vld [vmem:[%s8599_s1 + $0xa0] sm:$0xff] }
 0x3e7   :  { %v4559_v40 = vpop.f32.mrb[16].mxu1  ;;  %v4600_v19 = vpop.f32.mrb[34].mxu0 }
 0x3e8   :  { %v2582_v5 = vpop.f32.mrb[35].mxu0  ;;  %2655 = vrot.lane.b32.xlu1 %v4597_v60, %s4704_s0  ;;  %1999 = vrot.lane.b32.xlu0 %v4553_v55, %s4704_s0  ;;  %v1936_v39 = vpop.f32.mrb[17].mxu1  ;;  %v4304_v60 = vld [vmem:[%s8599_s1 + $0x128] sm:$0xff]  ;;  %v4305_v55 = vld [vmem:[%s8599_s1 + $0x130] sm:$0xff] }
 0x3eb   :  { %v4562_v29 = vpop.f32.mrb[18].mxu1 }
 0x3ec   :  { %2653 = vrot.lane.b32.xlu1 %v2572_v11, %s4704_s0  ;;  %1997 = vrot.lane.b32.xlu0 %v1916_v24, %s4704_s0  ;;  %v1946_v8 = vpop.f32.mrb[19].mxu1  ;;  %v3304_v24 = vld [vmem:[%s8599_s1 + $0x48] sm:$0xff] }
 0x3ed   :  { %v1388_v6 = vpop.permute.xlu0 %1387 }
 0x3ee   :  { %1407 = vst.msk [vmem:[%s8600_s5 + $0x38] sm:$0xff] %vm1399_vm3, %v1388_v6 }
 0x3ef   :  { %v4565_v63 = vpop.f32.mrb[20].mxu1  ;;  %3335 = vst.msk [vmem:[%s8600_s5 + $0x38] sm:$0xff] %vm3327_vm4, %v3302_v46 }
 0x3f0   :  { %2659 = vrot.lane.b32.xlu1 %v4600_v19, %s4704_s0  ;;  %2003 = vrot.lane.b32.xlu0 %v4556_v26, %s4704_s0  ;;  %v1956_v16 = vpop.f32.mrb[21].mxu1  ;;  %v3303_v19 = vld [vmem:[%s8599_s1 + $0x40] sm:$0xff] }
 0x3f1   :  { %v1386_v49 = vpop.permute.xlu0 %1385 }
 0x3f2   :  { %1406 = vst.msk [vmem:[%s8600_s5 + $0x30] sm:$0xff] %vm1399_vm3, %v1386_v49 }
 0x3f3   :  { %v4568_v56 = vpop.f32.mrb[22].mxu1  ;;  %3334 = vst.msk [vmem:[%s8600_s5 + $0x30] sm:$0xff] %vm3327_vm4, %v3301_v12 }
 0x3f4   :  { %2657 = vrot.lane.b32.xlu1 %v2582_v5, %s4704_s0  ;;  %2001 = vrot.lane.b32.xlu0 %v1926_v3, %s4704_s0  ;;  %v1966_v33 = vpop.f32.mrb[23].mxu1 }
 0x3f7   :  { %v4571_v35 = vpop.f32.mrb[24].mxu1 }
 0x3f8   :  { %2007 = vrot.lane.b32.xlu0 %v4559_v40, %s4704_s0  ;;  %2035 = vrot.lane.b32.xlu1 %v4562_v29, %s4704_s0  ;;  %v1976_v41 = vpop.f32.mrb[25].mxu1  ;;  %v4316_v40 = vld [vmem:[%s8599_s1 + $0x188] sm:$0xff]  ;;  %v4315_v29 = vld [vmem:[%s8599_s1 + $0x180] sm:$0xff] }
 0x3fb   :  { %v4614_v44 = vpop.f32.mrb[26].mxu1 }
 0x3fc   :  { %2005 = vrot.lane.b32.xlu0 %v1936_v39, %s4704_s0  ;;  %2033 = vrot.lane.b32.xlu1 %v1946_v8, %s4704_s0  ;;  %v3136_v1 = vpop.f32.mrb[27].mxu1  ;;  %v3317_v8 = vld [vmem:[%s8599_s1 + $0xb0] sm:$0xff] }
 0x3ff   :  { %v4603_v27 = vpop.f32.mrb[36].mxu0  ;;  %v4617_v13 = vpop.f32.mrb[28].mxu1 }
 0x400   :  { %v2592_v61 = vpop.f32.mrb[37].mxu0  ;;  %2623 = vrot.lane.b32.xlu0 %v6255_v20, %s4704_s0  ;;  %v3146_v17 = vpop.f32.mrb[29].mxu1 }
 0x401   :  { %2661 = vrot.lane.b32.xlu1 %v2592_v61, %s4704_s0  ;;  %v6620_v61 = vld [vmem:[%s8600_s5 + $0x10] sm:$0xff] }
 0x403   :  { %v4620_v54 = vpop.f32.mrb[30].mxu1 }
 0x404   :  { %3225 = vrot.lane.b32.xlu0 %v4614_v44, %s4704_s0  ;;  %v3156_v51 = vpop.f32.mrb[31].mxu1 }
 0x405   :  { %2039 = vrot.lane.b32.xlu1 %v4565_v63, %s4704_s0  ;;  %v6562_v63 = vld [vmem:[%s8600_s5] sm:$0xff] }
 0x406   :  { %v3492_v44 = vsel %vm1399_vm3, %v6562_v63, 0.0 }
 0x407   :  { %v4623_v52 = vpop.f32.mrb[32].mxu1 }
 0x408   :  { %3223 = vrot.lane.b32.xlu0 %v3136_v1, %s4704_s0  ;;  %v3166_v48 = vpop.f32.mrb[33].mxu1 }
 0x409   :  { %2037 = vrot.lane.b32.xlu1 %v1956_v16, %s4704_s0  ;;  %v6575_v16 = vld [vmem:[%s8600_s5 + $0x8] sm:$0xff] }
 0x40a   :  { %v3495_v1 = vsel %vm1399_vm3, %v6575_v16, 0.0 }
 0x40c   :  { %3229 = vrot.lane.b32.xlu0 %v4617_v13, %s4704_s0 }
 0x40d   :  { %2043 = vrot.lane.b32.xlu1 %v4568_v56, %s4704_s0  ;;  %v4318_v56 = vld [vmem:[%s8599_s1 + $0x198] sm:$0xff] }
 0x40f   :  { %v1420_v36 = vpop.permute.xlu1 %1419 }
 0x410   :  { %4208 = vst.msk [vmem:[%s8600_s5 + $0x108] sm:$0xff] %vm1399_vm3, %v1420_v36  ;;  %v1418_v62 = vpop.permute.xlu0 %1417  ;;  %3227 = vrot.lane.b32.xlu0 %v3146_v17, %s4704_s0  ;;  %v4626_v15 = vpop.f32.mrb[34].mxu1 }
 0x411   :  { %4332 = vst.msk [vmem:[%s8600_s5 + $0x108] sm:$0xff] %vm3327_vm4, %v4300_v22  ;;  %2041 = vrot.lane.b32.xlu1 %v1966_v33, %s4704_s0  ;;  %v3176_v7 = vpop.f32.mrb[35].mxu1  ;;  %v3306_v33 = vld [vmem:[%s8599_s1 + $0x58] sm:$0xff] }
 0x412   :  { %4207 = vst.msk [vmem:[%s8600_s5 + $0x100] sm:$0xff] %vm1399_vm3, %v1418_v62 }
 0x413   :  { %4331 = vst.msk [vmem:[%s8600_s5 + $0x100] sm:$0xff] %vm3327_vm4, %v4299_v34  ;;  %v3498_v34 = vsel %vm1399_vm3, %v6620_v61, 0.0 }
 0x414   :  { %v2612_v43 = vpop.permute.xlu0 %2611  ;;  %3233 = vrot.lane.b32.xlu0 %v4620_v54, %s4704_s0  ;;  %v4317_v54 = vld [vmem:[%s8599_s1 + $0x190] sm:$0xff] }
 0x415   :  { %2634 = vst.msk [vmem:[%s8600_s5 + $0x88] sm:$0xff] %vm1399_vm3, %v2612_v43  ;;  %2047 = vrot.lane.b32.xlu1 %v4571_v35, %s4704_s0  ;;  %v3308_v43 = vld [vmem:[%s8599_s1 + $0x68] sm:$0xff] }
 0x416   :  { %3345 = vst.msk [vmem:[%s8600_s5 + $0x88] sm:$0xff] %vm3327_vm4, %v3312_v30  ;;  %v4320_v30 = vld [vmem:[%s8599_s1 + $0x1a8] sm:$0xff] }
 0x418   :  { %v2610_v59 = vpop.permute.xlu0 %2609  ;;  %3231 = vrot.lane.b32.xlu0 %v3156_v51, %s4704_s0  ;;  %v6580_v12 = vld [vmem:[%s8600_s5 + $0x108] sm:$0xff]  ;;  %v3305_v51 = vld [vmem:[%s8599_s1 + $0x50] sm:$0xff] }
 0x419   :  { %2633 = vst.msk [vmem:[%s8600_s5 + $0x80] sm:$0xff] %vm1399_vm3, %v2610_v59  ;;  %2045 = vrot.lane.b32.xlu1 %v1976_v41, %s4704_s0 }
 0x41a   :  { %3344 = vst.msk [vmem:[%s8600_s5 + $0x80] sm:$0xff] %vm3327_vm4, %v3311_v0  ;;  %v6585_v49 = vld [vmem:[%s8600_s5 + $0x100] sm:$0xff] }
 0x41b   :  { %v3493_v13 = vsel %vm1399_vm3, %v6585_v49, 0.0 }
 0x41c   :  { %v2616_v47 = vpop.permute.xlu0 %2615  ;;  %3235 = vrot.lane.b32.xlu0 %v3166_v48, %s4704_s0  ;;  %v4629_v25 = vpop.f32.mrb[36].mxu1  ;;  %v3494_v48 = vadd.f32 %v3493_v13, %v3492_v44 }
 0x41d   :  { %2636 = vst.msk [vmem:[%s8600_s5 + $0x98] sm:$0xff] %vm1399_vm3, %v2616_v47  ;;  %2663 = vrot.lane.b32.xlu1 %v4603_v27, %s4704_s0  ;;  %v3186_v20 = vpop.f32.mrb[37].mxu1  ;;  %v3496_v27 = vsel %vm1399_vm3, %v6580_v12, 0.0 }
 0x41e   :  { %3347 = vst.msk [vmem:[%s8600_s5 + $0x98] sm:$0xff] %vm3327_vm4, %v3314_v2  ;;  %v3588_v59 = vsel %vm1399_vm3, %v3494_v48, 0.0 }
 0x420   :  { %v2614_v18 = vpop.permute.xlu0 %2613  ;;  %3237 = vrot.lane.b32.xlu0 %v4623_v52, %s4704_s0  ;;  %v3497_v52 = vadd.f32 %v3496_v27, %v3495_v1  ;;  %v3318_v1 = vld [vmem:[%s8599_s1 + $0xb8] sm:$0xff] }
 0x421   :  { %2635 = vst.msk [vmem:[%s8600_s5 + $0x90] sm:$0xff] %vm1399_vm3, %v2614_v18  ;;  %3265 = vrot.lane.b32.xlu1 %v4626_v15, %s4704_s0  ;;  %v6656_v15 = vld [vmem:[%s8600_s5 + $0x18] sm:$0xff]  ;;  %v6694_v18 = vld [vmem:[%s8600_s5 + $0x20] sm:$0xff] }
 0x422   :  { %3346 = vst.msk [vmem:[%s8600_s5 + $0x90] sm:$0xff] %vm3327_vm4, %v3313_v45  ;;  %v3589_v0 = vsel %vm1399_vm3, %v3497_v52, 0.0 }
 0x424   :  { %v2620_v4 = vpop.permute.xlu0 %2619 }
 0x425   :  { %2638 = vst.msk [vmem:[%s8600_s5 + $0xa8] sm:$0xff] %vm1399_vm3, %v2620_v4  ;;  %3263 = vrot.lane.b32.xlu1 %v3176_v7, %s4704_s0  ;;  %v3590_v4 = vadd.f32 %v3589_v0, %v3588_v59  ;;  %v4310_v59 = vld [vmem:[%s8599_s1 + $0x158] sm:$0xff] }
 0x426   :  { %3349 = vst.msk [vmem:[%s8600_s5 + $0xa8] sm:$0xff] %vm3327_vm4, %v3316_v38 }
 0x427   :  { %v1424_v14 = vpop.permute.xlu1 %1423 }
 0x428   :  { %4210 = vst.msk [vmem:[%s8600_s5 + $0x118] sm:$0xff] %vm1399_vm3, %v1424_v14  ;;  %v2618_v21 = vpop.permute.xlu0 %2617  ;;  %v4632_v58 = vpop.f32.mrb[38].mxu1  ;;  %v3307_v14 = vld [vmem:[%s8599_s1 + $0x60] sm:$0xff] }
 0x429   :  { %4334 = vst.msk [vmem:[%s8600_s5 + $0x118] sm:$0xff] %vm3327_vm4, %v4302_v37  ;;  %3269 = vrot.lane.b32.xlu1 %v4629_v25, %s4704_s0  ;;  %v3196_v28 = vpop.f32.mrb[39].mxu1  ;;  %v4319_v37 = vld [vmem:[%s8599_s1 + $0x1a0] sm:$0xff] }
 0x42a   :  { %2637 = vst.msk [vmem:[%s8600_s5 + $0xa0] sm:$0xff] %vm1399_vm3, %v2618_v21 }
 0x42b   :  { %3348 = vst.msk [vmem:[%s8600_s5 + $0xa0] sm:$0xff] %vm3327_vm4, %v3315_v50  ;;  %v1422_v9 = vpop.permute.xlu1 %1421 }
 0x42c   :  { %4209 = vst.msk [vmem:[%s8600_s5 + $0x110] sm:$0xff] %vm1399_vm3, %v1422_v9 }
 0x42d   :  { %4333 = vst.msk [vmem:[%s8600_s5 + $0x110] sm:$0xff] %vm3327_vm4, %v4301_v10  ;;  %3267 = vrot.lane.b32.xlu1 %v3186_v20, %s4704_s0  ;;  %v3501_v20 = vsel %vm1399_vm3, %v6656_v15, 0.0 }
 0x430   :  { %v6661_v7 = vld [vmem:[%s8600_s5 + $0x118] sm:$0xff] }
 0x431   :  { %3273 = vrot.lane.b32.xlu1 %v4632_v58, %s4704_s0  ;;  %v3502_v45 = vsel %vm1399_vm3, %v6661_v7, 0.0  ;;  %v3504_v58 = vsel %vm1399_vm3, %v6694_v18, 0.0 }
 0x432   :  { %v3503_v50 = vadd.f32 %v3502_v45, %v3501_v20 }
 0x434   :  { %v4635_v32 = vpop.f32.mrb[40].mxu1  ;;  %v6625_v17 = vld [vmem:[%s8600_s5 + $0x110] sm:$0xff] }
 0x435   :  { %3271 = vrot.lane.b32.xlu1 %v3196_v28, %s4704_s0  ;;  %v3206_v31 = vpop.f32.mrb[41].mxu1  ;;  %v3499_v62 = vsel %vm1399_vm3, %v6625_v17, 0.0 }
 0x436   :  { %v3500_v2 = vadd.f32 %v3499_v62, %v3498_v34  ;;  %v3320_v62 = vld [vmem:[%s8599_s1 + $0xc8] sm:$0xff] }
 0x438   :  { %v1428_v11 = vpop.permute.xlu1 %1427  ;;  %v3591_v21 = vsel %vm1399_vm3, %v3500_v2, 0.0 }
 0x439   :  { %3275 = vrot.lane.b32.xlu1 %v3206_v31, %s4704_s0  ;;  %4212 = vst.msk [vmem:[%s8600_s5 + $0x128] sm:$0xff] %vm1399_vm3, %v1428_v11  ;;  %v3310_v11 = vld [vmem:[%s8599_s1 + $0x78] sm:$0xff] }
 0x43a   :  { %4336 = vst.msk [vmem:[%s8600_s5 + $0x128] sm:$0xff] %vm3327_vm4, %v4304_v60  ;;  %v3592_v60 = vadd.f32 %v3591_v21, %v3590_v4 }
 0x43c   :  { %v1426_v53 = vpop.permute.xlu1 %1425 }
 0x43d   :  { %3277 = vrot.lane.b32.xlu1 %v4635_v32, %s4704_s0  ;;  %4211 = vst.msk [vmem:[%s8600_s5 + $0x120] sm:$0xff] %vm1399_vm3, %v1426_v53  ;;  %v6731_v32 = vld [vmem:[%s8600_s5 + $0x28] sm:$0xff]  ;;  %v3593_v53 = vsel %vm1399_vm3, %v3503_v50, 0.0 }
 0x43e   :  { %4335 = vst.msk [vmem:[%s8600_s5 + $0x120] sm:$0xff] %vm3327_vm4, %v4303_v23  ;;  %v4308_v23 = vld [vmem:[%s8599_s1 + $0x148] sm:$0xff] }
 0x441   :  { %v6736_v31 = vld [vmem:[%s8600_s5 + $0x128] sm:$0xff] }
 0x445   :  { %v6699_v38 = vld [vmem:[%s8600_s5 + $0x120] sm:$0xff] }
 0x446   :  { %v3505_v28 = vsel %vm1399_vm3, %v6699_v38, 0.0 }
 0x44a   :  { %v1432_v57 = vpop.permute.xlu1 %1431 }
 0x44b   :  { %4214 = vst.msk [vmem:[%s8600_s5 + $0x138] sm:$0xff] %vm1399_vm3, %v1432_v57 }
 0x44c   :  { %4338 = vst.msk [vmem:[%s8600_s5 + $0x138] sm:$0xff] %vm3327_vm4, %v4306_v42  ;;  %v3506_v42 = vadd.f32 %v3505_v28, %v3504_v58 }
 0x44e   :  { %v1430_v26 = vpop.permute.xlu1 %1429  ;;  %v1996_v3 = vpop.permute.xlu0 %1995 }
 0x44f   :  { %4213 = vst.msk [vmem:[%s8600_s5 + $0x130] sm:$0xff] %vm1399_vm3, %v1430_v26  ;;  %2018 = vst.msk [vmem:[%s8600_s5 + $0x48] sm:$0xff] %vm1399_vm3, %v1996_v3  ;;  %v3508_v26 = vsel %vm1399_vm3, %v6736_v31, 0.0  ;;  %v6768_v3 = vld [vmem:[%s8600_s5 + $0x30] sm:$0xff] }
 0x450   :  { %4337 = vst.msk [vmem:[%s8600_s5 + $0x130] sm:$0xff] %vm3327_vm4, %v4305_v55  ;;  %3337 = vst.msk [vmem:[%s8600_s5 + $0x48] sm:$0xff] %vm3327_vm4, %v3304_v24  ;;  %v3507_v24 = vsel %vm1399_vm3, %v6731_v32, 0.0 }
 0x452   :  { %v2652_v5 = vpop.permute.xlu1 %2651  ;;  %v1994_v39 = vpop.permute.xlu0 %1993 }
 0x453   :  { %4264 = vst.msk [vmem:[%s8600_s5 + $0x188] sm:$0xff] %vm1399_vm3, %v2652_v5  ;;  %2017 = vst.msk [vmem:[%s8600_s5 + $0x40] sm:$0xff] %vm1399_vm3, %v1994_v39  ;;  %v3309_v5 = vld [vmem:[%s8599_s1 + $0x70] sm:$0xff]  ;;  %v4307_v39 = vld [vmem:[%s8599_s1 + $0x140] sm:$0xff] }
 0x454   :  { %4348 = vst.msk [vmem:[%s8600_s5 + $0x188] sm:$0xff] %vm3327_vm4, %v4316_v40  ;;  %3336 = vst.msk [vmem:[%s8600_s5 + $0x40] sm:$0xff] %vm3327_vm4, %v3303_v19  ;;  %v3594_v19 = vadd.f32 %v3593_v53, %v3592_v60 }
 0x456   :  { %v2650_v46 = vpop.permute.xlu1 %2649  ;;  %v2622_v6 = vpop.permute.xlu0 %2621 }
 0x457   :  { %4263 = vst.msk [vmem:[%s8600_s5 + $0x180] sm:$0xff] %vm1399_vm3, %v2650_v46  ;;  %2639 = vst.msk [vmem:[%s8600_s5 + $0xb0] sm:$0xff] %vm1399_vm3, %v2622_v6  ;;  %v6773_v40 = vld [vmem:[%s8600_s5 + $0x130] sm:$0xff]  ;;  %v6873_v20 = vld [vmem:[%s8600_s5 + $0x48] sm:$0xff] }
 0x458   :  { %4347 = vst.msk [vmem:[%s8600_s5 + $0x180] sm:$0xff] %vm3327_vm4, %v4315_v29  ;;  %3350 = vst.msk [vmem:[%s8600_s5 + $0xb0] sm:$0xff] %vm3327_vm4, %v3317_v8  ;;  %v3509_v29 = vadd.f32 %v3508_v26, %v3507_v24  ;;  %v3595_v8 = vsel %vm1399_vm3, %v3506_v42, 0.0  ;;  %v3519_v58 = vsel %vm1399_vm3, %v6873_v20, 0.0 }
 0x459   :  { %v3596_v44 = vadd.f32 %v3595_v8, %v3594_v19 }
 0x45a   :  { %v2656_v35 = vpop.permute.xlu1 %2655  ;;  %v2000_v41 = vpop.permute.xlu0 %1999  ;;  %v3597_v27 = vsel %vm1399_vm3, %v3509_v29, 0.0  ;;  %v3321_v29 = vld [vmem:[%s8599_s1 + $0xd0] sm:$0xff] }
 0x45b   :  { %4266 = vst.msk [vmem:[%s8600_s5 + $0x198] sm:$0xff] %vm1399_vm3, %v2656_v35  ;;  %2020 = vst.msk [vmem:[%s8600_s5 + $0x58] sm:$0xff] %vm1399_vm3, %v2000_v41  ;;  %v6805_v35 = vld [vmem:[%s8600_s5 + $0x38] sm:$0xff]  ;;  %v3598_v34 = vadd.f32 %v3597_v27, %v3596_v44 }
 0x45c   :  { %4350 = vst.msk [vmem:[%s8600_s5 + $0x198] sm:$0xff] %vm3327_vm4, %v4318_v56  ;;  %3339 = vst.msk [vmem:[%s8600_s5 + $0x58] sm:$0xff] %vm3327_vm4, %v3306_v33  ;;  %v3510_v56 = vsel %vm1399_vm3, %v6768_v3, 0.0  ;;  %v3511_v33 = vsel %vm1399_vm3, %v6773_v40, 0.0  ;;  %v6810_v41 = vld [vmem:[%s8600_s5 + $0x138] sm:$0xff]  ;;  %v3513_v52 = vsel %vm1399_vm3, %v6805_v35, 0.0 }
 0x45d   :  { %v3512_v13 = vadd.f32 %v3511_v33, %v3510_v56  ;;  %v3514_v48 = vsel %vm1399_vm3, %v6810_v41, 0.0 }
 0x45e   :  { %v2654_v22 = vpop.permute.xlu1 %2653  ;;  %v1998_v36 = vpop.permute.xlu0 %1997 }
 0x45f   :  { %4265 = vst.msk [vmem:[%s8600_s5 + $0x190] sm:$0xff] %vm1399_vm3, %v2654_v22  ;;  %2019 = vst.msk [vmem:[%s8600_s5 + $0x50] sm:$0xff] %vm1399_vm3, %v1998_v36  ;;  %v6838_v36 = vld [vmem:[%s8600_s5 + $0x40] sm:$0xff] }
 0x460   :  { %4349 = vst.msk [vmem:[%s8600_s5 + $0x190] sm:$0xff] %vm3327_vm4, %v4317_v54  ;;  %3338 = vst.msk [vmem:[%s8600_s5 + $0x50] sm:$0xff] %vm3327_vm4, %v3305_v51  ;;  %v4321_v51 = vld [vmem:[%s8599_s1 + $0x1b0] sm:$0xff]  ;;  %v3516_v2 = vsel %vm1399_vm3, %v6838_v36, 0.0 }
 0x462   :  { %v2660_v47 = vpop.permute.xlu1 %2659  ;;  %v2004_v25 = vpop.permute.xlu0 %2003 }
 0x463   :  { %4268 = vst.msk [vmem:[%s8600_s5 + $0x1a8] sm:$0xff] %vm1399_vm3, %v2660_v47  ;;  %2022 = vst.msk [vmem:[%s8600_s5 + $0x68] sm:$0xff] %vm1399_vm3, %v2004_v25  ;;  %v6935_v26 = vld [vmem:[%s8600_s5 + $0x58] sm:$0xff] }
 0x464   :  { %4352 = vst.msk [vmem:[%s8600_s5 + $0x1a8] sm:$0xff] %vm3327_vm4, %v4320_v30  ;;  %3341 = vst.msk [vmem:[%s8600_s5 + $0x68] sm:$0xff] %vm3327_vm4, %v3308_v43  ;;  %v3515_v30 = vadd.f32 %v3514_v48, %v3513_v52  ;;  %v3599_v43 = vsel %vm1399_vm3, %v3512_v13, 0.0  ;;  %v3525_v56 = vsel %vm1399_vm3, %v6935_v26, 0.0 }
 0x466   :  { %v2658_v10 = vpop.permute.xlu1 %2657  ;;  %v2002_v9 = vpop.permute.xlu0 %2001  ;;  %v3601_v50 = vsel %vm1399_vm3, %v3515_v30, 0.0 }
 0x467   :  { %4267 = vst.msk [vmem:[%s8600_s5 + $0x1a0] sm:$0xff] %vm1399_vm3, %v2658_v10  ;;  %2021 = vst.msk [vmem:[%s8600_s5 + $0x60] sm:$0xff] %vm1399_vm3, %v2002_v9  ;;  %v4309_v9 = vld [vmem:[%s8599_s1 + $0x150] sm:$0xff] }
 0x468   :  { %4351 = vst.msk [vmem:[%s8600_s5 + $0x1a0] sm:$0xff] %vm3327_vm4, %v4319_v37  ;;  %3340 = vst.msk [vmem:[%s8600_s5 + $0x60] sm:$0xff] %vm3327_vm4, %v3307_v14  ;;  %v3600_v37 = vadd.f32 %v3599_v43, %v3598_v34  ;;  %v3319_v14 = vld [vmem:[%s8599_s1 + $0xc0] sm:$0xff]  ;;  %v6940_v19 = vld [vmem:[%s8600_s5 + $0x50] sm:$0xff] }
 0x469   :  { %v3522_v33 = vsel %vm1399_vm3, %v6940_v19, 0.0  ;;  %v4314_v34 = vld [vmem:[%s8599_s1 + $0x178] sm:$0xff] }
 0x46a   :  { %v2008_v57 = vpop.permute.xlu0 %2007  ;;  %v2036_v55 = vpop.permute.xlu1 %2035 }
 0x46b   :  { %2024 = vst.msk [vmem:[%s8600_s5 + $0x78] sm:$0xff] %vm1399_vm3, %v2008_v57  ;;  %4236 = vst.msk [vmem:[%s8600_s5 + $0x148] sm:$0xff] %vm1399_vm3, %v2036_v55  ;;  %v4312_v55 = vld [vmem:[%s8599_s1 + $0x168] sm:$0xff] }
 0x46c   :  { %3343 = vst.msk [vmem:[%s8600_s5 + $0x78] sm:$0xff] %vm3327_vm4, %v3310_v11  ;;  %4340 = vst.msk [vmem:[%s8600_s5 + $0x148] sm:$0xff] %vm3327_vm4, %v4308_v23  ;;  %v3602_v11 = vadd.f32 %v3601_v50, %v3600_v37  ;;  %v3322_v23 = vld [vmem:[%s8599_s1 + $0xd8] sm:$0xff]  ;;  %v7008_v30 = vld [vmem:[%s8600_s5 + $0x68] sm:$0xff] }
 0x46d   :  { %v3531_v50 = vsel %vm1399_vm3, %v7008_v30, 0.0 }
 0x46e   :  { %v2006_v46 = vpop.permute.xlu0 %2005  ;;  %v2034_v6 = vpop.permute.xlu1 %2033 }
 0x46f   :  { %2023 = vst.msk [vmem:[%s8600_s5 + $0x70] sm:$0xff] %vm1399_vm3, %v2006_v46  ;;  %4235 = vst.msk [vmem:[%s8600_s5 + $0x140] sm:$0xff] %vm1399_vm3, %v2034_v6  ;;  %v4311_v6 = vld [vmem:[%s8599_s1 + $0x160] sm:$0xff] }
 0x470   :  { %3342 = vst.msk [vmem:[%s8600_s5 + $0x70] sm:$0xff] %vm3327_vm4, %v3309_v5  ;;  %4339 = vst.msk [vmem:[%s8600_s5 + $0x140] sm:$0xff] %vm3327_vm4, %v4307_v39  ;;  %v7013_v43 = vld [vmem:[%s8600_s5 + $0x60] sm:$0xff] }
 0x472   :  { %v2624_v54 = vpop.permute.xlu0 %2623 }
 0x473   :  { %2640 = vst.msk [vmem:[%s8600_s5 + $0xb8] sm:$0xff] %vm1399_vm3, %v2624_v54  ;;  %v2662_v22 = vpop.permute.xlu1 %2661  ;;  %v6878_v45 = vld [vmem:[%s8600_s5 + $0x148] sm:$0xff] }
 0x474   :  { %3351 = vst.msk [vmem:[%s8600_s5 + $0xb8] sm:$0xff] %vm3327_vm4, %v3318_v1  ;;  %v3520_v28 = vsel %vm1399_vm3, %v6878_v45, 0.0 }
 0x475   :  { %4269 = vst.msk [vmem:[%s8600_s5 + $0x1b0] sm:$0xff] %vm1399_vm3, %v2662_v22  ;;  %v3521_v53 = vadd.f32 %v3520_v28, %v3519_v58 }
 0x476   :  { %4353 = vst.msk [vmem:[%s8600_s5 + $0x1b0] sm:$0xff] %vm3327_vm4, %v4321_v51  ;;  %v3226_v0 = vpop.permute.xlu0 %3225  ;;  %v3324_v51 = vld [vmem:[%s8599_s1 + $0xe8] sm:$0xff] }
 0x477   :  { %v6864_v47 = vld [vmem:[%s8600_s5 + $0x140] sm:$0xff]  ;;  %3248 = vst.msk [vmem:[%s8600_s5 + $0xc8] sm:$0xff] %vm1399_vm3, %v3226_v0  ;;  %v2040_v25 = vpop.permute.xlu1 %2039  ;;  %v3605_v8 = vsel %vm1399_vm3, %v3521_v53, 0.0 }
 0x478   :  { %v3517_v4 = vsel %vm1399_vm3, %v6864_v47, 0.0  ;;  %3353 = vst.msk [vmem:[%s8600_s5 + $0xc8] sm:$0xff] %vm3327_vm4, %v3320_v62 }
 0x479   :  { %4238 = vst.msk [vmem:[%s8600_s5 + $0x158] sm:$0xff] %vm1399_vm3, %v2040_v25  ;;  %v3518_v21 = vadd.f32 %v3517_v4, %v3516_v2  ;;  %v3323_v25 = vld [vmem:[%s8599_s1 + $0xe0] sm:$0xff] }
 0x47a   :  { %4342 = vst.msk [vmem:[%s8600_s5 + $0x158] sm:$0xff] %vm3327_vm4, %v4310_v59  ;;  %v3224_v10 = vpop.permute.xlu0 %3223 }
 0x47b   :  { %3247 = vst.msk [vmem:[%s8600_s5 + $0xc0] sm:$0xff] %vm1399_vm3, %v3224_v10  ;;  %v2038_v60 = vpop.permute.xlu1 %2037  ;;  %v3603_v42 = vsel %vm1399_vm3, %v3518_v21, 0.0  ;;  %v3528_v21 = vsel %vm1399_vm3, %v7013_v43, 0.0 }
 0x47c   :  { %3352 = vst.msk [vmem:[%s8600_s5 + $0xc0] sm:$0xff] %vm3327_vm4, %v3319_v14  ;;  %v3604_v39 = vadd.f32 %v3603_v42, %v3602_v11  ;;  %v4313_v14 = vld [vmem:[%s8599_s1 + $0x170] sm:$0xff] }
 0x47d   :  { %4237 = vst.msk [vmem:[%s8600_s5 + $0x150] sm:$0xff] %vm1399_vm3, %v2038_v60  ;;  %v3325_v11 = vld [vmem:[%s8599_s1 + $0xf0] sm:$0xff] }
 0x47e   :  { %4341 = vst.msk [vmem:[%s8600_s5 + $0x150] sm:$0xff] %vm3327_vm4, %v4309_v9  ;;  %v3230_v57 = vpop.permute.xlu0 %3229  ;;  %v3606_v13 = vadd.f32 %v3605_v8, %v3604_v39  ;;  %v7097_v8 = vld [vmem:[%s8600_s5 + $0x70] sm:$0xff] }
 0x47f   :  { %3250 = vst.msk [vmem:[%s8600_s5 + $0xd8] sm:$0xff] %vm1399_vm3, %v3230_v57  ;;  %v2044_v24 = vpop.permute.xlu1 %2043 }
 0x480   :  { %3355 = vst.msk [vmem:[%s8600_s5 + $0xd8] sm:$0xff] %vm3327_vm4, %v3322_v23  ;;  %v7075_v23 = vld [vmem:[%s8600_s5 + $0x78] sm:$0xff] }
 0x481   :  { %v6945_v5 = vld [vmem:[%s8600_s5 + $0x158] sm:$0xff]  ;;  %4240 = vst.msk [vmem:[%s8600_s5 + $0x168] sm:$0xff] %vm1399_vm3, %v2044_v24  ;;  %v7083_v24 = vld [vmem:[%s8600_s5 + $0x80] sm:$0xff] }
 0x482   :  { %4344 = vst.msk [vmem:[%s8600_s5 + $0x168] sm:$0xff] %vm3327_vm4, %v4312_v55  ;;  %v3228_v46 = vpop.permute.xlu0 %3227  ;;  %v3526_v44 = vsel %vm1399_vm3, %v6945_v5, 0.0  ;;  %v4322_v55 = vld [vmem:[%s8599_s1 + $0x1b8] sm:$0xff] }
 0x483   :  { %3249 = vst.msk [vmem:[%s8600_s5 + $0xd0] sm:$0xff] %vm1399_vm3, %v3228_v46  ;;  %v2042_v1 = vpop.permute.xlu1 %2041  ;;  %v3527_v52 = vadd.f32 %v3526_v44, %v3525_v56  ;;  %v3537_v56 = vsel %vm1399_vm3, %v7075_v23, 0.0 }
 0x484   :  { %3354 = vst.msk [vmem:[%s8600_s5 + $0xd0] sm:$0xff] %vm3327_vm4, %v3321_v29  ;;  %v7092_v29 = vld [vmem:[%s8600_s5 + $0x180] sm:$0xff] }
 0x485   :  { %v6979_v27 = vld [vmem:[%s8600_s5 + $0x150] sm:$0xff]  ;;  %4239 = vst.msk [vmem:[%s8600_s5 + $0x160] sm:$0xff] %vm1399_vm3, %v2042_v1  ;;  %v3609_v4 = vsel %vm1399_vm3, %v3527_v52, 0.0  ;;  %8649 = vst [vmem:[#allocation8_spill] sm:$0xff] %v7092_v29  ;;  %v3326_v1 = vld [vmem:[%s8599_s1 + $0xf8] sm:$0xff] }
 0x486   :  { %v3523_v54 = vsel %vm1399_vm3, %v6979_v27, 0.0  ;;  %4343 = vst.msk [vmem:[%s8600_s5 + $0x160] sm:$0xff] %vm3327_vm4, %v4311_v6  ;;  %v3234_v22 = vpop.permute.xlu0 %3233 }
 0x487   :  { %v3524_v48 = vadd.f32 %v3523_v54, %v3522_v33  ;;  %3252 = vst.msk [vmem:[%s8600_s5 + $0xe8] sm:$0xff] %vm1399_vm3, %v3234_v22  ;;  %v2048_v62 = vpop.permute.xlu1 %2047  ;;  %v7132_v54 = vld [vmem:[%s8600_s5 + $0x188] sm:$0xff]  ;;  %v3540_v22 = vsel %vm1399_vm3, %v7083_v24, 0.0 }
 0x488   :  { %3357 = vst.msk [vmem:[%s8600_s5 + $0xe8] sm:$0xff] %vm3327_vm4, %v3324_v51  ;;  %8651 = vst [vmem:[#allocation10_spill] sm:$0xff] %v7132_v54 }
 0x489   :  { %v3607_v0 = vsel %vm1399_vm3, %v3524_v48, 0.0  ;;  %v7019_v59 = vld [vmem:[%s8600_s5 + $0x168] sm:$0xff]  ;;  %4242 = vst.msk [vmem:[%s8600_s5 + $0x178] sm:$0xff] %vm1399_vm3, %v2048_v62  ;;  %v3534_v62 = vsel %vm1399_vm3, %v7097_v8, 0.0 }
 0x48a   :  { %8647 = vst [vmem:[#allocation6_spill] sm:$0xff] %v7019_v59  ;;  %v3608_v2 = vadd.f32 %v3607_v0, %v3606_v13  ;;  %4346 = vst.msk [vmem:[%s8600_s5 + $0x178] sm:$0xff] %vm3327_vm4, %v4314_v34  ;;  %v3232_v37 = vpop.permute.xlu0 %3231  ;;  %v3532_v10 = vsel %vm1399_vm3, %v7019_v59, 0.0  ;;  %v7127_v13 = vld [vmem:[%s8600_s5 + $0x88] sm:$0xff]  ;;  %v3541_v34 = vsel %vm1399_vm3, %v7092_v29, 0.0 }
 0x48b   :  { %3251 = vst.msk [vmem:[%s8600_s5 + $0xe0] sm:$0xff] %vm1399_vm3, %v3232_v37  ;;  %v2046_v9 = vpop.permute.xlu1 %2045  ;;  %v3533_v53 = vadd.f32 %v3532_v10, %v3531_v50  ;;  %v4324_v48 = vld [vmem:[%s8599_s1 + $0x1c8] sm:$0xff]  ;;  %v3544_v50 = vsel %vm1399_vm3, %v7132_v54, 0.0 }
 0x48c   :  { %3356 = vst.msk [vmem:[%s8600_s5 + $0xe0] sm:$0xff] %vm3327_vm4, %v3323_v25  ;;  %v3610_v28 = vadd.f32 %v3609_v4, %v3608_v2  ;;  %v7151_v2 = vld [vmem:[%s8600_s5 + $0x90] sm:$0xff] }
 0x48d   :  { %v7053_v58 = vld [vmem:[%s8600_s5 + $0x160] sm:$0xff]  ;;  %4241 = vst.msk [vmem:[%s8600_s5 + $0x170] sm:$0xff] %vm1399_vm3, %v2046_v9  ;;  %v3613_v51 = vsel %vm1399_vm3, %v3533_v53, 0.0  ;;  %v7156_v25 = vld [vmem:[%s8600_s5 + $0x190] sm:$0xff]  ;;  %v7184_v9 = vld [vmem:[%s8600_s5 + $0x98] sm:$0xff] }
 0x48e   :  { %8648 = vst [vmem:[#allocation7_spill] sm:$0xff] %v7053_v58  ;;  %v3529_v60 = vsel %vm1399_vm3, %v7053_v58, 0.0  ;;  %4345 = vst.msk [vmem:[%s8600_s5 + $0x170] sm:$0xff] %vm3327_vm4, %v4313_v14  ;;  %v3236_v57 = vpop.permute.xlu0 %3235  ;;  %v3543_v14 = vsel %vm1399_vm3, %v7127_v13, 0.0  ;;  %v4323_v53 = vld [vmem:[%s8599_s1 + $0x1c0] sm:$0xff] }
 0x48f   :  { %v3530_v42 = vadd.f32 %v3529_v60, %v3528_v21  ;;  %3253 = vst.msk [vmem:[%s8600_s5 + $0xf0] sm:$0xff] %vm1399_vm3, %v3236_v57  ;;  %v2664_v39 = vpop.permute.xlu1 %2663  ;;  %8652 = vst [vmem:[#allocation11_spill] sm:$0xff] %v7156_v25  ;;  %v7189_v60 = vld [vmem:[%s8600_s5 + $0x198] sm:$0xff]  ;;  %v3547_v57 = vsel %vm1399_vm3, %v7156_v25, 0.0 }
 0x490   :  { %3358 = vst.msk [vmem:[%s8600_s5 + $0xf0] sm:$0xff] %vm3327_vm4, %v3325_v11  ;;  %8654 = vst [vmem:[#allocation13_spill] sm:$0xff] %v7189_v60 }
 0x491   :  { %v3611_v46 = vsel %vm1399_vm3, %v3530_v42, 0.0  ;;  %v7103_v6 = vld [vmem:[%s8600_s5 + $0x178] sm:$0xff]  ;;  %4270 = vst.msk [vmem:[%s8600_s5 + $0x1b8] sm:$0xff] %vm1399_vm3, %v2664_v39  ;;  %v3546_v42 = vsel %vm1399_vm3, %v7151_v2, 0.0  ;;  %v3545_v39 = vadd.f32 %v3544_v50, %v3543_v14 }
 0x492   :  { %8650 = vst [vmem:[#allocation9_spill] sm:$0xff] %v7103_v6  ;;  %v3612_v33 = vadd.f32 %v3611_v46, %v3610_v28  ;;  %v3538_v44 = vsel %vm1399_vm3, %v7103_v6, 0.0  ;;  %4354 = vst.msk [vmem:[%s8600_s5 + $0x1b8] sm:$0xff] %vm3327_vm4, %v4322_v55  ;;  %v3238_v52 = vpop.permute.xlu0 %3237  ;;  %v3542_v28 = vadd.f32 %v3541_v34, %v3540_v22  ;;  %v3548_v22 = vadd.f32 %v3547_v57, %v3546_v42  ;;  %v4326_v34 = vld [vmem:[%s8599_s1 + $0x1d8] sm:$0xff]  ;;  %v4325_v42 = vld [vmem:[%s8599_s1 + $0x1d0] sm:$0xff] }
 0x493   :  { %3254 = vst.msk [vmem:[%s8600_s5 + $0xf8] sm:$0xff] %vm1399_vm3, %v3238_v52  ;;  %v3266_v0 = vpop.permute.xlu1 %3265  ;;  %v3539_v4 = vadd.f32 %v3538_v44, %v3537_v56  ;;  %v7209_v44 = vld [vmem:[%s8600_s5 + $0xa0] sm:$0xff]  ;;  %v3621_v14 = vsel %vm1399_vm3, %v3545_v39, 0.0 }
 0x494   :  { %3359 = vst.msk [vmem:[%s8600_s5 + $0xf8] sm:$0xff] %vm3327_vm4, %v3326_v1  ;;  %v3614_v21 = vadd.f32 %v3613_v51, %v3612_v33  ;;  %v3549_v33 = vsel %vm1399_vm3, %v7184_v9, 0.0  ;;  %v3550_v1 = vsel %vm1399_vm3, %v7189_v60, 0.0  ;;  %v7216_v51 = vld [vmem:[%s8600_s5 + $0x1a0] sm:$0xff] }
 0x495   :  { %v7161_v37 = vld [vmem:[%s8600_s5 + $0x170] sm:$0xff]  ;;  %4292 = vst.msk [vmem:[%s8600_s5 + $0x1c8] sm:$0xff] %vm1399_vm3, %v3266_v0  ;;  %v3617_v46 = vsel %vm1399_vm3, %v3539_v4, 0.0  ;;  %8655 = vst [vmem:[#allocation14_spill] sm:$0xff] %v7216_v51  ;;  %v3552_v4 = vsel %vm1399_vm3, %v7209_v44, 0.0  ;;  %v3551_v50 = vadd.f32 %v3550_v1, %v3549_v33 }
 0x496   :  { %8653 = vst [vmem:[#allocation12_spill] sm:$0xff] %v7161_v37  ;;  %v3535_v10 = vsel %vm1399_vm3, %v7161_v37, 0.0  ;;  %4356 = vst.msk [vmem:[%s8600_s5 + $0x1c8] sm:$0xff] %vm3327_vm4, %v4324_v48  ;;  %v3619_v48 = vsel %vm1399_vm3, %v3542_v28, 0.0  ;;  %v7243_v28 = vld [vmem:[%s8600_s5 + $0x1a8] sm:$0xff]  ;;  %v7265_v1 = vld [vmem:[%s8600_s5 + $0xb0] sm:$0xff] }
 0x497   :  { %v3536_v11 = vadd.f32 %v3535_v10, %v3534_v62  ;;  %v3264_v55 = vpop.permute.xlu1 %3263  ;;  %v7238_v10 = vld [vmem:[%s8600_s5 + $0xa8] sm:$0xff]  ;;  %8656 = vst [vmem:[#allocation15_spill] sm:$0xff] %v7243_v28  ;;  %v3556_v33 = vsel %vm1399_vm3, %v7243_v28, 0.0 }
 0x498   :  { %4291 = vst.msk [vmem:[%s8600_s5 + $0x1c0] sm:$0xff] %vm1399_vm3, %v3264_v55 }
 0x499   :  { %v3615_v56 = vsel %vm1399_vm3, %v3536_v11, 0.0  ;;  %4355 = vst.msk [vmem:[%s8600_s5 + $0x1c0] sm:$0xff] %vm3327_vm4, %v4323_v53  ;;  %v3623_v53 = vsel %vm1399_vm3, %v3548_v22, 0.0  ;;  %v4328_v22 = vld [vmem:[%s8599_s1 + $0x1e8] sm:$0xff] }
 0x49a   :  { %v3616_v52 = vadd.f32 %v3615_v56, %v3614_v21  ;;  %v3553_v21 = vsel %vm1399_vm3, %v7216_v51, 0.0  ;;  %v3625_v56 = vsel %vm1399_vm3, %v3551_v50, 0.0 }
 0x49b   :  { %v3270_v0 = vpop.permute.xlu1 %3269  ;;  %v3554_v57 = vadd.f32 %v3553_v21, %v3552_v4  ;;  %v7291_v21 = vld [vmem:[%s8600_s5 + $0xb8] sm:$0xff] }
 0x49c   :  { %v3618_v62 = vadd.f32 %v3617_v46, %v3616_v52  ;;  %4294 = vst.msk [vmem:[%s8600_s5 + $0x1d8] sm:$0xff] %vm1399_vm3, %v3270_v0  ;;  %v3555_v46 = vsel %vm1399_vm3, %v7238_v10, 0.0  ;;  %v7270_v52 = vld [vmem:[%s8600_s5 + $0x1b0] sm:$0xff] }
 0x49d   :  { %4358 = vst.msk [vmem:[%s8600_s5 + $0x1d8] sm:$0xff] %vm3327_vm4, %v4326_v34  ;;  %8657 = vst [vmem:[#allocation16_spill] sm:$0xff] %v7270_v52  ;;  %v3557_v34 = vadd.f32 %v3556_v33, %v3555_v46  ;;  %v3559_v50 = vsel %vm1399_vm3, %v7270_v52, 0.0  ;;  %v3561_v46 = vsel %vm1399_vm3, %v7291_v21, 0.0  ;;  %v7317_v33 = vld [vmem:[%s8600_s5 + $0xc0] sm:$0xff] }
 0x49e   :  { %v3620_v11 = vadd.f32 %v3619_v48, %v3618_v62  ;;  %v3627_v62 = vsel %vm1399_vm3, %v3554_v57, 0.0 }
 0x49f   :  { %v3268_v39 = vpop.permute.xlu1 %3267  ;;  %v3629_v57 = vsel %vm1399_vm3, %v3557_v34, 0.0  ;;  %v4329_v34 = vld [vmem:[%s8599_s1 + $0x1f0] sm:$0xff] }
 0x4a0   :  { %v3622_v55 = vadd.f32 %v3621_v14, %v3620_v11  ;;  %4293 = vst.msk [vmem:[%s8600_s5 + $0x1d0] sm:$0xff] %vm1399_vm3, %v3268_v39  ;;  %v3558_v14 = vsel %vm1399_vm3, %v7265_v1, 0.0  ;;  %v7296_v11 = vld [vmem:[%s8600_s5 + $0x1b8] sm:$0xff] }
 0x4a1   :  { %4357 = vst.msk [vmem:[%s8600_s5 + $0x1d0] sm:$0xff] %vm3327_vm4, %v4325_v42  ;;  %8658 = vst [vmem:[#allocation17_spill] sm:$0xff] %v7296_v11  ;;  %v4327_v42 = vld [vmem:[%s8599_s1 + $0x1e0] sm:$0xff] }
 0x4a2   :  { %v3624_v48 = vadd.f32 %v3623_v53, %v3622_v55  ;;  %v3560_v55 = vadd.f32 %v3559_v50, %v3558_v14  ;;  %v3564_v14 = vsel %vm1399_vm3, %v7317_v33, 0.0 }
 0x4a3   :  { %v3274_v4 = vpop.permute.xlu1 %3273 }
 0x4a4   :  { %v3626_v0 = vadd.f32 %v3625_v56, %v3624_v48  ;;  %4296 = vst.msk [vmem:[%s8600_s5 + $0x1e8] sm:$0xff] %vm1399_vm3, %v3274_v4  ;;  %v3562_v56 = vsel %vm1399_vm3, %v7296_v11, 0.0  ;;  %v7322_v48 = vld [vmem:[%s8600_s5 + $0x1c0] sm:$0xff]  ;;  %v7393_v11 = vld [vmem:[%s8600_s5 + $0x1d8] sm:$0xff] }
 0x4a5   :  { %4360 = vst.msk [vmem:[%s8600_s5 + $0x1e8] sm:$0xff] %vm3327_vm4, %v4328_v22  ;;  %8659 = vst [vmem:[#allocation18_spill] sm:$0xff] %v7322_v48  ;;  %v3565_v50 = vsel %vm1399_vm3, %v7322_v48, 0.0 }
 0x4a6   :  { %v3628_v53 = vadd.f32 %v3627_v62, %v3626_v0  ;;  %v3631_v62 = vsel %vm1399_vm3, %v3560_v55, 0.0  ;;  %v3563_v0 = vadd.f32 %v3562_v56, %v3561_v46  ;;  %v4330_v55 = vld [vmem:[%s8599_s1 + $0x1f8] sm:$0xff]  ;;  %v3566_v46 = vadd.f32 %v3565_v50, %v3564_v14  ;;  %8662 = vst [vmem:[#allocation21_spill] sm:$0xff] %v7393_v11 }
 0x4a7   :  { %v3272_v39 = vpop.permute.xlu1 %3271 }
 0x4a8   :  { %4295 = vst.msk [vmem:[%s8600_s5 + $0x1e0] sm:$0xff] %vm1399_vm3, %v3272_v39  ;;  %v3630_v22 = vadd.f32 %v3629_v57, %v3628_v53  ;;  %v7343_v53 = vld [vmem:[%s8600_s5 + $0xc8] sm:$0xff]  ;;  %v3633_v39 = vsel %vm1399_vm3, %v3563_v0, 0.0  ;;  %v3635_v14 = vsel %vm1399_vm3, %v3566_v46, 0.0  ;;  %v3574_v46 = vsel %vm1399_vm3, %v7393_v11, 0.0 }
 0x4a9   :  { %4359 = vst.msk [vmem:[%s8600_s5 + $0x1e0] sm:$0xff] %vm3327_vm4, %v4327_v42  ;;  %v7348_v42 = vld [vmem:[%s8600_s5 + $0x1c8] sm:$0xff] }
 0x4aa   :  { %8660 = vst [vmem:[#allocation19_spill] sm:$0xff] %v7348_v42  ;;  %v3632_v57 = vadd.f32 %v3631_v62, %v3630_v22  ;;  %v3568_v48 = vsel %vm1399_vm3, %v7348_v42, 0.0  ;;  %v7369_v22 = vld [vmem:[%s8600_s5 + $0xd0] sm:$0xff]  ;;  %v7388_v42 = vld [vmem:[%s8600_s5 + $0xd8] sm:$0xff]  ;;  %v7418_v11 = vld [vmem:[%s8600_s5 + $0xe8] sm:$0xff] }
 0x4ab   :  { %v3276_v4 = vpop.permute.xlu1 %3275  ;;  %v3570_v50 = vsel %vm1399_vm3, %v7369_v22, 0.0 }
 0x4ac   :  { %4297 = vst.msk [vmem:[%s8600_s5 + $0x1f0] sm:$0xff] %vm1399_vm3, %v3276_v4  ;;  %v3567_v4 = vsel %vm1399_vm3, %v7343_v53, 0.0  ;;  %v3634_v62 = vadd.f32 %v3633_v39, %v3632_v57  ;;  %v3573_v39 = vsel %vm1399_vm3, %v7388_v42, 0.0  ;;  %v7423_v52 = vld [vmem:[%s8600_s5 + $0x1e8] sm:$0xff] }
 0x4ad   :  { %4361 = vst.msk [vmem:[%s8600_s5 + $0x1f0] sm:$0xff] %vm3327_vm4, %v4329_v34  ;;  %v7374_v34 = vld [vmem:[%s8600_s5 + $0x1d0] sm:$0xff]  ;;  %v3569_v0 = vadd.f32 %v3568_v48, %v3567_v4  ;;  %v7403_v4 = vld [vmem:[%s8600_s5 + $0xe0] sm:$0xff]  ;;  %8664 = vst [vmem:[#allocation23_spill] sm:$0xff] %v7423_v52 }
 0x4ae   :  { %8661 = vst [vmem:[#allocation20_spill] sm:$0xff] %v7374_v34  ;;  %v3636_v57 = vadd.f32 %v3635_v14, %v3634_v62  ;;  %v3575_v14 = vadd.f32 %v3574_v46, %v3573_v39  ;;  %v3579_v39 = vsel %vm1399_vm3, %v7418_v11, 0.0  ;;  %v3580_v46 = vsel %vm1399_vm3, %v7423_v52, 0.0  ;;  %v7448_v52 = vld [vmem:[%s8600_s5 + $0xf8] sm:$0xff] }
 0x4af   :  { %v3278_v56 = vpop.permute.xlu1 %3277  ;;  %v3637_v48 = vsel %vm1399_vm3, %v3569_v0, 0.0 }
 0x4b0   :  { %4298 = vst.msk [vmem:[%s8600_s5 + $0x1f8] sm:$0xff] %vm1399_vm3, %v3278_v56  ;;  %v3571_v56 = vsel %vm1399_vm3, %v7374_v34, 0.0  ;;  %v7408_v34 = vld [vmem:[%s8600_s5 + $0x1e0] sm:$0xff]  ;;  %v3638_v62 = vadd.f32 %v3637_v48, %v3636_v57  ;;  %v3641_v48 = vsel %vm1399_vm3, %v3575_v14, 0.0 }
 0x4b1   :  { %4362 = vst.msk [vmem:[%s8600_s5 + $0x1f8] sm:$0xff] %vm3327_vm4, %v4330_v55  ;;  %v3572_v55 = vadd.f32 %v3571_v56, %v3570_v50  ;;  %8663 = vst [vmem:[#allocation22_spill] sm:$0xff] %v7408_v34  ;;  %v3576_v50 = vsel %vm1399_vm3, %v7403_v4, 0.0  ;;  %v3577_v56 = vsel %vm1399_vm3, %v7408_v34, 0.0  ;;  %v7433_v34 = vld [vmem:[%s8600_s5 + $0xf0] sm:$0xff] }
 0x4b3   :  { %v3639_v0 = vsel %vm1399_vm3, %v3572_v55, 0.0  ;;  %v3578_v55 = vadd.f32 %v3577_v56, %v3576_v50  ;;  %v3582_v50 = vsel %vm1399_vm3, %v7433_v34, 0.0 }
 0x4b4   :  { %v3640_v57 = vadd.f32 %v3639_v0, %v3638_v62  ;;  %v7438_v28 = vld [vmem:[%s8600_s5 + $0x1f0] sm:$0xff]  ;;  %v3581_v0 = vadd.f32 %v3580_v46, %v3579_v39  ;;  %v3585_v39 = vsel %vm1399_vm3, %v7448_v52, 0.0 }
 0x4b5   :  { %8665 = vst [vmem:[#allocation24_spill] sm:$0xff] %v7438_v28  ;;  %v3643_v14 = vsel %vm1399_vm3, %v3578_v55, 0.0  ;;  %v3583_v56 = vsel %vm1399_vm3, %v7438_v28, 0.0 }
 0x4b6   :  { %v3642_v62 = vadd.f32 %v3641_v48, %v3640_v57  ;;  %v3645_v48 = vsel %vm1399_vm3, %v3581_v0, 0.0  ;;  %v3584_v55 = vadd.f32 %v3583_v56, %v3582_v50 }
 0x4b8   :  { %v7453_v51 = vld [vmem:[%s8600_s5 + $0x1f8] sm:$0xff]  ;;  %v3644_v57 = vadd.f32 %v3643_v14, %v3642_v62  ;;  %v3647_v60 = vsel %vm1399_vm3, %v3584_v55, 0.0 }
 0x4b9   :  { %v3586_v46 = vsel %vm1399_vm3, %v7453_v51, 0.0 }
 0x4ba   :  { %v3646_v28 = vadd.f32 %v3645_v48, %v3644_v57  ;;  %v3587_v25 = vadd.f32 %v3586_v46, %v3585_v39 }
 0x4bc   :  { %v3648_v54 = vadd.f32 %v3647_v60, %v3646_v28  ;;  %v3649_v29 = vsel %vm1399_vm3, %v3587_v25, 0.0 }
 0x4be   :  { %v3650_v6 = vadd.f32 %v3649_v29, %v3648_v54 }
 0x4c0   :  { %v3651_v37 = vrot.slane %v3650_v6, 4 }
 0x4c2   :  { %v3652_v59 = vadd.f32 %v3651_v37, %v3650_v6 }
 0x4c4   :  { %v3653_v62 = vrot.slane %v3652_v59, 2 }
 0x4c6   :  { %v3654_v14 = vadd.f32 %v3653_v62, %v3652_v59 }
 0x4c8   :  { %v3655_v0 = vrot.slane %v3654_v14, 1 }
 0x4ca   :  { %v3656_v50 = vadd.f32 %v3655_v0, %v3654_v14 }
 0x4cc   :  { %v7462_v56 = vmul.f32 0.001953125, %v3656_v50 }
 0x4ce   :  { %v7466_v58 = vsub.f32 %v6562_v63, %v7462_v56  ;;  %v7470_v57 = vsub.f32 %v6575_v16, %v7462_v56  ;;  %v7474_v25 = vsub.f32 %v6620_v61, %v7462_v56  ;;  %v7478_v29 = vsub.f32 %v6656_v15, %v7462_v56 }
 0x4cf   :  { %v7482_v59 = vsub.f32 %v6694_v18, %v7462_v56  ;;  %v7486_v63 = vsub.f32 %v6731_v32, %v7462_v56  ;;  %v7490_v16 = vsub.f32 %v6768_v3, %v7462_v56  ;;  %v7494_v61 = vsub.f32 %v6805_v35, %v7462_v56 }
 0x4d0   :  { %v7498_v15 = vsub.f32 %v6838_v36, %v7462_v56  ;;  %v7502_v18 = vsub.f32 %v6873_v20, %v7462_v56  ;;  %v7506_v32 = vsub.f32 %v6940_v19, %v7462_v56  ;;  %v7510_v3 = vsub.f32 %v6935_v26, %v7462_v56 }
 0x4d1   :  { %v7514_v35 = vsub.f32 %v7013_v43, %v7462_v56  ;;  %v7518_v36 = vsub.f32 %v7008_v30, %v7462_v56  ;;  %v7522_v20 = vsub.f32 %v7097_v8, %v7462_v56  ;;  %v7526_v19 = vsub.f32 %v6585_v49, %v7462_v56 }
 0x4d2   :  { %v7530_v26 = vsub.f32 %v7075_v23, %v7462_v56  ;;  %v7534_v43 = vsub.f32 %v7083_v24, %v7462_v56  ;;  %v7538_v30 = vsub.f32 %v6580_v12, %v7462_v56  ;;  %v7542_v8 = vsub.f32 %v6625_v17, %v7462_v56 }
 0x4d3   :  { %v7546_v49 = vsub.f32 %v7127_v13, %v7462_v56  ;;  %v7550_v23 = vsub.f32 %v7151_v2, %v7462_v56  ;;  %v7554_v24 = vsub.f32 %v7184_v9, %v7462_v56  ;;  %v7558_v12 = vsub.f32 %v7209_v44, %v7462_v56 }
 0x4d4   :  { %v7562_v17 = vsub.f32 %v7238_v10, %v7462_v56  ;;  %v7566_v6 = vsub.f32 %v7265_v1, %v7462_v56  ;;  %v7570_v13 = vsub.f32 %v7291_v21, %v7462_v56  ;;  %v7574_v54 = vsub.f32 %v6661_v7, %v7462_v56 }
 0x4d5   :  { %v7578_v2 = vsub.f32 %v7317_v33, %v7462_v56  ;;  %v7582_v37 = vsub.f32 %v6699_v38, %v7462_v56  ;;  %v3723_v9 = vmul.f32 %v7466_v58, %v7466_v58  ;;  %v3755_v60 = vmul.f32 %v7526_v19, %v7526_v19 }
 0x4d6   :  { %8666 = vst [vmem:[#allocation25_spill] sm:$0xff] %v7574_v54  ;;  %v3724_v44 = vmul.f32 %v7470_v57, %v7470_v57  ;;  %v3725_v7 = vmul.f32 %v7474_v25, %v7474_v25  ;;  %v3756_v10 = vmul.f32 %v7538_v30, %v7538_v30  ;;  %v3757_v28 = vmul.f32 %v7542_v8, %v7542_v8 }
 0x4d7   :  { %8667 = vst [vmem:[#allocation26_spill] sm:$0xff] %v7582_v37  ;;  %v7598_v38 = vsub.f32 %v7343_v53, %v7462_v56  ;;  %v7602_v1 = vsub.f32 %v7369_v22, %v7462_v56  ;;  %v7606_v21 = vsub.f32 %v7388_v42, %v7462_v56  ;;  %v7610_v33 = vsub.f32 %v7403_v4, %v7462_v56 }
 0x4d8   :  { %v7614_v48 = vsub.f32 %v6736_v31, %v7462_v56  ;;  %v7618_v53 = vsub.f32 %v6773_v40, %v7462_v56  ;;  %v3726_v22 = vmul.f32 %v7478_v29, %v7478_v29  ;;  %v3758_v55 = vmul.f32 %v7574_v54, %v7574_v54 }
 0x4d9   :  { %v3727_v42 = vmul.f32 %v7482_v59, %v7482_v59  ;;  %v3759_v4 = vmul.f32 %v7582_v37, %v7582_v37  ;;  %v3787_v39 = vsel %vm1399_vm3, %v3723_v9, 0.0  ;;  %v3788_v31 = vsel %vm1399_vm3, %v3755_v60, 0.0 }
 0x4da   :  { %8668 = vst [vmem:[#allocation27_spill] sm:$0xff] %v7618_v53  ;;  %v3790_v46 = vsel %vm1399_vm3, %v3724_v44, 0.0  ;;  %v3791_v40 = vsel %vm1399_vm3, %v3756_v10, 0.0  ;;  %v3793_v62 = vsel %vm1399_vm3, %v3725_v7, 0.0  ;;  %v3794_v14 = vsel %vm1399_vm3, %v3757_v28, 0.0 }
 0x4db   :  { %v7636_v0 = vsub.f32 %v7418_v11, %v7462_v56  ;;  %v7640_v50 = vsub.f32 %v7433_v34, %v7462_v56  ;;  %v7644_v9 = vsub.f32 %v6810_v41, %v7462_v56  ;;  %v3728_v60 = vmul.f32 %v7486_v63, %v7486_v63 }
 0x4dc   :  { %v3760_v44 = vmul.f32 %v7614_v48, %v7614_v48  ;;  %v3789_v7 = vadd.f32 %v3788_v31, %v3787_v39  ;;  %v3796_v10 = vsel %vm1399_vm3, %v3726_v22, 0.0  ;;  %v3797_v11 = vsel %vm1399_vm3, %v3758_v55, 0.0 }
 0x4dd   :  { %8669 = vst [vmem:[#allocation28_spill] sm:$0xff] %v7644_v9  ;;  %v7654_v28 = vsub.f32 %v7448_v52, %v7462_v56  ;;  %v7658_v34 = vsub.f32 %v6864_v47, %v7462_v56  ;;  %v3792_v41 = vadd.f32 %v3791_v40, %v3790_v46  ;;  %v3795_v37 = vadd.f32 %v3794_v14, %v3793_v62 }
 0x4de   :  { %v3729_v54 = vmul.f32 %v7490_v16, %v7490_v16  ;;  %v3761_v39 = vmul.f32 %v7618_v53, %v7618_v53  ;;  %v3799_v22 = vsel %vm1399_vm3, %v3727_v42, 0.0  ;;  %v3800_v55 = vsel %vm1399_vm3, %v3759_v4, 0.0 }
 0x4df   :  { %8670 = vst [vmem:[#allocation29_spill] sm:$0xff] %v7658_v34  ;;  %v7668_v52 = vsub.f32 %v6878_v45, %v7462_v56  ;;  %v7672_v47 = vsub.f32 %v6979_v27, %v7462_v56  ;;  %v3730_v31 = vmul.f32 %v7494_v61, %v7494_v61  ;;  %v3798_v46 = vadd.f32 %v3797_v11, %v3796_v10 }
 0x4e0   :  { %v3762_v40 = vmul.f32 %v7644_v9, %v7644_v9  ;;  %v3802_v62 = vsel %vm1399_vm3, %v3728_v60, 0.0  ;;  %v3803_v42 = vsel %vm1399_vm3, %v3760_v44, 0.0  ;;  %v3883_v4 = vsel %vm1399_vm3, %v3789_v7, 0.0 }
 0x4e1   :  { %8671 = vst [vmem:[#allocation30_spill] sm:$0xff] %v7668_v52  ;;  %8672 = vst [vmem:[#allocation31_spill] sm:$0xff] %v7672_v47  ;;  %v3731_v45 = vmul.f32 %v7498_v15, %v7498_v15  ;;  %v3801_v14 = vadd.f32 %v3800_v55, %v3799_v22  ;;  %v3884_v27 = vsel %vm1399_vm3, %v3792_v41, 0.0  ;;  %v3886_v53 = vsel %vm1399_vm3, %v3795_v37, 0.0 }
 0x4e2   :  { %v3763_v10 = vmul.f32 %v7658_v34, %v7658_v34  ;;  %v3805_v11 = vsel %vm1399_vm3, %v3729_v54, 0.0  ;;  %v3806_v9 = vsel %vm1399_vm3, %v3761_v39, 0.0  ;;  %v3885_v60 = vadd.f32 %v3884_v27, %v3883_v4  ;;  %v8674_v39 = vld [vmem:[#allocation7_spill] sm:$0xff] }
 0x4e3   :  { %v7691_v44 = vsub.f32 %v6945_v5, %v7462_v56  ;;  %v3732_v7 = vmul.f32 %v7502_v18, %v7502_v18  ;;  %v3804_v22 = vadd.f32 %v3803_v42, %v3802_v62  ;;  %v3888_v41 = vsel %vm1399_vm3, %v3798_v46, 0.0 }
 0x4e4   :  { %v3764_v37 = vmul.f32 %v7668_v52, %v7668_v52  ;;  %v3808_v55 = vsel %vm1399_vm3, %v3730_v31, 0.0  ;;  %v3809_v54 = vsel %vm1399_vm3, %v3762_v40, 0.0  ;;  %v3887_v34 = vadd.f32 %v3886_v53, %v3885_v60  ;;  %v8676_v53 = vld [vmem:[#allocation6_spill] sm:$0xff] }
 0x4e5   :  { %8673 = vst [vmem:[#allocation32_spill] sm:$0xff] %v7691_v44  ;;  %v7702_v4 = vsub.f32 %v8674_v39, %v7462_v56  ;;  %v3733_v5 = vmul.f32 %v7506_v32, %v7506_v32  ;;  %v3807_v27 = vadd.f32 %v3806_v9, %v3805_v11  ;;  %v3890_v62 = vsel %vm1399_vm3, %v3801_v14, 0.0 }
 0x4e6   :  { %v3765_v46 = vmul.f32 %v7672_v47, %v7672_v47  ;;  %v3811_v42 = vsel %vm1399_vm3, %v3731_v45, 0.0  ;;  %v3812_v31 = vsel %vm1399_vm3, %v3763_v10, 0.0  ;;  %v3889_v52 = vadd.f32 %v3888_v41, %v3887_v34  ;;  %v8678_v34 = vld [vmem:[#allocation12_spill] sm:$0xff] }
 0x4e7   :  { %8675 = vst [vmem:[#allocation7_spill] sm:$0xff] %v7702_v4  ;;  %v7713_v40 = vsub.f32 %v8676_v53, %v7462_v56  ;;  %v3734_v60 = vmul.f32 %v7510_v3, %v7510_v3  ;;  %v3810_v39 = vadd.f32 %v3809_v54, %v3808_v55  ;;  %v3892_v9 = vsel %vm1399_vm3, %v3804_v22, 0.0 }
 0x4e8   :  { %v3766_v14 = vmul.f32 %v7691_v44, %v7691_v44  ;;  %v3814_v11 = vsel %vm1399_vm3, %v3732_v7, 0.0  ;;  %v3815_v45 = vsel %vm1399_vm3, %v3764_v37, 0.0  ;;  %v3891_v47 = vadd.f32 %v3890_v62, %v3889_v52  ;;  %v8680_v52 = vld [vmem:[#allocation9_spill] sm:$0xff] }
 0x4e9   :  { %8677 = vst [vmem:[#allocation6_spill] sm:$0xff] %v7713_v40  ;;  %v7724_v10 = vsub.f32 %v8678_v34, %v7462_v56  ;;  %v3735_v41 = vmul.f32 %v7514_v35, %v7514_v35  ;;  %v3813_v53 = vadd.f32 %v3812_v31, %v3811_v42  ;;  %v3894_v55 = vsel %vm1399_vm3, %v3807_v27, 0.0 }
 0x4ea   :  { %v3767_v22 = vmul.f32 %v7702_v4, %v7702_v4  ;;  %v3817_v54 = vsel %vm1399_vm3, %v3733_v5, 0.0  ;;  %v3818_v7 = vsel %vm1399_vm3, %v3765_v46, 0.0  ;;  %v3893_v44 = vadd.f32 %v3892_v9, %v3891_v47  ;;  %v8682_v47 = vld [vmem:[#allocation8_spill] sm:$0xff] }
 0x4eb   :  { %8679 = vst [vmem:[#allocation12_spill] sm:$0xff] %v7724_v10  ;;  %v7735_v37 = vsub.f32 %v8680_v52, %v7462_v56  ;;  %v3736_v62 = vmul.f32 %v7518_v36, %v7518_v36  ;;  %v3816_v34 = vadd.f32 %v3815_v45, %v3814_v11  ;;  %v3896_v42 = vsel %vm1399_vm3, %v3810_v39, 0.0 }
 0x4ec   :  { %v3768_v27 = vmul.f32 %v7713_v40, %v7713_v40  ;;  %v3820_v31 = vsel %vm1399_vm3, %v3734_v60, 0.0  ;;  %v3821_v5 = vsel %vm1399_vm3, %v3766_v14, 0.0  ;;  %v3895_v4 = vadd.f32 %v3894_v55, %v3893_v44  ;;  %v8684_v44 = vld [vmem:[#allocation10_spill] sm:$0xff] }
 0x4ed   :  { %8681 = vst [vmem:[#allocation9_spill] sm:$0xff] %v7735_v37  ;;  %v7746_v46 = vsub.f32 %v8682_v47, %v7462_v56  ;;  %v3737_v9 = vmul.f32 %v7522_v20, %v7522_v20  ;;  %v3819_v52 = vadd.f32 %v3818_v7, %v3817_v54  ;;  %v3898_v11 = vsel %vm1399_vm3, %v3813_v53, 0.0 }
 0x4ee   :  { %v3769_v39 = vmul.f32 %v7724_v10, %v7724_v10  ;;  %v3823_v45 = vsel %vm1399_vm3, %v3735_v41, 0.0  ;;  %v3824_v60 = vsel %vm1399_vm3, %v3767_v22, 0.0  ;;  %v3897_v40 = vadd.f32 %v3896_v42, %v3895_v4  ;;  %v8686_v4 = vld [vmem:[#allocation11_spill] sm:$0xff] }
 0x4ef   :  { %8683 = vst [vmem:[#allocation8_spill] sm:$0xff] %v7746_v46  ;;  %v7757_v14 = vsub.f32 %v8684_v44, %v7462_v56  ;;  %v3738_v55 = vmul.f32 %v7530_v26, %v7530_v26  ;;  %v3822_v47 = vadd.f32 %v3821_v5, %v3820_v31  ;;  %v3900_v54 = vsel %vm1399_vm3, %v3816_v34, 0.0 }
 0x4f0   :  { %v3770_v53 = vmul.f32 %v7735_v37, %v7735_v37  ;;  %v3826_v7 = vsel %vm1399_vm3, %v3736_v62, 0.0  ;;  %v3827_v41 = vsel %vm1399_vm3, %v3768_v27, 0.0  ;;  %v3899_v10 = vadd.f32 %v3898_v11, %v3897_v40  ;;  %v8688_v40 = vld [vmem:[#allocation13_spill] sm:$0xff] }
 0x4f1   :  { %8685 = vst [vmem:[#allocation10_spill] sm:$0xff] %v7757_v14  ;;  %v7768_v22 = vsub.f32 %v8686_v4, %v7462_v56  ;;  %v3739_v42 = vmul.f32 %v7534_v43, %v7534_v43  ;;  %v3825_v44 = vadd.f32 %v3824_v60, %v3823_v45  ;;  %v3902_v31 = vsel %vm1399_vm3, %v3819_v52, 0.0 }
 0x4f2   :  { %v3771_v34 = vmul.f32 %v7746_v46, %v7746_v46  ;;  %v3829_v5 = vsel %vm1399_vm3, %v3737_v9, 0.0  ;;  %v3830_v62 = vsel %vm1399_vm3, %v3769_v39, 0.0  ;;  %v3901_v37 = vadd.f32 %v3900_v54, %v3899_v10  ;;  %v8690_v10 = vld [vmem:[#allocation14_spill] sm:$0xff] }
 0x4f3   :  { %8687 = vst [vmem:[#allocation11_spill] sm:$0xff] %v7768_v22  ;;  %v7779_v27 = vsub.f32 %v8688_v40, %v7462_v56  ;;  %v3740_v11 = vmul.f32 %v7546_v49, %v7546_v49  ;;  %v3828_v4 = vadd.f32 %v3827_v41, %v3826_v7  ;;  %v3904_v45 = vsel %vm1399_vm3, %v3822_v47, 0.0 }
 0x4f4   :  { %v3772_v52 = vmul.f32 %v7757_v14, %v7757_v14  ;;  %v3832_v60 = vsel %vm1399_vm3, %v3738_v55, 0.0  ;;  %v3833_v9 = vsel %vm1399_vm3, %v3770_v53, 0.0  ;;  %v3903_v46 = vadd.f32 %v3902_v31, %v3901_v37  ;;  %v8692_v37 = vld [vmem:[#allocation15_spill] sm:$0xff] }
 0x4f5   :  { %8689 = vst [vmem:[#allocation13_spill] sm:$0xff] %v7779_v27  ;;  %v7790_v39 = vsub.f32 %v8690_v10, %v7462_v56  ;;  %v3741_v54 = vmul.f32 %v7550_v23, %v7550_v23  ;;  %v3831_v40 = vadd.f32 %v3830_v62, %v3829_v5  ;;  %v3906_v7 = vsel %vm1399_vm3, %v3825_v44, 0.0 }
 0x4f6   :  { %v3773_v47 = vmul.f32 %v7768_v22, %v7768_v22  ;;  %v3835_v41 = vsel %vm1399_vm3, %v3739_v42, 0.0  ;;  %v3836_v55 = vsel %vm1399_vm3, %v3771_v34, 0.0  ;;  %v3905_v14 = vadd.f32 %v3904_v45, %v3903_v46  ;;  %v8694_v46 = vld [vmem:[#allocation16_spill] sm:$0xff] }
 0x4f7   :  { %8691 = vst [vmem:[#allocation14_spill] sm:$0xff] %v7790_v39  ;;  %v7801_v53 = vsub.f32 %v8692_v37, %v7462_v56  ;;  %v3742_v31 = vmul.f32 %v7554_v24, %v7554_v24  ;;  %v3834_v10 = vadd.f32 %v3833_v9, %v3832_v60  ;;  %v3908_v5 = vsel %vm1399_vm3, %v3828_v4, 0.0 }
 0x4f8   :  { %v3774_v44 = vmul.f32 %v7779_v27, %v7779_v27  ;;  %v3838_v62 = vsel %vm1399_vm3, %v3740_v11, 0.0  ;;  %v3839_v42 = vsel %vm1399_vm3, %v3772_v52, 0.0  ;;  %v3907_v22 = vadd.f32 %v3906_v7, %v3905_v14  ;;  %v8696_v14 = vld [vmem:[#allocation17_spill] sm:$0xff] }
 0x4f9   :  { %8693 = vst [vmem:[#allocation15_spill] sm:$0xff] %v7801_v53  ;;  %v7812_v34 = vsub.f32 %v8694_v46, %v7462_v56  ;;  %v3743_v45 = vmul.f32 %v7558_v12, %v7558_v12  ;;  %v3837_v37 = vadd.f32 %v3836_v55, %v3835_v41  ;;  %v3910_v60 = vsel %vm1399_vm3, %v3831_v40, 0.0 }
 0x4fa   :  { %v3775_v4 = vmul.f32 %v7790_v39, %v7790_v39  ;;  %v3841_v9 = vsel %vm1399_vm3, %v3741_v54, 0.0  ;;  %v3842_v11 = vsel %vm1399_vm3, %v3773_v47, 0.0  ;;  %v3909_v27 = vadd.f32 %v3908_v5, %v3907_v22  ;;  %v8698_v22 = vld [vmem:[#allocation18_spill] sm:$0xff] }
 0x4fb   :  { %8695 = vst [vmem:[#allocation16_spill] sm:$0xff] %v7812_v34  ;;  %v7823_v52 = vsub.f32 %v8696_v14, %v7462_v56  ;;  %v3744_v7 = vmul.f32 %v7562_v17, %v7562_v17  ;;  %v3840_v46 = vadd.f32 %v3839_v42, %v3838_v62  ;;  %v3912_v41 = vsel %vm1399_vm3, %v3834_v10, 0.0 }
 0x4fc   :  { %v3776_v40 = vmul.f32 %v7801_v53, %v7801_v53  ;;  %v3844_v55 = vsel %vm1399_vm3, %v3742_v31, 0.0  ;;  %v3845_v54 = vsel %vm1399_vm3, %v3774_v44, 0.0  ;;  %v3911_v39 = vadd.f32 %v3910_v60, %v3909_v27  ;;  %v8700_v27 = vld [vmem:[#allocation19_spill] sm:$0xff] }
 0x4fd   :  { %8697 = vst [vmem:[#allocation17_spill] sm:$0xff] %v7823_v52  ;;  %v7834_v47 = vsub.f32 %v8698_v22, %v7462_v56  ;;  %v3745_v5 = vmul.f32 %v7566_v6, %v7566_v6  ;;  %v3843_v14 = vadd.f32 %v3842_v11, %v3841_v9  ;;  %v3914_v62 = vsel %vm1399_vm3, %v3837_v37, 0.0 }
 0x4fe   :  { %v3777_v10 = vmul.f32 %v7812_v34, %v7812_v34  ;;  %v3847_v42 = vsel %vm1399_vm3, %v3743_v45, 0.0  ;;  %v3848_v31 = vsel %vm1399_vm3, %v3775_v4, 0.0  ;;  %v3913_v53 = vadd.f32 %v3912_v41, %v3911_v39  ;;  %v8702_v39 = vld [vmem:[#allocation20_spill] sm:$0xff] }
 0x4ff   :  { %8699 = vst [vmem:[#allocation18_spill] sm:$0xff] %v7834_v47  ;;  %v7845_v44 = vsub.f32 %v8700_v27, %v7462_v56  ;;  %v3746_v60 = vmul.f32 %v7570_v13, %v7570_v13  ;;  %v3846_v22 = vadd.f32 %v3845_v54, %v3844_v55  ;;  %v3916_v9 = vsel %vm1399_vm3, %v3840_v46, 0.0 }
 0x500   :  { %v3778_v37 = vmul.f32 %v7823_v52, %v7823_v52  ;;  %v3850_v11 = vsel %vm1399_vm3, %v3744_v7, 0.0  ;;  %v3851_v45 = vsel %vm1399_vm3, %v3776_v40, 0.0  ;;  %v3915_v34 = vadd.f32 %v3914_v62, %v3913_v53  ;;  %v8704_v53 = vld [vmem:[#allocation21_spill] sm:$0xff] }
 0x501   :  { %8701 = vst [vmem:[#allocation19_spill] sm:$0xff] %v7845_v44  ;;  %v7856_v4 = vsub.f32 %v8702_v39, %v7462_v56  ;;  %v3747_v41 = vmul.f32 %v7578_v2, %v7578_v2  ;;  %v3849_v27 = vadd.f32 %v3848_v31, %v3847_v42  ;;  %v3918_v55 = vsel %vm1399_vm3, %v3843_v14, 0.0 }
 0x502   :  { %v3779_v46 = vmul.f32 %v7834_v47, %v7834_v47  ;;  %v3853_v54 = vsel %vm1399_vm3, %v3745_v5, 0.0  ;;  %v3854_v7 = vsel %vm1399_vm3, %v3777_v10, 0.0  ;;  %v3917_v52 = vadd.f32 %v3916_v9, %v3915_v34  ;;  %v8706_v34 = vld [vmem:[#allocation22_spill] sm:$0xff] }
 0x503   :  { %8703 = vst [vmem:[#allocation20_spill] sm:$0xff] %v7856_v4  ;;  %v7867_v40 = vsub.f32 %v8704_v53, %v7462_v56  ;;  %v3748_v62 = vmul.f32 %v7598_v38, %v7598_v38  ;;  %v3852_v39 = vadd.f32 %v3851_v45, %v3850_v11  ;;  %v3920_v42 = vsel %vm1399_vm3, %v3846_v22, 0.0 }
 0x504   :  { %v3780_v14 = vmul.f32 %v7845_v44, %v7845_v44  ;;  %v3856_v31 = vsel %vm1399_vm3, %v3746_v60, 0.0  ;;  %v3857_v5 = vsel %vm1399_vm3, %v3778_v37, 0.0  ;;  %v3919_v47 = vadd.f32 %v3918_v55, %v3917_v52  ;;  %v8707_v52 = vld [vmem:[#allocation23_spill] sm:$0xff] }
 0x505   :  { %8705 = vst [vmem:[#allocation21_spill] sm:$0xff] %v7867_v40  ;;  %v7878_v10 = vsub.f32 %v8706_v34, %v7462_v56  ;;  %v3749_v9 = vmul.f32 %v7602_v1, %v7602_v1  ;;  %v3855_v53 = vadd.f32 %v3854_v7, %v3853_v54  ;;  %v3922_v11 = vsel %vm1399_vm3, %v3849_v27, 0.0 }
 0x506   :  { %v3781_v22 = vmul.f32 %v7856_v4, %v7856_v4  ;;  %v3859_v45 = vsel %vm1399_vm3, %v3747_v41, 0.0  ;;  %v3860_v60 = vsel %vm1399_vm3, %v3779_v46, 0.0  ;;  %v3921_v44 = vadd.f32 %v3920_v42, %v3919_v47  ;;  %v8708_v47 = vld [vmem:[#allocation24_spill] sm:$0xff] }
 0x507   :  { %v7889_v37 = vsub.f32 %v8707_v52, %v7462_v56  ;;  %v3750_v55 = vmul.f32 %v7606_v21, %v7606_v21  ;;  %v3858_v34 = vadd.f32 %v3857_v5, %v3856_v31  ;;  %v3924_v54 = vsel %vm1399_vm3, %v3852_v39, 0.0 }
 0x508   :  { %v3782_v27 = vmul.f32 %v7867_v40, %v7867_v40  ;;  %v3862_v7 = vsel %vm1399_vm3, %v3748_v62, 0.0  ;;  %v3863_v41 = vsel %vm1399_vm3, %v3780_v14, 0.0  ;;  %v3923_v4 = vadd.f32 %v3922_v11, %v3921_v44 }
 0x509   :  { %v7900_v46 = vsub.f32 %v8708_v47, %v7462_v56  ;;  %v3751_v42 = vmul.f32 %v7610_v33, %v7610_v33  ;;  %v3861_v52 = vadd.f32 %v3860_v60, %v3859_v45  ;;  %v3926_v31 = vsel %vm1399_vm3, %v3855_v53, 0.0 }
 0x50a   :  { %v3783_v39 = vmul.f32 %v7878_v10, %v7878_v10  ;;  %v3865_v5 = vsel %vm1399_vm3, %v3749_v9, 0.0  ;;  %v3866_v62 = vsel %vm1399_vm3, %v3781_v22, 0.0  ;;  %v3925_v40 = vadd.f32 %v3924_v54, %v3923_v4 }
 0x50b   :  { %8709 = vst [vmem:[#allocation22_spill] sm:$0xff] %v7900_v46  ;;  %v7911_v44 = vsub.f32 %v7453_v51, %v7462_v56  ;;  %v3752_v14 = vmul.f32 %v7636_v0, %v7636_v0  ;;  %v3864_v11 = vadd.f32 %v3863_v41, %v3862_v7  ;;  %v3928_v45 = vsel %vm1399_vm3, %v3858_v34, 0.0 }
 0x50c   :  { %v3784_v53 = vmul.f32 %v7889_v37, %v7889_v37  ;;  %v3868_v60 = vsel %vm1399_vm3, %v3750_v55, 0.0  ;;  %v3869_v9 = vsel %vm1399_vm3, %v3782_v27, 0.0  ;;  %v3927_v47 = vadd.f32 %v3926_v31, %v3925_v40 }
 0x50d   :  { %8710 = vst [vmem:[#allocation23_spill] sm:$0xff] %v7911_v44  ;;  %v3753_v4 = vmul.f32 %v7640_v50, %v7640_v50  ;;  %v3867_v22 = vadd.f32 %v3866_v62, %v3865_v5  ;;  %v3930_v51 = vsel %vm1399_vm3, %v3861_v52, 0.0  ;;  %v3785_v56 = vmul.f32 %v7900_v46, %v7900_v46 }
 0x50e   :  { %v3871_v54 = vsel %vm1399_vm3, %v3751_v42, 0.0  ;;  %v3872_v34 = vsel %vm1399_vm3, %v3783_v39, 0.0  ;;  %v3929_v7 = vadd.f32 %v3928_v45, %v3927_v47  ;;  %v3754_v55 = vmul.f32 %v7654_v28, %v7654_v28 }
 0x50f   :  { %v3870_v41 = vadd.f32 %v3869_v9, %v3868_v60  ;;  %v3932_v40 = vsel %vm1399_vm3, %v3864_v11, 0.0  ;;  %v3786_v27 = vmul.f32 %v7911_v44, %v7911_v44  ;;  %v3874_v31 = vsel %vm1399_vm3, %v3752_v14, 0.0 }
 0x510   :  { %v3875_v52 = vsel %vm1399_vm3, %v3784_v53, 0.0  ;;  %v3931_v5 = vadd.f32 %v3930_v51, %v3929_v7  ;;  %v3873_v62 = vadd.f32 %v3872_v34, %v3871_v54  ;;  %v3934_v42 = vsel %vm1399_vm3, %v3867_v22, 0.0 }
 0x511   :  { %v3877_v39 = vsel %vm1399_vm3, %v3753_v4, 0.0  ;;  %v3878_v45 = vsel %vm1399_vm3, %v3785_v56, 0.0  ;;  %v3876_v46 = vadd.f32 %v3875_v52, %v3874_v31  ;;  %v3936_v60 = vsel %vm1399_vm3, %v3870_v41, 0.0 }
 0x512   :  { %v3933_v47 = vadd.f32 %v3932_v40, %v3931_v5  ;;  %v3880_v11 = vsel %vm1399_vm3, %v3754_v55, 0.0  ;;  %v3881_v9 = vsel %vm1399_vm3, %v3786_v27, 0.0  ;;  %v3879_v14 = vadd.f32 %v3878_v45, %v3877_v39 }
 0x513   :  { %v3938_v53 = vsel %vm1399_vm3, %v3873_v62, 0.0  ;;  %v3882_v54 = vadd.f32 %v3881_v9, %v3880_v11  ;;  %v3940_v22 = vsel %vm1399_vm3, %v3876_v46, 0.0  ;;  %v4363_v46 = vld [vmem:[%s8601_s4 + $0x1] ss:$0 sm:$0xff]  ;;  %v3961_v45 = vlaneseq }
 0x514   :  { %v3935_v44 = vadd.f32 %v3934_v42, %v3933_v47  ;;  %v3942_v4 = vsel %vm1399_vm3, %v3879_v14, 0.0 }
 0x515   :  { %v3944_v7 = vsel %vm1399_vm3, %v3882_v54, 0.0  ;;  %v3962_v47 = vshrl.u32 %v3961_v45, 7  ;;  %v8720_v45 = vld [vmem:[#allocation6_spill] sm:$0xff] }
 0x516   :  { %v3937_v51 = vadd.f32 %v3936_v60, %v3935_v44  ;;  %v3953_v60 = vld [vmem:[%s8601_s4] sm:$0x1] }
 0x517   :  { %v3963_v11 = vsub.s32 0, %v3962_v47 }
 0x518   :  { %v3939_v34 = vadd.f32 %v3938_v53, %v3937_v51 }
 0x51a   :  { %v3941_v56 = vadd.f32 %v3940_v22, %v3939_v34 }
 0x51c   :  { %v3943_v40 = vadd.f32 %v3942_v4, %v3941_v56 }
 0x51e   :  { %v3945_v41 = vadd.f32 %v3944_v7, %v3943_v40  ;;  %v8711_v7 = vld [vmem:[#allocation25_spill] sm:$0xff]  ;;  %v8712_v40 = vld [vmem:[#allocation26_spill] sm:$0xff] }
 0x520   :  { %v3946_v31 = vrot.slane %v3945_v41, 4 }
 0x522   :  { %v3947_v55 = vadd.f32 %v3946_v31, %v3945_v41  ;;  %v8713_v41 = vld [vmem:[#allocation27_spill] sm:$0xff]  ;;  %v8714_v31 = vld [vmem:[#allocation28_spill] sm:$0xff] }
 0x524   :  { %v3948_v52 = vrot.slane %v3947_v55, 2 }
 0x526   :  { %v3949_v27 = vadd.f32 %v3948_v52, %v3947_v55  ;;  %v8715_v55 = vld [vmem:[#allocation29_spill] sm:$0xff] }
 0x528   :  { %v3950_v5 = vrot.slane %v3949_v27, 1 }
 0x52a   :  { %v3951_v42 = vadd.f32 %v3950_v5, %v3949_v27  ;;  %v8716_v27 = vld [vmem:[#allocation30_spill] sm:$0xff] }
 0x52c   :  { %v3952_v39 = vmul.f32 0.001953125, %v3951_v42  ;;  %v8717_v42 = vld [vmem:[#allocation31_spill] sm:$0xff] }
 0x52e   :  { %v3954_v62 = vadd.f32 1e-05, %v3952_v39  ;;  %v8718_v39 = vld [vmem:[#allocation32_spill] sm:$0xff] }
 0x530   :  { %4696 = vrsqrt.f32 %v3954_v62 }
 0x53a   :  { %v4697_v44 = vpop.eup %4696 }
 0x53b   :  { %3957 = vrot.lane.b32.xlu0 %v4697_v44, %s4705_s15  ;;  %v8719_v44 = vld [vmem:[#allocation7_spill] sm:$0xff] }
 0x53f   :  { %4039 = vrot.lane.b32.xlu0 %v4363_v46, %s4704_s0 }
 0x5ad   :  { %v3958_v9 = vpop.permute.xlu0 %3957 }
 0x5ae   :  { %v3960_v14 = vmul.f32 %v3958_v9, %v3953_v60  ;;  %v8721_v60 = vld [vmem:[#allocation12_spill] sm:$0xff]  ;;  %v8722_v9 = vld [vmem:[#allocation9_spill] sm:$0xff] }
 0x5b0   :  { %v3964_v53 = vrot.slane %v3960_v14, %v3963_v11 }
 0x5b2   :  { %3966 = vrot.lane.b32.xlu1 %v3964_v53, %s4704_s0  ;;  %v8723_v53 = vld [vmem:[#allocation8_spill] sm:$0xff] }
 0x624   :  { %v7952_v51 = vpop.permute.xlu1 %3966 }
 0x625   :  { %v7956_v54 = vmul.f32 %v7952_v51, %v7466_v58  ;;  %v7960_v22 = vmul.f32 %v7952_v51, %v7470_v57  ;;  %v7964_v34 = vmul.f32 %v7952_v51, %v7474_v25  ;;  %v7968_v4 = vmul.f32 %v7952_v51, %v7478_v29 }
 0x626   :  { %v7972_v56 = vmul.f32 %v7952_v51, %v7482_v59  ;;  %v7976_v58 = vmul.f32 %v7952_v51, %v7486_v63  ;;  %v7980_v57 = vmul.f32 %v7952_v51, %v7490_v16  ;;  %v7984_v25 = vmul.f32 %v7952_v51, %v7494_v61 }
 0x627   :  { %v7988_v29 = vmul.f32 %v7952_v51, %v7498_v15  ;;  %v7992_v59 = vmul.f32 %v7952_v51, %v7502_v18  ;;  %v7996_v63 = vmul.f32 %v7952_v51, %v7506_v32  ;;  %v8000_v16 = vmul.f32 %v7952_v51, %v7510_v3 }
 0x628   :  { %v8004_v61 = vmul.f32 %v7952_v51, %v7514_v35  ;;  %v8008_v15 = vmul.f32 %v7952_v51, %v7518_v36  ;;  %v8012_v18 = vmul.f32 %v7952_v51, %v7522_v20  ;;  %v8016_v32 = vmul.f32 %v7952_v51, %v7530_v26 }
 0x629   :  { %v8020_v3 = vmul.f32 %v7952_v51, %v7534_v43  ;;  %v8024_v35 = vmul.f32 %v7952_v51, %v7546_v49  ;;  %v8028_v36 = vmul.f32 %v7952_v51, %v7550_v23  ;;  %v8032_v20 = vmul.f32 %v7952_v51, %v7554_v24 }
 0x62a   :  { %v8036_v26 = vmul.f32 %v7952_v51, %v7558_v12  ;;  %v8040_v43 = vmul.f32 %v7952_v51, %v7562_v17  ;;  %v8044_v49 = vmul.f32 %v7952_v51, %v7566_v6  ;;  %v8048_v23 = vmul.f32 %v7952_v51, %v7570_v13 }
 0x62b   :  { %v8052_v24 = vmul.f32 %v7952_v51, %v7578_v2  ;;  %v8056_v12 = vmul.f32 %v7952_v51, %v7598_v38  ;;  %v8060_v17 = vmul.f32 %v7952_v51, %v7602_v1  ;;  %v8064_v6 = vmul.f32 %v7952_v51, %v7606_v21 }
 0x62c   :  { %v8068_v13 = vmul.f32 %v7952_v51, %v7610_v33  ;;  %v8072_v2 = vmul.f32 %v7952_v51, %v7636_v0  ;;  %v8076_v38 = vmul.f32 %v7952_v51, %v7640_v50  ;;  %v8080_v1 = vmul.f32 %v7952_v51, %v7654_v28 }
 0x62d   :  { %v8084_v21 = vmul.f32 %v7952_v51, %v7526_v19  ;;  %v8088_v33 = vmul.f32 %v7952_v51, %v7538_v30  ;;  %v8092_v0 = vmul.f32 %v7952_v51, %v7542_v8  ;;  %v8096_v50 = vmul.f32 %v7952_v51, %v8711_v7 }
 0x62e   :  { %v8100_v28 = vmul.f32 %v7952_v51, %v8712_v40  ;;  %v8104_v19 = vmul.f32 %v7952_v51, %v7614_v48  ;;  %v8108_v30 = vmul.f32 %v7952_v51, %v8713_v41  ;;  %v8112_v8 = vmul.f32 %v7952_v51, %v8714_v31  ;;  %v8724_v40 = vld [vmem:[#allocation10_spill] sm:$0xff]  ;;  %v8725_v31 = vld [vmem:[#allocation11_spill] sm:$0xff] }
 0x62f   :  { %v8116_v52 = vmul.f32 %v7952_v51, %v8715_v55  ;;  %v8120_v5 = vmul.f32 %v7952_v51, %v8716_v27  ;;  %v8124_v48 = vmul.f32 %v7952_v51, %v8717_v42  ;;  %v8128_v62 = vmul.f32 %v7952_v51, %v8718_v39  ;;  %v8727_v27 = vld [vmem:[#allocation13_spill] sm:$0xff]  ;;  %v8729_v39 = vld [vmem:[#allocation14_spill] sm:$0xff] }
 0x630   :  { %v8132_v46 = vmul.f32 %v7952_v51, %v8719_v44  ;;  %v8136_v47 = vmul.f32 %v7952_v51, %v8720_v45  ;;  %v8140_v11 = vmul.f32 %v7952_v51, %v8721_v60  ;;  %v8144_v14 = vmul.f32 %v7952_v51, %v8722_v9  ;;  %v8731_v45 = vld [vmem:[#allocation15_spill] sm:$0xff]  ;;  %v8733_v9 = vld [vmem:[#allocation16_spill] sm:$0xff] }
 0x631   :  { %v8148_v7 = vmul.f32 %v7952_v51, %v8723_v53  ;;  %v8152_v41 = vmul.f32 %v7952_v51, %v8724_v40  ;;  %v8156_v55 = vmul.f32 %v7952_v51, %v8725_v31  ;;  %v8160_v42 = vmul.f32 %v7952_v51, %v8727_v27  ;;  %v8735_v40 = vld [vmem:[#allocation17_spill] sm:$0xff]  ;;  %v8736_v27 = vld [vmem:[#allocation18_spill] sm:$0xff] }
 0x632   :  { %v8164_v44 = vmul.f32 %v7952_v51, %v8729_v39  ;;  %v8168_v60 = vmul.f32 %v7952_v51, %v8731_v45  ;;  %v8172_v53 = vmul.f32 %v7952_v51, %v8733_v9  ;;  %v8176_v31 = vmul.f32 %v7952_v51, %v8735_v40  ;;  %v8738_v39 = vld [vmem:[#allocation19_spill] sm:$0xff]  ;;  %v8740_v45 = vld [vmem:[#allocation20_spill] sm:$0xff]  ;;  %v8741_v9 = vld [vmem:[#allocation21_spill] sm:$0xff] }
 0x633   :  { %8726 = vst [vmem:[#allocation24_spill] sm:$0xff] %v8156_v55  ;;  %8728 = vst [vmem:[#allocation25_spill] sm:$0xff] %v8160_v42  ;;  %v8178_v55 = vpop.permute.xlu0 %4039  ;;  %v8182_v42 = vmul.f32 %v7952_v51, %v8736_v27  ;;  %v8198_v40 = vmul.f32 %v7952_v51, %v7878_v10  ;;  %v8202_v27 = vmul.f32 %v7952_v51, %v7889_v37 }
 0x634   :  { %8730 = vst [vmem:[#allocation26_spill] sm:$0xff] %v8164_v44  ;;  %8732 = vst [vmem:[#allocation27_spill] sm:$0xff] %v8168_v60  ;;  %v8186_v44 = vmul.f32 %v7952_v51, %v8738_v39  ;;  %v8190_v60 = vmul.f32 %v7952_v51, %v8740_v45  ;;  %v4044_v10 = vadd.f32 %v8178_v55, %v7964_v34 }
 0x635   :  { %8734 = vst [vmem:[#allocation28_spill] sm:$0xff] %v8172_v53  ;;  %8737 = vst [vmem:[#allocation29_spill] sm:$0xff] %v8182_v42  ;;  %v8194_v53 = vmul.f32 %v7952_v51, %v8741_v9  ;;  %v8743_v42 = vld [vmem:[#allocation22_spill] sm:$0xff]  ;;  %v4042_v9 = vadd.f32 %v8178_v55, %v7956_v54  ;;  %v4045_v37 = vadd.f32 %v8178_v55, %v7968_v4 }
 0x636   :  { %8739 = vst [vmem:[#allocation30_spill] sm:$0xff] %v8186_v44  ;;  %v8206_v39 = vmul.f32 %v7952_v51, %v8743_v42  ;;  %v8745_v44 = vld [vmem:[#allocation23_spill] sm:$0xff]  ;;  %v4046_v42 = vadd.f32 %v8178_v55, %v7972_v56  ;;  %v4049_v54 = vadd.f32 %v8178_v55, %v7984_v25  ;;  %v4051_v34 = vadd.f32 %v8178_v55, %v7992_v59 }
 0x637   :  { %8742 = vst [vmem:[#allocation31_spill] sm:$0xff] %v8194_v53  ;;  %v8210_v45 = vmul.f32 %v7952_v51, %v8745_v44  ;;  %v4043_v53 = vadd.f32 %v8178_v55, %v7960_v22  ;;  %v4048_v51 = vadd.f32 %v8178_v55, %v7980_v57  ;;  %v4050_v22 = vadd.f32 %v8178_v55, %v7988_v29 }
 0x638   :  { %8744 = vst [vmem:[#allocation32_spill] sm:$0xff] %v8206_v39  ;;  %v4047_v39 = vadd.f32 %v8178_v55, %v7976_v58  ;;  %v4052_v4 = vadd.f32 %v8178_v55, %v7996_v63  ;;  %v4053_v56 = vadd.f32 %v8178_v55, %v8000_v16  ;;  %4106 = vst.msk [vmem:[%s8600_s5] sm:$0xff] %vm1399_vm3, %v4042_v9 }
 0x639   :  { %4107 = vst.msk [vmem:[%s8600_s5 + $0x8] sm:$0xff] %vm1399_vm3, %v4043_v53  ;;  %4108 = vst.msk [vmem:[%s8600_s5 + $0x10] sm:$0xff] %vm1399_vm3, %v4044_v10  ;;  %v4054_v58 = vadd.f32 %v8178_v55, %v8004_v61  ;;  %v4055_v57 = vadd.f32 %v8178_v55, %v8008_v15  ;;  %v4056_v25 = vadd.f32 %v8178_v55, %v8012_v18 }
 0x63a   :  { %4109 = vst.msk [vmem:[%s8600_s5 + $0x18] sm:$0xff] %vm1399_vm3, %v4045_v37  ;;  %v4057_v29 = vadd.f32 %v8178_v55, %v8016_v32  ;;  %4110 = vst.msk [vmem:[%s8600_s5 + $0x20] sm:$0xff] %vm1399_vm3, %v4046_v42  ;;  %v4058_v59 = vadd.f32 %v8178_v55, %v8020_v3  ;;  %v4059_v63 = vadd.f32 %v8178_v55, %v8024_v35 }
 0x63b   :  { %4111 = vst.msk [vmem:[%s8600_s5 + $0x28] sm:$0xff] %vm1399_vm3, %v4047_v39  ;;  %4112 = vst.msk [vmem:[%s8600_s5 + $0x30] sm:$0xff] %vm1399_vm3, %v4048_v51  ;;  %v4060_v16 = vadd.f32 %v8178_v55, %v8028_v36  ;;  %v4061_v61 = vadd.f32 %v8178_v55, %v8032_v20  ;;  %v4062_v15 = vadd.f32 %v8178_v55, %v8036_v26 }
 0x63c   :  { %4113 = vst.msk [vmem:[%s8600_s5 + $0x38] sm:$0xff] %vm1399_vm3, %v4049_v54  ;;  %4114 = vst.msk [vmem:[%s8600_s5 + $0x40] sm:$0xff] %vm1399_vm3, %v4050_v22  ;;  %v4063_v18 = vadd.f32 %v8178_v55, %v8040_v43  ;;  %v4064_v32 = vadd.f32 %v8178_v55, %v8044_v49  ;;  %v4065_v3 = vadd.f32 %v8178_v55, %v8048_v23  ;;  %v8750_v53 = vld [vmem:[#allocation28_spill] sm:$0xff] }
 0x63d   :  { %4115 = vst.msk [vmem:[%s8600_s5 + $0x48] sm:$0xff] %vm1399_vm3, %v4051_v34  ;;  %4116 = vst.msk [vmem:[%s8600_s5 + $0x50] sm:$0xff] %vm1399_vm3, %v4052_v4  ;;  %v4066_v35 = vadd.f32 %v8178_v55, %v8052_v24  ;;  %v4067_v36 = vadd.f32 %v8178_v55, %v8056_v12  ;;  %v4068_v20 = vadd.f32 %v8178_v55, %v8060_v17  ;;  %v8752_v37 = vld [vmem:[#allocation30_spill] sm:$0xff] }
 0x63e   :  { %4117 = vst.msk [vmem:[%s8600_s5 + $0x58] sm:$0xff] %vm1399_vm3, %v4053_v56  ;;  %4118 = vst.msk [vmem:[%s8600_s5 + $0x60] sm:$0xff] %vm1399_vm3, %v4054_v58  ;;  %v4069_v26 = vadd.f32 %v8178_v55, %v8064_v6  ;;  %v4070_v43 = vadd.f32 %v8178_v55, %v8068_v13  ;;  %v4071_v49 = vadd.f32 %v8178_v55, %v8072_v2  ;;  %v8753_v54 = vld [vmem:[#allocation31_spill] sm:$0xff] }
 0x63f   :  { %4119 = vst.msk [vmem:[%s8600_s5 + $0x68] sm:$0xff] %vm1399_vm3, %v4055_v57  ;;  %4120 = vst.msk [vmem:[%s8600_s5 + $0x70] sm:$0xff] %vm1399_vm3, %v4056_v25  ;;  %v4072_v23 = vadd.f32 %v8178_v55, %v8076_v38  ;;  %v4073_v24 = vadd.f32 %v8178_v55, %v8080_v1  ;;  %v4074_v12 = vadd.f32 %v8178_v55, %v8084_v21  ;;  %v8754_v4 = vld [vmem:[#allocation32_spill] sm:$0xff] }
 0x640   :  { %4121 = vst.msk [vmem:[%s8600_s5 + $0x78] sm:$0xff] %vm1399_vm3, %v4057_v29  ;;  %4122 = vst.msk [vmem:[%s8600_s5 + $0x80] sm:$0xff] %vm1399_vm3, %v4058_v59  ;;  %v4075_v17 = vadd.f32 %v8178_v55, %v8088_v33  ;;  %v4076_v6 = vadd.f32 %v8178_v55, %v8092_v0  ;;  %v4077_v13 = vadd.f32 %v8178_v55, %v8096_v50 }
 0x641   :  { %4123 = vst.msk [vmem:[%s8600_s5 + $0x88] sm:$0xff] %vm1399_vm3, %v4059_v63  ;;  %4124 = vst.msk [vmem:[%s8600_s5 + $0x90] sm:$0xff] %vm1399_vm3, %v4060_v16  ;;  %v4078_v2 = vadd.f32 %v8178_v55, %v8100_v28  ;;  %v4079_v38 = vadd.f32 %v8178_v55, %v8104_v19  ;;  %v4080_v1 = vadd.f32 %v8178_v55, %v8108_v30 }
 0x642   :  { %4125 = vst.msk [vmem:[%s8600_s5 + $0x98] sm:$0xff] %vm1399_vm3, %v4061_v61  ;;  %4126 = vst.msk [vmem:[%s8600_s5 + $0xa0] sm:$0xff] %vm1399_vm3, %v4062_v15  ;;  %v4081_v21 = vadd.f32 %v8178_v55, %v8112_v8  ;;  %v4082_v33 = vadd.f32 %v8178_v55, %v8116_v52  ;;  %v4083_v0 = vadd.f32 %v8178_v55, %v8120_v5 }
 0x643   :  { %4127 = vst.msk [vmem:[%s8600_s5 + $0xa8] sm:$0xff] %vm1399_vm3, %v4063_v18  ;;  %4128 = vst.msk [vmem:[%s8600_s5 + $0xb0] sm:$0xff] %vm1399_vm3, %v4064_v32  ;;  %v4084_v50 = vadd.f32 %v8178_v55, %v8124_v48  ;;  %v4085_v28 = vadd.f32 %v8178_v55, %v8128_v62  ;;  %v4086_v19 = vadd.f32 %v8178_v55, %v8132_v46  ;;  %v8746_v62 = vld [vmem:[#allocation24_spill] sm:$0xff] }
 0x644   :  { %4129 = vst.msk [vmem:[%s8600_s5 + $0xb8] sm:$0xff] %vm1399_vm3, %v4065_v3  ;;  %4130 = vst.msk [vmem:[%s8600_s5 + $0xc0] sm:$0xff] %vm1399_vm3, %v4066_v35  ;;  %v4087_v30 = vadd.f32 %v8178_v55, %v8136_v47  ;;  %v4088_v8 = vadd.f32 %v8178_v55, %v8140_v11  ;;  %v4089_v52 = vadd.f32 %v8178_v55, %v8144_v14  ;;  %v8747_v47 = vld [vmem:[#allocation25_spill] sm:$0xff]  ;;  %v8748_v14 = vld [vmem:[#allocation26_spill] sm:$0xff] }
 0x645   :  { %4131 = vst.msk [vmem:[%s8600_s5 + $0xc8] sm:$0xff] %vm1399_vm3, %v4067_v36  ;;  %4132 = vst.msk [vmem:[%s8600_s5 + $0xd0] sm:$0xff] %vm1399_vm3, %v4068_v20  ;;  %v4090_v5 = vadd.f32 %v8178_v55, %v8148_v7  ;;  %v4091_v48 = vadd.f32 %v8178_v55, %v8152_v41  ;;  %v4092_v46 = vadd.f32 %v8178_v55, %v8746_v62  ;;  %v8749_v41 = vld [vmem:[#allocation27_spill] sm:$0xff] }
 0x646   :  { %4133 = vst.msk [vmem:[%s8600_s5 + $0xd8] sm:$0xff] %vm1399_vm3, %v4069_v26  ;;  %4134 = vst.msk [vmem:[%s8600_s5 + $0xe0] sm:$0xff] %vm1399_vm3, %v4070_v43  ;;  %v4093_v11 = vadd.f32 %v8178_v55, %v8747_v47  ;;  %v4094_v7 = vadd.f32 %v8178_v55, %v8748_v14  ;;  %v4095_v44 = vadd.f32 %v8178_v55, %v8749_v41 }
 0x647   :  { %4135 = vst.msk [vmem:[%s8600_s5 + $0xe8] sm:$0xff] %vm1399_vm3, %v4071_v49  ;;  %4136 = vst.msk [vmem:[%s8600_s5 + $0xf0] sm:$0xff] %vm1399_vm3, %v4072_v23  ;;  %v4096_v39 = vadd.f32 %v8178_v55, %v8750_v53  ;;  %v4097_v9 = vadd.f32 %v8178_v55, %v8176_v31  ;;  %v8751_v31 = vld [vmem:[#allocation29_spill] sm:$0xff]  ;;  %v4099_v42 = vadd.f32 %v8178_v55, %v8752_v37 }
 0x648   :  { %4137 = vst.msk [vmem:[%s8600_s5 + $0xf8] sm:$0xff] %vm1399_vm3, %v4073_v24  ;;  %4138 = vst.msk [vmem:[%s8600_s5 + $0x100] sm:$0xff] %vm1399_vm3, %v4074_v12  ;;  %v4098_v10 = vadd.f32 %v8178_v55, %v8751_v31  ;;  %v4100_v51 = vadd.f32 %v8178_v55, %v8190_v60  ;;  %v4101_v22 = vadd.f32 %v8178_v55, %v8753_v54 }
 0x649   :  { %4139 = vst.msk [vmem:[%s8600_s5 + $0x108] sm:$0xff] %vm1399_vm3, %v4075_v17  ;;  %4140 = vst.msk [vmem:[%s8600_s5 + $0x110] sm:$0xff] %vm1399_vm3, %v4076_v6  ;;  %v4102_v60 = vadd.f32 %v8178_v55, %v8198_v40  ;;  %v4103_v34 = vadd.f32 %v8178_v55, %v8202_v27  ;;  %v4104_v56 = vadd.f32 %v8178_v55, %v8754_v4 }
 0x64a   :  { %4141 = vst.msk [vmem:[%s8600_s5 + $0x118] sm:$0xff] %vm1399_vm3, %v4077_v13  ;;  %4142 = vst.msk [vmem:[%s8600_s5 + $0x120] sm:$0xff] %vm1399_vm3, %v4078_v2  ;;  %v4105_v58 = vadd.f32 %v8178_v55, %v8210_v45 }
 0x64b   :  { %4143 = vst.msk [vmem:[%s8600_s5 + $0x128] sm:$0xff] %vm1399_vm3, %v4079_v38  ;;  %4144 = vst.msk [vmem:[%s8600_s5 + $0x130] sm:$0xff] %vm1399_vm3, %v4080_v1 }
 0x64c   :  { %4145 = vst.msk [vmem:[%s8600_s5 + $0x138] sm:$0xff] %vm1399_vm3, %v4081_v21  ;;  %4146 = vst.msk [vmem:[%s8600_s5 + $0x140] sm:$0xff] %vm1399_vm3, %v4082_v33 }
 0x64d   :  { %4147 = vst.msk [vmem:[%s8600_s5 + $0x148] sm:$0xff] %vm1399_vm3, %v4083_v0  ;;  %4148 = vst.msk [vmem:[%s8600_s5 + $0x150] sm:$0xff] %vm1399_vm3, %v4084_v50 }
 0x64e   :  { %4149 = vst.msk [vmem:[%s8600_s5 + $0x158] sm:$0xff] %vm1399_vm3, %v4085_v28  ;;  %4150 = vst.msk [vmem:[%s8600_s5 + $0x160] sm:$0xff] %vm1399_vm3, %v4086_v19 }
 0x64f   :  { %4151 = vst.msk [vmem:[%s8600_s5 + $0x168] sm:$0xff] %vm1399_vm3, %v4087_v30  ;;  %4152 = vst.msk [vmem:[%s8600_s5 + $0x170] sm:$0xff] %vm1399_vm3, %v4088_v8 }
 0x650   :  { %4153 = vst.msk [vmem:[%s8600_s5 + $0x178] sm:$0xff] %vm1399_vm3, %v4089_v52  ;;  %4154 = vst.msk [vmem:[%s8600_s5 + $0x180] sm:$0xff] %vm1399_vm3, %v4090_v5 }
 0x651   :  { %4155 = vst.msk [vmem:[%s8600_s5 + $0x188] sm:$0xff] %vm1399_vm3, %v4091_v48  ;;  %4156 = vst.msk [vmem:[%s8600_s5 + $0x190] sm:$0xff] %vm1399_vm3, %v4092_v46 }
 0x652   :  { %4157 = vst.msk [vmem:[%s8600_s5 + $0x198] sm:$0xff] %vm1399_vm3, %v4093_v11  ;;  %4158 = vst.msk [vmem:[%s8600_s5 + $0x1a0] sm:$0xff] %vm1399_vm3, %v4094_v7 }
 0x653   :  { %4159 = vst.msk [vmem:[%s8600_s5 + $0x1a8] sm:$0xff] %vm1399_vm3, %v4095_v44  ;;  %4160 = vst.msk [vmem:[%s8600_s5 + $0x1b0] sm:$0xff] %vm1399_vm3, %v4096_v39 }
 0x654   :  { %4161 = vst.msk [vmem:[%s8600_s5 + $0x1b8] sm:$0xff] %vm1399_vm3, %v4097_v9  ;;  %4162 = vst.msk [vmem:[%s8600_s5 + $0x1c0] sm:$0xff] %vm1399_vm3, %v4098_v10 }
 0x655   :  { %4163 = vst.msk [vmem:[%s8600_s5 + $0x1c8] sm:$0xff] %vm1399_vm3, %v4099_v42  ;;  %4164 = vst.msk [vmem:[%s8600_s5 + $0x1d0] sm:$0xff] %vm1399_vm3, %v4100_v51 }
 0x656   :  { %4165 = vst.msk [vmem:[%s8600_s5 + $0x1d8] sm:$0xff] %vm1399_vm3, %v4101_v22  ;;  %4166 = vst.msk [vmem:[%s8600_s5 + $0x1e0] sm:$0xff] %vm1399_vm3, %v4102_v60 }
 0x657   :  { %4167 = vst.msk [vmem:[%s8600_s5 + $0x1e8] sm:$0xff] %vm1399_vm3, %v4103_v34  ;;  %4168 = vst.msk [vmem:[%s8600_s5 + $0x1f0] sm:$0xff] %vm1399_vm3, %v4104_v56 }
 0x658   :  { %4169 = vst.msk [vmem:[%s8600_s5 + $0x1f8] sm:$0xff] %vm1399_vm3, %v4105_v58 }

</bundles_post_ra>
